<compile_context>
chip_gen: v7x
topology: tpu7x:2x2x1
jax: 0.10.0
libtpu: 0.0.40
codegen_flags: <defaults>
</compile_context>

<pallas_src>
import jax
import jax.numpy as jnp
from jax import lax
from jax.experimental import pallas as pl
from jax.experimental.pallas import tpu as pltpu


# --------------------------- tiling helpers ----------------------------------

_TILE = 512   # 512x512 bf16 tile = 512 KiB; with double buffering the working
              # set stays far below the 16/32 MiB scoped-VMEM defaults of
              # v5e/v6e and the 64 MiB physical VMEM of v7x.
_LANE = 128


def _ceil_to(x, m):
    return -(-x // m) * m


def _prep_dim(dim, pref=_TILE):
    """(tile, padded_dim): full dim if it fits in one tile, else `pref` tiles."""
    tile = dim if dim <= pref else pref
    return tile, _ceil_to(dim, tile)


def _prep_lane(dim, pref=_TILE):
    """Like _prep_dim, but pads narrow (<128) lane dims up to one full 128-wide
    lane register so output stores are lane-dense (unmasked vst)."""
    if dim < _LANE:
        return _LANE, _LANE
    return _prep_dim(dim, pref)


def _pad2d(x, rows, cols):
    r, c = x.shape
    if r == rows and c == cols:
        return x
    return jnp.pad(x, ((0, rows - r), (0, cols - c)))


_MM_SEMANTICS = pltpu.CompilerParams(
    dimension_semantics=("parallel", "parallel", "arbitrary"))


# ------------------------- Pallas matmul kernels ------------------------------

def _mm_nn_kernel(a_ref, b_ref, o_ref, acc_ref):
    """C[i,j] += A[i,k] @ B[k,j]; f32 VMEM accumulator resident across k."""
    @pl.when(pl.program_id(2) == 0)
    def _():
        acc_ref[...] = jnp.zeros_like(acc_ref)

    acc_ref[...] += jnp.dot(a_ref[...], b_ref[...],
                            preferred_element_type=jnp.float32)

    @pl.when(pl.program_id(2) == pl.num_programs(2) - 1)
    def _():
        o_ref[...] = acc_ref[...].astype(o_ref.dtype)


def _mm_tn_kernel(a_ref, b_ref, o_ref, acc_ref):
    """C[i,j] += A[k,i]^T B[k,j] (contract the sublane axes) — computes
    adj.T @ X / Q.T @ adj without materializing a transposed copy in HBM."""
    @pl.when(pl.program_id(2) == 0)
    def _():
        acc_ref[...] = jnp.zeros_like(acc_ref)

    acc_ref[...] += lax.dot_general(
        a_ref[...], b_ref[...],
        dimension_numbers=(((0,), (0,)), ((), ())),
        preferred_element_type=jnp.float32)

    @pl.when(pl.program_id(2) == pl.num_programs(2) - 1)
    def _():
        o_ref[...] = acc_ref[...].astype(o_ref.dtype)


def pallas_matmul(a, b):
    """A @ B with a tiled (M, N, K) grid and f32 accumulation (f32 output)."""
    M, K = a.shape
    K2, N = b.shape
    assert K == K2
    tm, Mp = _prep_dim(M)
    tn, Np = _prep_lane(N)
    tk, Kp = _prep_dim(K)
    a = _pad2d(a, Mp, Kp)          # zero K-padding: exact (adds 0 contributions)
    b = _pad2d(b, Kp, Np)
    out = pl.pallas_call(
        _mm_nn_kernel,
        out_shape=jax.ShapeDtypeStruct((Mp, Np), jnp.float32),
        grid_spec=pltpu.PrefetchScalarGridSpec(
            num_scalar_prefetch=0,
            grid=(Mp // tm, Np // tn, Kp // tk),
            in_specs=[pl.BlockSpec((tm, tk), lambda i, j, k: (i, k)),
                      pl.BlockSpec((tk, tn), lambda i, j, k: (k, j))],
            out_specs=pl.BlockSpec((tm, tn), lambda i, j, k: (i, j)),
            scratch_shapes=[pltpu.VMEM((tm, tn), jnp.float32)]),
        compiler_params=_MM_SEMANTICS,
    )(a, b)
    return out[:M, :N]


def pallas_matmul_tn(a, b):
    """A.T @ B for A:(K, M), B:(K, N) — contraction over the row axis, so the
    large adjacency never needs an HBM transpose."""
    K, M = a.shape
    K2, N = b.shape
    assert K == K2
    tm, Mp = _prep_dim(M)
    tn, Np = _prep_lane(N)
    tk, Kp = _prep_dim(K)
    a = _pad2d(a, Kp, Mp)
    b = _pad2d(b, Kp, Np)
    out = pl.pallas_call(
        _mm_tn_kernel,
        out_shape=jax.ShapeDtypeStruct((Mp, Np), jnp.float32),
        grid_spec=pltpu.PrefetchScalarGridSpec(
            num_scalar_prefetch=0,
            grid=(Mp // tm, Np // tn, Kp // tk),
            in_specs=[pl.BlockSpec((tk, tm), lambda i, j, k: (k, i)),
                      pl.BlockSpec((tk, tn), lambda i, j, k: (k, j))],
            out_specs=pl.BlockSpec((tm, tn), lambda i, j, k: (i, j)),
            scratch_shapes=[pltpu.VMEM((tm, tn), jnp.float32)]),
        compiler_params=_MM_SEMANTICS,
    )(a, b)
    return out[:M, :N]


# ---------------------- fused final matmul + sqrt(s) scale --------------------

def _mm_scale_kernel(a_ref, b_ref, s_ref, o_ref):
    u = jnp.dot(a_ref[...], b_ref[...], preferred_element_type=jnp.float32)
    o_ref[...] = u * jnp.sqrt(s_ref[...])


def _mm_scale_add_kernel(a_ref, b_ref, v_ref, s_ref, o_ref):
    # U @ diag(sqrt(s)) + V @ diag(sqrt(s)) == (A@B + V) * sqrt(s)[None, :]
    u = jnp.dot(a_ref[...], b_ref[...], preferred_element_type=jnp.float32)
    o_ref[...] = (u + v_ref[...]) * jnp.sqrt(s_ref[...])


def _scale_kernel(x_ref, s_ref, o_ref):
    o_ref[...] = x_ref[...] * jnp.sqrt(s_ref[...])


def pallas_matmul_scale(a, b, s_row, v=None):
    """(A @ B [+ V]) * sqrt(s)[None, :] — the diag(sqrt(s)) scaling (and the
    square-case +V) fused into the epilogue of the final U = Q @ U_b matmul.
    K and N are the tiny latent dim, so only M is tiled."""
    M, K = a.shape
    K2, N = b.shape
    assert K == K2
    tm, Mp = _prep_dim(M)
    Np = _LANE if N < _LANE else N                  # lane-dense output stores
    a = _pad2d(a.astype(jnp.float32), Mp, K)
    b = _pad2d(b.astype(jnp.float32), K, Np)
    s_row = _pad2d(s_row.astype(jnp.float32), 1, Np)

    in_specs = [pl.BlockSpec((tm, K), lambda i: (i, 0)),
                pl.BlockSpec((K, Np), lambda i: (0, 0))]
    args = [a, b]
    if v is not None:
        args.append(_pad2d(v.astype(jnp.float32), Mp, Np))
        in_specs.append(pl.BlockSpec((tm, Np), lambda i: (i, 0)))
    in_specs.append(pl.BlockSpec((1, Np), lambda i: (0, 0)))
    args.append(s_row)

    kernel = _mm_scale_kernel if v is None else _mm_scale_add_kernel
    out = pl.pallas_call(
        kernel,
        out_shape=jax.ShapeDtypeStruct((Mp, Np), jnp.float32),
        grid=(Mp // tm,),
        in_specs=in_specs,
        out_specs=pl.BlockSpec((tm, Np), lambda i: (i, 0)),
        compiler_params=pltpu.CompilerParams(dimension_semantics=("parallel",)),
    )(*args)
    return out[:M, :N]


def pallas_scale(x, s_row):
    """X * sqrt(s)[None, :] (rectangular-adjacency V branch)."""
    M, N = x.shape
    tm, Mp = _prep_dim(M)
    Np = _LANE if N < _LANE else N
    x = _pad2d(x.astype(jnp.float32), Mp, Np)
    s_row = _pad2d(s_row.astype(jnp.float32), 1, Np)
    out = pl.pallas_call(
        _scale_kernel,
        out_shape=jax.ShapeDtypeStruct((Mp, Np), jnp.float32),
        grid=(Mp // tm,),
        in_specs=[pl.BlockSpec((tm, Np), lambda i: (i, 0)),
                  pl.BlockSpec((1, Np), lambda i: (0, 0))],
        out_specs=pl.BlockSpec((tm, Np), lambda i: (i, 0)),
        compiler_params=pltpu.CompilerParams(dimension_semantics=("parallel",)),
    )(x, s_row)
    return out[:M, :N]


# ---------------------- randomized low-rank SVD ------------------------------
# Mirrors torch.svd_lowrank(adj, q, niter): power-iteration subspace estimate,
# project, small SVD.  The heavy adjacency matmuls run in Pallas (bf16 operands
# / f32 accumulate; the 0/1 adjacency is exact in bf16).

def _randomized_svd_factors(adj_bf16, q, niter, key):
    """adj ≈ (Q @ U_b) @ diag(s) @ V.T.  Returns Q:(m,q) f32, U_b:(q,q), s:(q,),
    V:(n,q); U = Q @ U_b is left unformed so sqrt(s) can be fused into that
    final matmul's epilogue."""
    m, n = adj_bf16.shape
    omega = jax.random.normal(key, (n, q), dtype=jnp.float32)

    y = pallas_matmul(adj_bf16, omega.astype(jnp.bfloat16))          # (m, q)
    # TODO(synk): dense QR / small SVD have no clean Pallas equivalent; kept in jnp.linalg.
    q_mat, _ = jnp.linalg.qr(y)
    for _ in range(niter):
        z = pallas_matmul_tn(adj_bf16, q_mat.astype(jnp.bfloat16))   # adj.T @ Q -> (n, q)
        q_mat, _ = jnp.linalg.qr(z)
        y = pallas_matmul(adj_bf16, q_mat.astype(jnp.bfloat16))      # adj @ Q   -> (m, q)
        q_mat, _ = jnp.linalg.qr(y)

    b = pallas_matmul_tn(q_mat.astype(jnp.bfloat16), adj_bf16)       # Q.T @ adj -> (q, n)
    u_b, s, v_t = jnp.linalg.svd(b, full_matrices=False)
    return q_mat, u_b, s, v_t.T


# -------------------------- Adj_Projector port -------------------------------

def _svd_proj(adj, *, latdim, niter, key):
    n_rows, n_cols = adj.shape
    # Cast the adjacency to bf16 (0/1 entries are exact) and zero-pad it ONCE
    # to tile multiples; the zero rows/cols flow through the whole pipeline as
    # exact zeros and are sliced off at the end.
    _, rows_p = _prep_dim(n_rows)
    _, cols_p = _prep_dim(n_cols)
    adj_bf16 = _pad2d(adj.astype(jnp.bfloat16), rows_p, cols_p)

    if latdim > n_rows or latdim > n_cols:
        dim = min(n_rows, n_cols)
    else:
        dim = latdim

    q_mat, u_b, s, v = _randomized_svd_factors(adj_bf16, dim, niter, key)

    if dim < latdim:   # pad with zero singular directions (== torch zero-concat path)
        u_b = jnp.pad(u_b, ((0, 0), (0, latdim - dim)))
        v = jnp.pad(v, ((0, 0), (0, latdim - dim)))
        s = jnp.pad(s, (0, latdim - dim))
    s_row = s.reshape(1, -1)

    if n_rows != n_cols:
        u_scaled = pallas_matmul_scale(q_mat, u_b, s_row)[:n_rows]
        v_scaled = pallas_scale(v, s_row)[:n_cols]
        projection = jnp.concatenate([u_scaled, v_scaled], axis=0)
    else:
        projection = pallas_matmul_scale(q_mat, u_b, s_row, v=v)[:n_rows]
    return projection


# whole power-iteration chain (Pallas matmuls + tiny XLA QR/SVD) as one program
_svd_proj_jit = jax.jit(_svd_proj, static_argnames=("latdim", "niter"))


class AdjProjectorPallas:
    """JAX/Pallas port of Adj_Projector (proj_method == 'adj_svd')."""

    def __init__(self, adj, latdim, niter, key):
        self.proj_embeds = jax.lax.stop_gradient(
            _svd_proj_jit(adj, latdim=latdim, niter=niter, key=key))  # == .detach()

    def forward(self):
        return self.proj_embeds

    __call__ = forward


# ------------------------------- demo ----------------------------------------

if __name__ == "__main__":
    key = jax.random.PRNGKey(0)
    k_adj, k_omega = jax.random.split(key)

    N = 64          # number of nodes (square adjacency -> (U + V) * sqrt(s))
    LATDIM = 16     # args.latdim
    NITER = 2       # args.niter

    # deterministic synthetic sparse-ish adjacency
    adj = (jax.random.uniform(k_adj, (N, N)) < 0.1).astype(jnp.float32)

    module = AdjProjectorPallas(adj, latdim=LATDIM, niter=NITER, key=k_omega)
    out = module()                                # forward(): returns proj_embeds
    out = jax.block_until_ready(out)

    assert out.shape == (N, LATDIM), out.shape
    assert out.dtype == jnp.float32, out.dtype
    assert bool(jnp.all(jnp.isfinite(out)))
    print("KERNEL_OK")
</pallas_src>

<mosaic_0001>
module attributes {stable_mosaic.version = 11 : i64} {
  func.func @_mm_nn_kernel(%arg0: i32, %arg1: i32, %arg2: i32, %arg3: memref<64x64xbf16, #tpu.memory_space<vmem>>, %arg4: memref<64x128xbf16, #tpu.memory_space<vmem>>, %arg5: memref<64x128xf32, #tpu.memory_space<vmem>>, %arg6: memref<64x128xf32, #tpu.memory_space<vmem>>) attributes {dimension_semantics = [#tpu.dimension_semantics<parallel>, #tpu.dimension_semantics<parallel>, #tpu.dimension_semantics<arbitrary>], iteration_bounds = array<i64: 1, 1, 1>, scalar_prefetch = 0 : i64, scratch_operands = 1 : i64, tpu.core_type = #tpu.core_type<tc>, window_params = [{transform_indices = @transform_0, window_bounds = array<i64: 64, 64>}, {transform_indices = @transform_1, window_bounds = array<i64: 64, 128>}, {transform_indices = @transform_2, window_bounds = array<i64: 64, 128>}]} {
    %c0_i32 = arith.constant 0 : i32
    %0 = arith.cmpi eq, %arg2, %c0_i32 : i32
    %1 = arith.extui %0 : i1 to i32
    %c0_i32_0 = arith.constant 0 : i32
    %2 = arith.cmpi ne, %1, %c0_i32_0 : i32
    scf.if %2 {
      %cst_10 = arith.constant 0.000000e+00 : f32
      %12 = vector.broadcast %cst_10 : f32 to vector<64x128xf32>
      %c0_11 = arith.constant 0 : index
      %c0_12 = arith.constant 0 : index
      %13 = vector.load %arg6[%c0_11, %c0_12] : memref<64x128xf32, #tpu.memory_space<vmem>>, vector<64x128xf32>
      tpu.vector_store %arg6[%c0_11, %c0_12], %12 {strides = array<i32>} : memref<64x128xf32, #tpu.memory_space<vmem>>, vector<64x128xf32>,
    } else {
    }
    %c0 = arith.constant 0 : index
    %c0_1 = arith.constant 0 : index
    %3 = vector.load %arg6[%c0, %c0_1] : memref<64x128xf32, #tpu.memory_space<vmem>>, vector<64x128xf32>
    %c0_2 = arith.constant 0 : index
    %c0_3 = arith.constant 0 : index
    %4 = vector.load %arg3[%c0_2, %c0_3] : memref<64x64xbf16, #tpu.memory_space<vmem>>, vector<64x64xbf16>
    %c0_4 = arith.constant 0 : index
    %c0_5 = arith.constant 0 : index
    %5 = vector.load %arg4[%c0_4, %c0_5] : memref<64x128xbf16, #tpu.memory_space<vmem>>, vector<64x128xbf16>
    %cst = arith.constant dense<0.000000e+00> : vector<64x128xf32>
    %6 = tpu.matmul %4, %5, %cst {dimension_numbers = #tpu.dot_dimension_numbers<[1], [0], [0], [1], [0, 0, 1, 1], [], []>} : vector<64x64xbf16>, vector<64x128xbf16>, vector<64x128xf32> -> vector<64x128xf32>
    %7 = arith.addf %3, %6 : vector<64x128xf32>
    %c0_6 = arith.constant 0 : index
    %c0_7 = arith.constant 0 : index
    %8 = vector.load %arg6[%c0_6, %c0_7] : memref<64x128xf32, #tpu.memory_space<vmem>>, vector<64x128xf32>
    tpu.vector_store %arg6[%c0_6, %c0_7], %7 {strides = array<i32>} : memref<64x128xf32, #tpu.memory_space<vmem>>, vector<64x128xf32>,
    %c0_i32_8 = arith.constant 0 : i32
    %9 = arith.cmpi eq, %arg2, %c0_i32_8 : i32
    %10 = arith.extui %9 : i1 to i32
    %c0_i32_9 = arith.constant 0 : i32
    %11 = arith.cmpi ne, %10, %c0_i32_9 : i32
    scf.if %11 {
      %c0_10 = arith.constant 0 : index
      %c0_11 = arith.constant 0 : index
      %12 = vector.load %arg6[%c0_10, %c0_11] : memref<64x128xf32, #tpu.memory_space<vmem>>, vector<64x128xf32>
      %c0_12 = arith.constant 0 : index
      %c0_13 = arith.constant 0 : index
      %13 = vector.load %arg5[%c0_12, %c0_13] : memref<64x128xf32, #tpu.memory_space<vmem>>, vector<64x128xf32>
      tpu.vector_store %arg5[%c0_12, %c0_13], %12 {strides = array<i32>} : memref<64x128xf32, #tpu.memory_space<vmem>>, vector<64x128xf32>,
    } else {
    }
    return
  }
  func.func @transform_0(%arg0: i32, %arg1: i32, %arg2: i32) -> (i32, i32) {
    %c0_i32 = arith.constant 0 : i32
    return %arg0, %arg2 : i32, i32
  }
  func.func @transform_1(%arg0: i32, %arg1: i32, %arg2: i32) -> (i32, i32) {
    %c0_i32 = arith.constant 0 : i32
    return %arg2, %arg1 : i32, i32
  }
  func.func @transform_2(%arg0: i32, %arg1: i32, %arg2: i32) -> (i32, i32) {
    %c0_i32 = arith.constant 0 : i32
    return %arg0, %arg1 : i32, i32
  }
}

module attributes {stable_mosaic.version = 11 : i64} {
  func.func @_mm_tn_kernel(%arg0: i32, %arg1: i32, %arg2: i32, %arg3: memref<64x64xbf16, #tpu.memory_space<vmem>>, %arg4: memref<64x128xbf16, #tpu.memory_space<vmem>>, %arg5: memref<64x128xf32, #tpu.memory_space<vmem>>, %arg6: memref<64x128xf32, #tpu.memory_space<vmem>>) attributes {dimension_semantics = [#tpu.dimension_semantics<parallel>, #tpu.dimension_semantics<parallel>, #tpu.dimension_semantics<arbitrary>], iteration_bounds = array<i64: 1, 1, 1>, scalar_prefetch = 0 : i64, scratch_operands = 1 : i64, tpu.core_type = #tpu.core_type<tc>, window_params = [{transform_indices = @transform_0, window_bounds = array<i64: 64, 64>}, {transform_indices = @transform_1, window_bounds = array<i64: 64, 128>}, {transform_indices = @transform_2, window_bounds = array<i64: 64, 128>}]} {
    %c0_i32 = arith.constant 0 : i32
    %0 = arith.cmpi eq, %arg2, %c0_i32 : i32
    %1 = arith.extui %0 : i1 to i32
    %c0_i32_0 = arith.constant 0 : i32
    %2 = arith.cmpi ne, %1, %c0_i32_0 : i32
    scf.if %2 {
      %cst_10 = arith.constant 0.000000e+00 : f32
      %12 = vector.broadcast %cst_10 : f32 to vector<64x128xf32>
      %c0_11 = arith.constant 0 : index
      %c0_12 = arith.constant 0 : index
      %13 = vector.load %arg6[%c0_11, %c0_12] : memref<64x128xf32, #tpu.memory_space<vmem>>, vector<64x128xf32>
      tpu.vector_store %arg6[%c0_11, %c0_12], %12 {strides = array<i32>} : memref<64x128xf32, #tpu.memory_space<vmem>>, vector<64x128xf32>,
    } else {
    }
    %c0 = arith.constant 0 : index
    %c0_1 = arith.constant 0 : index
    %3 = vector.load %arg6[%c0, %c0_1] : memref<64x128xf32, #tpu.memory_space<vmem>>, vector<64x128xf32>
    %c0_2 = arith.constant 0 : index
    %c0_3 = arith.constant 0 : index
    %4 = vector.load %arg3[%c0_2, %c0_3] : memref<64x64xbf16, #tpu.memory_space<vmem>>, vector<64x64xbf16>
    %c0_4 = arith.constant 0 : index
    %c0_5 = arith.constant 0 : index
    %5 = vector.load %arg4[%c0_4, %c0_5] : memref<64x128xbf16, #tpu.memory_space<vmem>>, vector<64x128xbf16>
    %cst = arith.constant dense<0.000000e+00> : vector<64x128xf32>
    %6 = tpu.matmul %4, %5, %cst {dimension_numbers = #tpu.dot_dimension_numbers<[0], [0], [1], [1], [0, 1, 1, 1], [], []>} : vector<64x64xbf16>, vector<64x128xbf16>, vector<64x128xf32> -> vector<64x128xf32>
    %7 = arith.addf %3, %6 : vector<64x128xf32>
    %c0_6 = arith.constant 0 : index
    %c0_7 = arith.constant 0 : index
    %8 = vector.load %arg6[%c0_6, %c0_7] : memref<64x128xf32, #tpu.memory_space<vmem>>, vector<64x128xf32>
    tpu.vector_store %arg6[%c0_6, %c0_7], %7 {strides = array<i32>} : memref<64x128xf32, #tpu.memory_space<vmem>>, vector<64x128xf32>,
    %c0_i32_8 = arith.constant 0 : i32
    %9 = arith.cmpi eq, %arg2, %c0_i32_8 : i32
    %10 = arith.extui %9 : i1 to i32
    %c0_i32_9 = arith.constant 0 : i32
    %11 = arith.cmpi ne, %10, %c0_i32_9 : i32
    scf.if %11 {
      %c0_10 = arith.constant 0 : index
      %c0_11 = arith.constant 0 : index
      %12 = vector.load %arg6[%c0_10, %c0_11] : memref<64x128xf32, #tpu.memory_space<vmem>>, vector<64x128xf32>
      %c0_12 = arith.constant 0 : index
      %c0_13 = arith.constant 0 : index
      %13 = vector.load %arg5[%c0_12, %c0_13] : memref<64x128xf32, #tpu.memory_space<vmem>>, vector<64x128xf32>
      tpu.vector_store %arg5[%c0_12, %c0_13], %12 {strides = array<i32>} : memref<64x128xf32, #tpu.memory_space<vmem>>, vector<64x128xf32>,
    } else {
    }
    return
  }
  func.func @transform_0(%arg0: i32, %arg1: i32, %arg2: i32) -> (i32, i32) {
    %c0_i32 = arith.constant 0 : i32
    return %arg2, %arg0 : i32, i32
  }
  func.func @transform_1(%arg0: i32, %arg1: i32, %arg2: i32) -> (i32, i32) {
    %c0_i32 = arith.constant 0 : i32
    return %arg2, %arg1 : i32, i32
  }
  func.func @transform_2(%arg0: i32, %arg1: i32, %arg2: i32) -> (i32, i32) {
    %c0_i32 = arith.constant 0 : i32
    return %arg0, %arg1 : i32, i32
  }
}

module attributes {stable_mosaic.version = 11 : i64} {
  func.func @_mm_tn_kernel(%arg0: i32, %arg1: i32, %arg2: i32, %arg3: memref<64x16xbf16, #tpu.memory_space<vmem>>, %arg4: memref<64x128xbf16, #tpu.memory_space<vmem>>, %arg5: memref<16x128xf32, #tpu.memory_space<vmem>>, %arg6: memref<16x128xf32, #tpu.memory_space<vmem>>) attributes {dimension_semantics = [#tpu.dimension_semantics<parallel>, #tpu.dimension_semantics<parallel>, #tpu.dimension_semantics<arbitrary>], iteration_bounds = array<i64: 1, 1, 1>, scalar_prefetch = 0 : i64, scratch_operands = 1 : i64, tpu.core_type = #tpu.core_type<tc>, window_params = [{transform_indices = @transform_0, window_bounds = array<i64: 64, 16>}, {transform_indices = @transform_1, window_bounds = array<i64: 64, 128>}, {transform_indices = @transform_2, window_bounds = array<i64: 16, 128>}]} {
    %c0_i32 = arith.constant 0 : i32
    %0 = arith.cmpi eq, %arg2, %c0_i32 : i32
    %1 = arith.extui %0 : i1 to i32
    %c0_i32_0 = arith.constant 0 : i32
    %2 = arith.cmpi ne, %1, %c0_i32_0 : i32
    scf.if %2 {
      %cst_10 = arith.constant 0.000000e+00 : f32
      %12 = vector.broadcast %cst_10 : f32 to vector<16x128xf32>
      %c0_11 = arith.constant 0 : index
      %c0_12 = arith.constant 0 : index
      %13 = vector.load %arg6[%c0_11, %c0_12] : memref<16x128xf32, #tpu.memory_space<vmem>>, vector<16x128xf32>
      tpu.vector_store %arg6[%c0_11, %c0_12], %12 {strides = array<i32>} : memref<16x128xf32, #tpu.memory_space<vmem>>, vector<16x128xf32>,
    } else {
    }
    %c0 = arith.constant 0 : index
    %c0_1 = arith.constant 0 : index
    %3 = vector.load %arg6[%c0, %c0_1] : memref<16x128xf32, #tpu.memory_space<vmem>>, vector<16x128xf32>
    %c0_2 = arith.constant 0 : index
    %c0_3 = arith.constant 0 : index
    %4 = vector.load %arg3[%c0_2, %c0_3] : memref<64x16xbf16, #tpu.memory_space<vmem>>, vector<64x16xbf16>
    %c0_4 = arith.constant 0 : index
    %c0_5 = arith.constant 0 : index
    %5 = vector.load %arg4[%c0_4, %c0_5] : memref<64x128xbf16, #tpu.memory_space<vmem>>, vector<64x128xbf16>
    %cst = arith.constant dense<0.000000e+00> : vector<16x128xf32>
    %6 = tpu.matmul %4, %5, %cst {dimension_numbers = #tpu.dot_dimension_numbers<[0], [0], [1], [1], [0, 1, 1, 1], [], []>} : vector<64x16xbf16>, vector<64x128xbf16>, vector<16x128xf32> -> vector<16x128xf32>
    %7 = arith.addf %3, %6 : vector<16x128xf32>
    %c0_6 = arith.constant 0 : index
    %c0_7 = arith.constant 0 : index
    %8 = vector.load %arg6[%c0_6, %c0_7] : memref<16x128xf32, #tpu.memory_space<vmem>>, vector<16x128xf32>
    tpu.vector_store %arg6[%c0_6, %c0_7], %7 {strides = array<i32>} : memref<16x128xf32, #tpu.memory_space<vmem>>, vector<16x128xf32>,
    %c0_i32_8 = arith.constant 0 : i32
    %9 = arith.cmpi eq, %arg2, %c0_i32_8 : i32
    %10 = arith.extui %9 : i1 to i32
    %c0_i32_9 = arith.constant 0 : i32
    %11 = arith.cmpi ne, %10, %c0_i32_9 : i32
    scf.if %11 {
      %c0_10 = arith.constant 0 : index
      %c0_11 = arith.constant 0 : index
      %12 = vector.load %arg6[%c0_10, %c0_11] : memref<16x128xf32, #tpu.memory_space<vmem>>, vector<16x128xf32>
      %c0_12 = arith.constant 0 : index
      %c0_13 = arith.constant 0 : index
      %13 = vector.load %arg5[%c0_12, %c0_13] : memref<16x128xf32, #tpu.memory_space<vmem>>, vector<16x128xf32>
      tpu.vector_store %arg5[%c0_12, %c0_13], %12 {strides = array<i32>} : memref<16x128xf32, #tpu.memory_space<vmem>>, vector<16x128xf32>,
    } else {
    }
    return
  }
  func.func @transform_0(%arg0: i32, %arg1: i32, %arg2: i32) -> (i32, i32) {
    %c0_i32 = arith.constant 0 : i32
    return %arg2, %arg0 : i32, i32
  }
  func.func @transform_1(%arg0: i32, %arg1: i32, %arg2: i32) -> (i32, i32) {
    %c0_i32 = arith.constant 0 : i32
    return %arg2, %arg1 : i32, i32
  }
  func.func @transform_2(%arg0: i32, %arg1: i32, %arg2: i32) -> (i32, i32) {
    %c0_i32 = arith.constant 0 : i32
    return %arg0, %arg1 : i32, i32
  }
}

module attributes {stable_mosaic.version = 11 : i64} {
  func.func @_mm_scale_add_kernel(%arg0: i32, %arg1: memref<64x16xf32, #tpu.memory_space<vmem>>, %arg2: memref<16x128xf32, #tpu.memory_space<vmem>>, %arg3: memref<64x128xf32, #tpu.memory_space<vmem>>, %arg4: memref<1x128xf32, #tpu.memory_space<vmem>>, %arg5: memref<64x128xf32, #tpu.memory_space<vmem>>) attributes {dimension_semantics = [#tpu.dimension_semantics<parallel>], iteration_bounds = array<i64: 1>, scalar_prefetch = 0 : i64, scratch_operands = 0 : i64, tpu.core_type = #tpu.core_type<tc>, window_params = [{transform_indices = @transform_0, window_bounds = array<i64: 64, 16>}, {pipeline_mode = #tpu.pipeline_mode<synchronous>, transform_indices = @transform_1, window_bounds = array<i64: 16, 128>}, {transform_indices = @transform_2, window_bounds = array<i64: 64, 128>}, {pipeline_mode = #tpu.pipeline_mode<synchronous>, transform_indices = @transform_3, window_bounds = array<i64: 1, 128>}, {transform_indices = @transform_4, window_bounds = array<i64: 64, 128>}]} {
    %c0 = arith.constant 0 : index
    %c0_0 = arith.constant 0 : index
    %0 = vector.load %arg1[%c0, %c0_0] : memref<64x16xf32, #tpu.memory_space<vmem>>, vector<64x16xf32>
    %c0_1 = arith.constant 0 : index
    %c0_2 = arith.constant 0 : index
    %1 = vector.load %arg2[%c0_1, %c0_2] : memref<16x128xf32, #tpu.memory_space<vmem>>, vector<16x128xf32>
    %cst = arith.constant dense<0.000000e+00> : vector<64x128xf32>
    %2 = tpu.matmul %0, %1, %cst {dimension_numbers = #tpu.dot_dimension_numbers<[1], [0], [0], [1], [0, 0, 1, 1], [], []>} : vector<64x16xf32>, vector<16x128xf32>, vector<64x128xf32> -> vector<64x128xf32>
    %c0_3 = arith.constant 0 : index
    %c0_4 = arith.constant 0 : index
    %3 = vector.load %arg3[%c0_3, %c0_4] : memref<64x128xf32, #tpu.memory_space<vmem>>, vector<64x128xf32>
    %4 = arith.addf %2, %3 : vector<64x128xf32>
    %c0_5 = arith.constant 0 : index
    %c0_6 = arith.constant 0 : index
    %5 = vector.load %arg4[%c0_5, %c0_6] : memref<1x128xf32, #tpu.memory_space<vmem>>, vector<1x128xf32>
    %6 = math.sqrt %5 : vector<1x128xf32>
    %7 = vector.broadcast %6 : vector<1x128xf32> to vector<64x128xf32>
    %8 = arith.mulf %4, %7 : vector<64x128xf32>
    %c0_7 = arith.constant 0 : index
    %c0_8 = arith.constant 0 : index
    %9 = vector.load %arg5[%c0_7, %c0_8] : memref<64x128xf32, #tpu.memory_space<vmem>>, vector<64x128xf32>
    tpu.vector_store %arg5[%c0_7, %c0_8], %8 {strides = array<i32>} : memref<64x128xf32, #tpu.memory_space<vmem>>, vector<64x128xf32>,
    return
  }
  func.func @transform_0(%arg0: i32) -> (i32, i32) {
    %c0_i32 = arith.constant 0 : i32
    %c0_i32_0 = arith.constant 0 : i32
    return %arg0, %c0_i32 : i32, i32
  }
  func.func @transform_1(%arg0: i32) -> (i32, i32) {
    %c0_i32 = arith.constant 0 : i32
    %c0_i32_0 = arith.constant 0 : i32
    %c0_i32_1 = arith.constant 0 : i32
    return %c0_i32, %c0_i32_0 : i32, i32
  }
  func.func @transform_2(%arg0: i32) -> (i32, i32) {
    %c0_i32 = arith.constant 0 : i32
    %c0_i32_0 = arith.constant 0 : i32
    return %arg0, %c0_i32 : i32, i32
  }
  func.func @transform_3(%arg0: i32) -> (i32, i32) {
    %c0_i32 = arith.constant 0 : i32
    %c0_i32_0 = arith.constant 0 : i32
    %c0_i32_1 = arith.constant 0 : i32
    return %c0_i32, %c0_i32_0 : i32, i32
  }
  func.func @transform_4(%arg0: i32) -> (i32, i32) {
    %c0_i32 = arith.constant 0 : i32
    %c0_i32_0 = arith.constant 0 : i32
    return %arg0, %c0_i32 : i32, i32
  }
}

</mosaic_0001>

<bundles_post_ra>
// kernel: custom-call.46
= control target key start
LH: loop header
LB: loop body
LE: loop exit
PB: predicated region body
PF: predicated region fallthrough
CT: control target
= control target key end

     0   :  { %v839_v6 = vmov 0.0   ;;  %s880_s25 = smov 0   ;;  %s1203_s0 = inlined_call_operand.vmem [shape: f32[64,16], index: 0, kind: input, shape index: {}]   ;;  %s1204_s1 = inlined_call_operand.vmem [shape: f32[64,16], index: 1, kind: output, shape index: {0}]   ;;  %s1205_s2 = inlined_call_operand.vmem [shape: f32[16], index: 2, kind: output, shape index: {1}]  }
   0x1   :  { %v45_v0 = vld [vmem:[%s1203_s0] sm:$0xff]  ;;  %v47_v1 = vld [vmem:[%s1203_s0 + $0x8] sm:$0xff]  ;;  %v49_v2 = vld [vmem:[%s1203_s0 + $0x10] sm:$0xff]  ;;  %94 = vst [vmem:[#allocation2] sm:$0x1] %v839_v6 }
   0x2   :  { %v51_v3 = vld [vmem:[%s1203_s0 + $0x18] sm:$0xff]  ;;  %v53_v4 = vld [vmem:[%s1203_s0 + $0x20] sm:$0xff]  ;;  %v55_v5 = vld [vmem:[%s1203_s0 + $0x28] sm:$0xff]  ;;  %65 = vst [vmem:[#allocation1] sm:$0xff] %v45_v0 }
   0x3   :  { %69 = vst [vmem:[#allocation1 + $0x8] sm:$0xff] %v47_v1  ;;  %73 = vst [vmem:[#allocation1 + $0x10] sm:$0xff] %v49_v2  ;;  %v57_v7 = vld [vmem:[%s1203_s0 + $0x30] sm:$0xff]  ;;  %v59_v8 = vld [vmem:[%s1203_s0 + $0x38] sm:$0xff] }
   0x4   :  { %77 = vst [vmem:[#allocation1 + $0x18] sm:$0xff] %v51_v3  ;;  %81 = vst [vmem:[#allocation1 + $0x20] sm:$0xff] %v53_v4 }
   0x5   :  { %85 = vst [vmem:[#allocation1 + $0x28] sm:$0xff] %v55_v5  ;;  %89 = vst [vmem:[#allocation1 + $0x30] sm:$0xff] %v57_v7 }
   0x6   :  { %93 = vst [vmem:[#allocation1 + $0x38] sm:$0xff] %v59_v8 }
   0x7 LB: > { %v102_v9 = vlaneseq  ;;  %v889_v12 = vstv %s837_s25  ;;  %s199_s0 = scalar_lea.vmem [#allocation1], %s837_s25  ;;  %s933_s26 = smov [#allocation1]  ;;  %s837_s25 = sphi %s880_s25, %s100_s25  }
   0x8   : > { %s383_s27 = scalar_lea.vmem [#allocation4], %s837_s25  ;;  %s1013_s28 = smov [#allocation1] }
   0x9   : > { %v101_v10 = vld [vmem:[#allocation1] sm:$0xff]  ;;  %v886_v11 = vshrl.u32 %v102_v9, 7  ;;  %s1015_s29 = smov [#allocation4] }
   0xa   : > { %v110_v13 = vld [vmem:[#allocation1 + $0x8] sm:$0xff]  ;;  %v120_v15 = vld [vmem:[#allocation1 + $0x10] sm:$0xff] }
   0xb   : > { %vm106_vm0 = vcmp.gt.s32.totalorder %v886_v11, %v889_v12  ;;  %v113_v14 = vadd.s32 8, %v886_v11  ;;  %v123_v16 = vadd.s32 16, %v886_v11  ;;  %v130_v17 = vld [vmem:[#allocation1 + $0x18] sm:$0xff]  ;;  %v133_v18 = vadd.s32 24, %v886_v11  ;;  %v140_v24 = vld [vmem:[#allocation1 + $0x20] sm:$0xff] }
   0xc   : > { %v107_v19 = vsel %vm106_vm0, %v101_v10, 0.0  ;;  %v143_v20 = vadd.s32 32, %v886_v11  ;;  %v153_v21 = vadd.s32 40, %v886_v11  ;;  %v163_v22 = vadd.s32 48, %v886_v11  ;;  %v150_v30 = vld [vmem:[#allocation1 + $0x28] sm:$0xff]  ;;  %v160_v35 = vld [vmem:[#allocation1 + $0x30] sm:$0xff] }
   0xd   : > { %v108_v23 = vmul.f32 %v107_v19, %v107_v19  ;;  %vm115_vm1 = vcmp.gt.s32.totalorder %v113_v14, %v889_v12  ;;  %vm125_vm2 = vcmp.gt.s32.totalorder %v123_v16, %v889_v12  ;;  %vm135_vm3 = vcmp.gt.s32.totalorder %v133_v18, %v889_v12  ;;  %v170_v39 = vld [vmem:[#allocation1 + $0x38] sm:$0xff]  ;;  %v911_v56 = vld [vmem:[%s199_s0] ss:$0 sm:$0xff] }
   0xe   : > { %v116_v25 = vsel %vm115_vm1, %v110_v13, 0.0  ;;  %v126_v26 = vsel %vm125_vm2, %v120_v15, 0.0  ;;  %v136_v27 = vsel %vm135_vm3, %v130_v17, 0.0  ;;  %vm145_vm4 = vcmp.gt.s32.totalorder %v143_v20, %v889_v12 }
   0xf   : > { %v117_v28 = vmul.f32 %v116_v25, %v116_v25  ;;  %v127_v29 = vmul.f32 %v126_v26, %v126_v26  ;;  %v146_v31 = vsel %vm145_vm4, %v140_v24, 0.0  ;;  %vm155_vm5 = vcmp.gt.s32.totalorder %v153_v21, %v889_v12 }
  0x10   : > { %v173_v32 = vadd.s32 56, %v886_v11  ;;  %v137_v34 = vmul.f32 %v136_v27, %v136_v27  ;;  %vm165_vm6 = vcmp.gt.s32.totalorder %v163_v22, %v889_v12  ;;  %v156_v36 = vsel %vm155_vm5, %v150_v30, 0.0  ;;  %v770_v30 = vld [vmem:[%s933_s26 + $0x10] sm:$0xff] }
  0x11   : > { %v118_v33 = vadd.f32 %v117_v28, %v108_v23  ;;  %v147_v38 = vmul.f32 %v146_v31, %v146_v31  ;;  %v166_v40 = vsel %vm165_vm6, %v160_v35, 0.0  ;;  %v157_v42 = vmul.f32 %v156_v36, %v156_v36  ;;  %v239_v31 = vld [vmem:[%s933_s26] sm:$0xff]  ;;  %v773_v36 = vld [vmem:[%s933_s26 + $0x28] sm:$0xff] }
  0x12   : > { %vm175_vm7 = vcmp.gt.s32.totalorder %v173_v32, %v889_v12  ;;  %v167_v45 = vmul.f32 %v166_v40, %v166_v40  ;;  %v201_v57 = vand.u32 2147483647, %v911_v56  ;;  %vm226_vm13 = vcmp.lt.f32.partialorder %v911_v56, 0.0  ;;  %v771_v32 = vld [vmem:[%s933_s26 + $0x18] sm:$0xff] }
  0x13   : > { %v128_v37 = vadd.f32 %v127_v29, %v118_v33  ;;  %v178_v43 = vsel %vm175_vm7, %v170_v39, 0.0  ;;  %v238_v11 = vmov %v886_v11  ;;  %v944_v35 = vand.u32 127, %v102_v9 }
  0x14   : > { %v179_v47 = vmul.f32 %v178_v43, %v178_v43  ;;  %v202_v62 = vmax.f32 %v201_v57, 0.0  ;;  %v275_v25 = vadd.s32 16, %v238_v11  ;;  %v293_v26 = vadd.s32 24, %v238_v11 }
  0x15   : > { %v138_v41 = vadd.f32 %v137_v34, %v128_v37  ;;  %v257_v27 = vadd.s32 8, %v238_v11  ;;  %v329_v28 = vadd.s32 40, %v238_v11  ;;  %v311_v29 = vadd.s32 32, %v238_v11  ;;  %v769_v34 = vld [vmem:[%s933_s26 + $0x8] sm:$0xff]  ;;  %v772_v37 = vld [vmem:[%s933_s26 + $0x20] sm:$0xff] }
  0x16   : > { %vm277_vm14 = vcmp.gt.s32.totalorder %v275_v25, %v889_v12  ;;  %vm242_vm15 = vcmp.gt.s32.totalorder %v238_v11, %v889_v12  ;;  %vm295_vm0 = vcmp.gt.s32.totalorder %v293_v26, %v889_v12  ;;  %v365_v33 = vadd.s32 56, %v238_v11 }
  0x17   : > { %v148_v44 = vadd.f32 %v147_v38, %v138_v41  ;;  %vm259_vm1 = vcmp.gt.s32.totalorder %v257_v27, %v889_v12  ;;  %vm331_vm2 = vcmp.gt.s32.totalorder %v329_v28, %v889_v12  ;;  %vm313_vm3 = vcmp.gt.s32.totalorder %v311_v29, %v889_v12  ;;  %v396_v29 = vld [vmem:[#allocation2] ss:$0 sm:$0xff] }
  0x18   : > { %v347_v38 = vadd.s32 48, %v238_v11  ;;  %v278_v39 = vsel %vm277_vm14, %v770_v30, 0.0  ;;  %v243_v40 = vsel %vm242_vm15, %v239_v31, 0.0  ;;  %v296_v41 = vsel %vm295_vm0, %v771_v32, 0.0  ;;  %v406_v32 = vld [vmem:[%s1013_s28] sm:$0xff] }
  0x19   : > { %v158_v46 = vadd.f32 %v157_v42, %v148_v44  ;;  %v260_v42 = vsel %vm259_vm1, %v769_v34, 0.0  ;;  %vm367_vm4 = vcmp.gt.s32.totalorder %v365_v33, %v889_v12  ;;  %vm368_vm5 = vcmp.lt.s32.totalorder %v365_v33, 64  ;;  %v777_v33 = vld [vmem:[%s1013_s28 + $0x8] sm:$0xff] }
  0x1a   : > { %v332_v9 = vsel %vm331_vm2, %v773_v36, 0.0  ;;  %v314_v43 = vsel %vm313_vm3, %v772_v37, 0.0  ;;  %vm954_vm6 = vcmp.eq.s32.totalorder %v944_v35, %v889_v12  ;;  %vm349_vm7 = vcmp.gt.s32.totalorder %v347_v38, %v889_v12 }
  0x1b   : > { %v168_v48 = vadd.f32 %v167_v45, %v158_v46  ;;  %v840_v28 = vmov 1.0   ;;  %v403_v11 = vmov %v886_v11  ;;  %vm1086_vm3 = vcmp.gt.s32.totalorder %v944_v35, %v889_v12 }
  0x1d   : > { %v180_v49 = vadd.f32 %v179_v47, %v168_v48 }
  0x1f   : > { %v181_v50 = vrot.slane %v180_v49, 4 }
  0x21   : > { %v182_v51 = vadd.f32 %v181_v50, %v180_v49  ;;  %v775_v50 = vld [vmem:[%s933_s26 + $0x38] sm:$0xff] }
  0x23   : > { %v183_v52 = vrot.slane %v182_v51, 2 }
  0x25   : > { %v184_v53 = vadd.f32 %v183_v52, %v182_v51  ;;  %v774_v52 = vld [vmem:[%s933_s26 + $0x30] sm:$0xff] }
  0x27   : > { %v185_v54 = vrot.slane %v184_v53, 1 }
  0x29   : > { %v907_v55 = vadd.f32 %v185_v54, %v184_v53 }
  0x2b   : > { %821 = vrsqrt.f32 %v907_v55  ;;  %vm189_vm8 = vcmp.eq.f32.partialorder %v907_v55, inf  ;;  %v192_v59 = vand.u32 2147483648, %v907_v55  ;;  %vm191_vm9 = vcmp.eq.f32.partialorder %v907_v55, 0.0 }
  0x35   : > { %v822_v58 = vpop.eup %821 }
  0x36   : > { %v188_v60 = vmul.f32 %v822_v58, %v907_v55 }
  0x38   : > { %v190_v61 = vsel %vm189_vm8, %v907_v55, %v188_v60  ;;  %vm960_vm8 = vmand %vm367_vm4, %vm368_vm5 }
  0x39   : > { %v193_v63 = vsel %vm191_vm9, %v192_v59, %v190_v61 }
  0x3a   : > { %v203_v0 = vand.u32 2147483647, %v193_v63  ;;  %v370_v63 = vsel %vm960_vm8, %v775_v50, 0.0  ;;  %v785_v50 = vld [vmem:[%s1013_s28 + $0x28] sm:$0xff] }
  0x3c   : > { %v204_v1 = vmax.f32 %v202_v62, %v203_v0 }
  0x3e   : > { %823 = vrcp.f32 %v204_v1  ;;  %vm216_vm12 = vcmp.eq.f32.partialorder %v204_v1, 0.0 }
  0x48   : > { %v824_v2 = vpop.eup %823 }
  0x49   : > { %v206_v3 = vmul.f32 %v824_v2, %v201_v57  ;;  %v209_v4 = vmul.f32 0.0, %v824_v2  ;;  %v213_v5 = vmul.f32 %v824_v2, %v203_v0  ;;  %v350_v0 = vsel %vm349_vm7, %v774_v52, 0.0 }
  0x4b   : > { %v207_v6 = vmul.f32 %v206_v3, %v206_v3  ;;  %v210_v7 = vmul.f32 %v209_v4, %v209_v4  ;;  %v214_v8 = vmul.f32 %v213_v5, %v213_v5 }
  0x4d   : > { %v211_v10 = vadd.f32 %v210_v7, %v207_v6 }
  0x4f   : > { %v215_v13 = vadd.f32 %v214_v8, %v211_v10 }
  0x51   : > { %825 = vrsqrt.f32 %v215_v13  ;;  %vm219_vm10 = vcmp.eq.f32.partialorder %v215_v13, inf  ;;  %v222_v15 = vand.u32 2147483648, %v215_v13  ;;  %vm221_vm11 = vcmp.eq.f32.partialorder %v215_v13, 0.0 }
  0x5b   : > { %v826_v14 = vpop.eup %825 }
  0x5c   : > { %v218_v16 = vmul.f32 %v826_v14, %v215_v13 }
  0x5e   : > { %v220_v17 = vsel %vm219_vm10, %v215_v13, %v218_v16 }
  0x5f   : > { %v223_v18 = vsel %vm221_vm11, %v222_v15, %v220_v17 }
  0x60   : > { %v224_v19 = vmul.f32 %v223_v18, %v204_v1 }
  0x62   : > { %v225_v20 = vsel %vm216_vm12, 0.0, %v224_v19 }
  0x63   : > { %v227_v21 = vxor.u32 2147483648, %v225_v20 }
  0x65   : > { %v922_v22 = vsel %vm226_vm13, %v225_v20, %v227_v21 }
  0x66   : > { %v928_v23 = vsel %vm191_vm9, %v911_v56, %v922_v22  ;;  %v229_v3 = vsub.f32 %v922_v22, %v911_v56 }
  0x67   : > { %v234_v24 = vsub.f32 %v911_v56, %v928_v23 }
  0x69   : > { %827 = vrcp.f32 %v234_v24 }
  0x6a   : > { %829 = vrcp.f32 %v922_v22 }
  0x73   : > { %v828_v44 = vpop.eup %827 }
  0x74   : > { %v280_v46 = vmul.f32 %v828_v44, %v278_v39  ;;  %v245_v47 = vmul.f32 %v828_v44, %v243_v40  ;;  %v298_v48 = vmul.f32 %v828_v44, %v296_v41  ;;  %v262_v49 = vmul.f32 %v828_v44, %v260_v42  ;;  %v830_v8 = vpop.eup %829  ;;  %v779_v39 = vld [vmem:[%s1013_s28 + $0x10] sm:$0xff]  ;;  %v781_v42 = vld [vmem:[%s1013_s28 + $0x18] sm:$0xff] }
  0x75   : > { %v334_v53 = vmul.f32 %v828_v44, %v332_v9  ;;  %v316_v54 = vmul.f32 %v828_v44, %v314_v43  ;;  %v372_v6 = vmul.f32 %v828_v44, %v370_v63  ;;  %v352_v7 = vmul.f32 %v828_v44, %v350_v0 }
  0x76   : > { %v281_v57 = vsel %vm191_vm9, 0.0, %v280_v46  ;;  %v246_v58 = vsel %vm191_vm9, 0.0, %v245_v47  ;;  %v299_v59 = vsel %vm191_vm9, 0.0, %v298_v48  ;;  %v263_v60 = vsel %vm191_vm9, 0.0, %v262_v49  ;;  %v783_v46 = vld [vmem:[%s1013_s28 + $0x20] sm:$0xff] }
  0x77   : > { %v286_v61 = vsel %vm954_vm6, %v281_v57, 0.0  ;;  %v251_v62 = vsel %vm954_vm6, %v246_v58, 0.0  ;;  %v304_v1 = vsel %vm954_vm6, %v299_v59, 0.0  ;;  %v268_v2 = vsel %vm954_vm6, %v263_v60, 0.0  ;;  %v789_v57 = vld [vmem:[%s1013_s28 + $0x38] sm:$0xff]  ;;  %v787_v59 = vld [vmem:[%s1013_s28 + $0x30] sm:$0xff]  ;;  %s1038_s28 = smov %s1013_s28 }
  0x78   : > { %287 = vadd.xlane.f32.xlu1 %v286_v61  ;;  %252 = vadd.xlane.f32.xlu0 %v251_v62  ;;  %v335_v4 = vsel %vm191_vm9, 0.0, %v334_v53  ;;  %v317_v5 = vsel %vm191_vm9, 0.0, %v316_v54  ;;  %v373_v56 = vsel %vm191_vm9, 0.0, %v372_v6  ;;  %v353_v14 = vsel %vm191_vm9, 0.0, %v352_v7  ;;  %s637_s30 = scalar_lea.vmem %s1038_s28, %s837_s25  ;;  %s100_s25 = sadd.s32 1, %s837_s25  }
  0x79   : > { %v340_v10 = vsel %vm954_vm6, %v335_v4, 0.0  ;;  %v322_v13 = vsel %vm954_vm6, %v317_v5, 0.0  ;;  %v231_v15 = vmul.f32 %v830_v8, %v229_v3  ;;  %v378_v16 = vsel %vm954_vm6, %v373_v56, 0.0  ;;  %p97_p0 = scmp.ge.s32.totalorder %s100_s25, 16  }
  0x7a   : > { %v358_v17 = vsel %vm954_vm6, %v353_v14, 0.0  ;;  %v450_v53 = vadd.s32 56, %v403_v11  ;;  %v469_v11 = vmov %v886_v11 }
  0x7b   : > { %v233_v18 = vsel %vm191_vm9, 0.0, %v231_v15  ;;  %v490_v6 = vadd.s32 8, %v469_v11  ;;  %v511_v8 = vadd.s32 16, %v469_v11  ;;  %vm486_vm10 = vcmp.ge.s32.totalorder %v469_v11, %v889_v12 }
  0x7c   : > { %305 = vadd.xlane.f32.xlu1 %v304_v1  ;;  %269 = vadd.xlane.f32.xlu0 %v268_v2  ;;  %v389_v19 = vsel %vm954_vm6, %v233_v18, 0.0  ;;  %vm456_vm9 = vcmp.lt.s32.totalorder %v450_v53, 64  ;;  %v553_v14 = vadd.s32 32, %v469_v11  ;;  %vm1046_vm13 = vmand %vm954_vm6, %vm486_vm10  ;;  %v616_v18 = vadd.s32 56, %v469_v11 }
  0x7d   : > { %vm507_vm11 = vcmp.ge.s32.totalorder %v490_v6, %v889_v12  ;;  %vm528_vm12 = vcmp.ge.s32.totalorder %v511_v8, %v889_v12 }
  0x7e   : > { %vm1053_vm15 = vmand %vm954_vm6, %vm507_vm11  ;;  %vm570_vm2 = vcmp.ge.s32.totalorder %v553_v14, %v889_v12  ;;  %vm633_vm7 = vcmp.ge.s32.totalorder %v616_v18, %v889_v12 }
  0x7f   : > { %vm1062_vm0 = vmand %vm954_vm6, %vm528_vm12 }
  0x80   : > { %341 = vadd.xlane.f32.xlu1 %v340_v10  ;;  %323 = vadd.xlane.f32.xlu0 %v322_v13  ;;  %v532_v10 = vadd.s32 24, %v469_v11  ;;  %vm1100_vm8 = vmand %vm954_vm6, %vm570_vm2 }
  0x81   : > { %vm1124_vm11 = vmand %vm954_vm6, %vm633_vm7 }
  0x82   : > { %vm549_vm14 = vcmp.ge.s32.totalorder %v532_v10, %v889_v12 }
  0x83   : > { %vm1071_vm1 = vmand %vm954_vm6, %vm549_vm14 }
  0x84   : > { %379 = vadd.xlane.f32.xlu1 %v378_v16  ;;  %359 = vadd.xlane.f32.xlu0 %v358_v17  ;;  %v574_v16 = vadd.s32 40, %v469_v11  ;;  %v595_v17 = vadd.s32 48, %v469_v11  ;;  %v797_v11 = vld [vmem:[%s1038_s28 + $0x18] sm:$0xff] }
  0x86   : > { %vm591_vm4 = vcmp.ge.s32.totalorder %v574_v16, %v889_v12  ;;  %vm612_vm5 = vcmp.ge.s32.totalorder %v595_v17, %v889_v12 }
  0x87   : > { %vm1116_vm10 = vmand %vm954_vm6, %vm612_vm5 }
  0x88   : > { %390 = vadd.xlane.f32.xlu0 %v389_v19 }
 0x105   : > { %v288_v20 = vpop.xlane.xlu1 %287  ;;  %v253_v21 = vpop.xlane.xlu0 %252 }
 0x106   : > { %290 = vst [vmem:[#allocation4 + $0x10] sm:$0xff] %v288_v20  ;;  %254 = vst [vmem:[#allocation4] sm:$0xff] %v253_v21  ;;  %v476_v21 = vld [vmem:[%s1038_s28] sm:$0xff] }
 0x109   : > { %v306_v22 = vpop.xlane.xlu1 %305  ;;  %v270_v24 = vpop.xlane.xlu0 %269 }
 0x10a   : > { %308 = vst [vmem:[#allocation4 + $0x18] sm:$0xff] %v306_v22  ;;  %272 = vst [vmem:[#allocation4 + $0x8] sm:$0xff] %v270_v24  ;;  %v791_v22 = vld [vmem:[%s1038_s28 + $0x8] sm:$0xff]  ;;  %v794_v24 = vld [vmem:[%s1038_s28 + $0x10] sm:$0xff] }
 0x10d   : > { %v342_v25 = vpop.xlane.xlu1 %341  ;;  %v324_v26 = vpop.xlane.xlu0 %323 }
 0x10e   : > { %344 = vst [vmem:[#allocation4 + $0x28] sm:$0xff] %v342_v25  ;;  %326 = vst [vmem:[#allocation4 + $0x20] sm:$0xff] %v324_v26 }
 0x111   : > { %v380_v55 = vpop.xlane.xlu1 %379  ;;  %v360_v27 = vpop.xlane.xlu0 %359 }
 0x112   : > { %382 = vst [vmem:[#allocation4 + $0x38] sm:$0xff] %v380_v55  ;;  %362 = vst [vmem:[#allocation4 + $0x30] sm:$0xff] %v360_v27 }
 0x113   : > { %384 = vst [vmem:[%s383_s27] sm:$0x1] %v840_v28  ;;  %v800_v28 = vld [vmem:[%s1038_s28 + $0x20] sm:$0xff] }
 0x115   : > { %v1008_v30 = vpop.xlane.xlu0 %390 }
 0x116   : > { %v397_v31 = vsel %vm954_vm6, %v1008_v30, %v396_v29  ;;  %v803_v29 = vld [vmem:[%s1038_s28 + $0x28] sm:$0xff] }
 0x117   : > { %398 = vst [vmem:[#allocation2] sm:$0x1] %v397_v31  ;;  %v806_v31 = vld [vmem:[%s1038_s28 + $0x30] sm:$0xff] }
 0x11a   : > { %v405_v34 = vld [vmem:[%s1015_s29] sm:$0xff]  ;;  %v776_v37 = vld [vmem:[%s1015_s29 + $0x8] sm:$0xff]  ;;  %v778_v38 = vld [vmem:[%s1015_s29 + $0x10] sm:$0xff] }
 0x11b   : > { %v407_v36 = vmul.f32 %v406_v32, %v405_v34  ;;  %v413_v40 = vmul.f32 %v777_v33, %v776_v37  ;;  %v780_v41 = vld [vmem:[%s1015_s29 + $0x18] sm:$0xff]  ;;  %v420_v43 = vmul.f32 %v779_v39, %v778_v38  ;;  %v782_v44 = vld [vmem:[%s1015_s29 + $0x20] sm:$0xff]  ;;  %v784_v49 = vld [vmem:[%s1015_s29 + $0x28] sm:$0xff] }
 0x11c   : > { %v427_v48 = vmul.f32 %v781_v42, %v780_v41  ;;  %v434_v52 = vmul.f32 %v783_v46, %v782_v44  ;;  %v788_v54 = vld [vmem:[%s1015_s29 + $0x38] sm:$0xff]  ;;  %v786_v58 = vld [vmem:[%s1015_s29 + $0x30] sm:$0xff]  ;;  %v441_v61 = vmul.f32 %v785_v50, %v784_v49  ;;  %s1042_s29 = smov %s1015_s29 }
 0x11d   : > { %v414_v9 = vadd.f32 %v413_v40, %v407_v36  ;;  %v455_v62 = vmul.f32 %v789_v57, %v788_v54  ;;  %v448_v0 = vmul.f32 %v787_v59, %v786_v58  ;;  %v474_v26 = vld [vmem:[%s1042_s29] sm:$0xff]  ;;  %v790_v55 = vld [vmem:[%s1042_s29 + $0x8] sm:$0xff]  ;;  %v809_v32 = vld [vmem:[%s1038_s28 + $0x38] sm:$0xff] }
 0x11e   : > { %v793_v34 = vld [vmem:[%s1042_s29 + $0x10] sm:$0xff]  ;;  %v796_v36 = vld [vmem:[%s1042_s29 + $0x18] sm:$0xff]  ;;  %v799_v37 = vld [vmem:[%s1042_s29 + $0x20] sm:$0xff] }
 0x11f   : > { %v421_v47 = vadd.f32 %v420_v43, %v414_v9  ;;  %v457_v2 = vsel %vm456_vm9, %v455_v62, 0.0  ;;  %v802_v39 = vld [vmem:[%s1042_s29 + $0x28] sm:$0xff]  ;;  %v805_v40 = vld [vmem:[%s1042_s29 + $0x30] sm:$0xff]  ;;  %v808_v41 = vld [vmem:[%s1042_s29 + $0x38] sm:$0xff] }
 0x120   : > { %vm1108_vm9 = vmand %vm954_vm6, %vm591_vm4  ;;  %v648_v17 = vld [vmem:[#allocation2] sm:$0x1] (%p97_p0) }
 0x121   : > { %v428_v51 = vadd.f32 %v427_v48, %v421_v47  ;;  %650 = vst [vmem:[#allocation3] sm:$0x1] (%p97_p0), %v648_v17 }
 0x123   : > { %v435_v60 = vadd.f32 %v434_v52, %v428_v51 }
 0x125   : > { %v442_v63 = vadd.f32 %v441_v61, %v435_v60 }
 0x127   : > { %v449_v1 = vadd.f32 %v448_v0, %v442_v63 }
 0x128   :  { %v728_v25 = vld [vmem:[#allocation3] sm:$0x1] (%p97_p0) }
 0x129   : > { %v458_v3 = vadd.f32 %v457_v2, %v449_v1  ;;  %729 = vst [vmem:[%s1205_s2] sm:$0x1] (%p97_p0), %v728_v25 }
 0x12b   : > { %v459_v4 = vrot.slane %v458_v3, 4 }
 0x12d   : > { %v460_v5 = vadd.f32 %v459_v4, %v458_v3 }
 0x12f   : > { %v461_v7 = vrot.slane %v460_v5, 2 }
 0x131   : > { %v462_v13 = vadd.f32 %v461_v7, %v460_v5 }
 0x133   : > { %v463_v56 = vrot.slane %v462_v13, 1 }
 0x135   : > { %v464_v19 = vadd.f32 %v463_v56, %v462_v13 }
 0x137   : > { %v470_v33 = vmul.f32 %v464_v19, %v1008_v30 }
 0x139   : > { %v475_v42 = vmul.f32 %v474_v26, %v470_v33  ;;  %v495_v30 = vmul.f32 %v790_v55, %v470_v33  ;;  %v516_v9 = vmul.f32 %v793_v34, %v470_v33  ;;  %v537_v43 = vmul.f32 %v796_v36, %v470_v33 }
 0x13a   : > { %v558_v44 = vmul.f32 %v799_v37, %v470_v33  ;;  %v579_v46 = vmul.f32 %v802_v39, %v470_v33  ;;  %v600_v47 = vmul.f32 %v805_v40, %v470_v33  ;;  %v621_v48 = vmul.f32 %v808_v41, %v470_v33 }
 0x13b   : > { %v479_v50 = vsub.f32 %v476_v21, %v475_v42  ;;  %v500_v51 = vsub.f32 %v791_v22, %v495_v30  ;;  %v521_v52 = vsub.f32 %v794_v24, %v516_v9  ;;  %v542_v53 = vsub.f32 %v797_v11, %v537_v43 }
 0x13c   : > { %v563_v57 = vsub.f32 %v800_v28, %v558_v44  ;;  %v584_v58 = vsub.f32 %v803_v29, %v579_v46  ;;  %v605_v59 = vsub.f32 %v806_v31, %v600_v47  ;;  %v626_v60 = vsub.f32 %v809_v32, %v621_v48 }
 0x13d   : > { %v480_v62 = vsel %vm1086_vm3, %v479_v50, %v476_v21  ;;  %v501_v63 = vsel %vm1086_vm3, %v500_v51, %v791_v22  ;;  %v522_v0 = vsel %vm1086_vm3, %v521_v52, %v794_v24  ;;  %v543_v1 = vsel %vm1086_vm3, %v542_v53, %v797_v11 }
 0x13e   : > { %v488_v12 = vsel %vm1046_vm13, %v474_v26, %v480_v62  ;;  %v509_v2 = vsel %vm1053_vm15, %v790_v55, %v501_v63  ;;  %v530_v3 = vsel %vm1062_vm0, %v793_v34, %v522_v0  ;;  %v551_v4 = vsel %vm1071_vm1, %v796_v36, %v543_v1 }
 0x13f   : > { %489 = vst [vmem:[%s1038_s28] sm:$0xff] %v488_v12  ;;  %792 = vst [vmem:[%s1038_s28 + $0x8] sm:$0xff] %v509_v2  ;;  %v564_v5 = vsel %vm1086_vm3, %v563_v57, %v800_v28  ;;  %v585_v6 = vsel %vm1086_vm3, %v584_v58, %v803_v29  ;;  %v606_v7 = vsel %vm1086_vm3, %v605_v59, %v806_v31 }
 0x140   : > { %795 = vst [vmem:[%s1038_s28 + $0x10] sm:$0xff] %v530_v3  ;;  %798 = vst [vmem:[%s1038_s28 + $0x18] sm:$0xff] %v551_v4  ;;  %v627_v8 = vsel %vm1086_vm3, %v626_v60, %v809_v32  ;;  %v572_v10 = vsel %vm1100_vm8, %v799_v37, %v564_v5  ;;  %v593_v13 = vsel %vm1108_vm9, %v802_v39, %v585_v6 }
 0x141   : > { %v614_v56 = vsel %vm1116_vm10, %v805_v40, %v606_v7  ;;  %v635_v14 = vsel %vm1124_vm11, %v808_v41, %v627_v8  ;;  %801 = vst [vmem:[%s1038_s28 + $0x20] sm:$0xff] %v572_v10  ;;  %804 = vst [vmem:[%s1038_s28 + $0x28] sm:$0xff] %v593_v13 }
 0x142   : > { %807 = vst [vmem:[%s1038_s28 + $0x30] sm:$0xff] %v614_v56  ;;  %810 = vst [vmem:[%s1038_s28 + $0x38] sm:$0xff] %v635_v14 }
 0x145   :  { %99 = sbr.rel (!%p97_p0) target bundleno = 7 (0x7), region = 202 }
 0x149   : > { %v638_v15 = vld [vmem:[%s637_s30] ss:$0 sm:$0xff] }
 0x14a   : > { %v643_v16 = vsel %vm954_vm6, %v928_v23, %v638_v15 }
 0x14b   : > { %644 = vst [vmem:[%s637_s30] sm:$0x1] %v643_v16 }
 0x152   :  { %v692_v18 = vld [vmem:[#allocation1] sm:$0xff]  ;;  %v694_v19 = vld [vmem:[#allocation1 + $0x8] sm:$0xff]  ;;  %v696_v23 = vld [vmem:[#allocation1 + $0x10] sm:$0xff] }
 0x153   :  { %693 = vst [vmem:[%s1204_s1] sm:$0xff] %v692_v18  ;;  %695 = vst [vmem:[%s1204_s1 + $0x8] sm:$0xff] %v694_v19  ;;  %v698_v45 = vld [vmem:[#allocation1 + $0x18] sm:$0xff]  ;;  %v700_v20 = vld [vmem:[#allocation1 + $0x20] sm:$0xff] }
 0x154   :  { %697 = vst [vmem:[%s1204_s1 + $0x10] sm:$0xff] %v696_v23  ;;  %699 = vst [vmem:[%s1204_s1 + $0x18] sm:$0xff] %v698_v45  ;;  %v702_v21 = vld [vmem:[#allocation1 + $0x28] sm:$0xff]  ;;  %v704_v22 = vld [vmem:[#allocation1 + $0x30] sm:$0xff] }
 0x155   :  { %701 = vst [vmem:[%s1204_s1 + $0x20] sm:$0xff] %v700_v20  ;;  %v706_v24 = vld [vmem:[#allocation1 + $0x38] sm:$0xff]  ;;  %703 = vst [vmem:[%s1204_s1 + $0x28] sm:$0xff] %v702_v21 }
 0x156   :  { %705 = vst [vmem:[%s1204_s1 + $0x30] sm:$0xff] %v704_v22  ;;  %707 = vst [vmem:[%s1204_s1 + $0x38] sm:$0xff] %v706_v24 }

// kernel: custom-call.47
= control target key start
LH: loop header
LB: loop body
LE: loop exit
PB: predicated region body
PF: predicated region fallthrough
CT: control target
= control target key end

     0   :  { %s641_s0 = inlined_call_operand.vmem [shape: f32[16,16], index: 0, kind: input, shape index: {}]   ;;  %s642_s1 = inlined_call_operand.vmem [shape: f32[16,16], index: 1, kind: output, shape index: {}]  }
   0x1   :  { %s15_s8 = scalar_lea.vmem %s641_s0, 8 }
   0x2   :  { %p365_p0 = scmp.gt.s32.totalorder %s641_s0, %s15_s8 }
   0x3   :  { %s567_s11 = smov (!%p365_p0), [#allocation0]   ;;  %s571_s14 = smov (!%p365_p0), %s641_s0  }
   0x4   :  { %366 = sbr.rel (%p365_p0) target bundleno = 21 (0x15), region = 90 }
   0xb LB: > { %v49_v0 = vld [vmem:[%s573_s14] sm:$0xff]  ;;  %s51_s14 = scalar_lea.vmem %s573_s14, 8   ;;  %s573_s14 = sphi %s571_s14, %s51_s14   ;;  %s569_s11 = sphi %s567_s11, %s52_s11  }
   0xc   : > { %50 = vst [vmem:[%s569_s11] sm:$0xff] %v49_v0  ;;  %s52_s11 = scalar_lea.vmem %s569_s11, 8   ;;  %p46_p1 = scmp.gt.s32.totalorder %s51_s14, %s15_s8 }
   0xe   :  { %48 = sbr.rel (!%p46_p1) target bundleno = 11 (0xb), region = 96 }
  0x15 PF:  { %v64_v1 = vlaneseq  ;;  %v84_v2 = vld [vmem:[#allocation0 + $0x1] ss:$0 sm:$0xff]  ;;  %vm85_vm0 = vcmask 130048   ;;  %v95_v10 = vld [vmem:[#allocation0 + $0x2] ss:$0 sm:$0xff]  ;;  %v583_v41 = vmov 0.0   ;;  %s575_s16 = smov %s642_s1  }
  0x16   :  { %v70_v5 = vld [vmem:[#allocation0] sm:$0xff]  ;;  %v86_v6 = vsel %vm85_vm0, %v84_v2, 0.0  ;;  %v97_v11 = vsel %vm85_vm0, %v95_v10, 0.0  ;;  %v161_v37 = vld [vmem:[#allocation0 + $0x8] ss:$0 sm:$0xff]  ;;  %s579_s17 = smov [#allocation1]  }
  0x17   :  { %v603_v3 = vand.u32 127, %v64_v1  ;;  %v67_v4 = vshrl.u32 %v64_v1, 7  ;;  %v106_v15 = vld [vmem:[#allocation0 + $0x3] ss:$0 sm:$0xff]  ;;  %v117_v20 = vld [vmem:[#allocation0 + $0x4] ss:$0 sm:$0xff] }
  0x18   :  { %v108_v16 = vsel %vm85_vm0, %v106_v15, 0.0  ;;  %v119_v21 = vsel %vm85_vm0, %v117_v20, 0.0  ;;  %v128_v25 = vld [vmem:[#allocation0 + $0x5] ss:$0 sm:$0xff]  ;;  %v139_v30 = vld [vmem:[#allocation0 + $0x6] ss:$0 sm:$0xff] }
  0x19   :  { %vm69_vm1 = vcmp.eq.s32.totalorder %v603_v3, %v67_v4  ;;  %vm73_vm2 = vcmp.eq.s32.totalorder %v603_v3, 0  ;;  %vm89_vm3 = vcmp.eq.s32.totalorder %v603_v3, 1  ;;  %vm100_vm4 = vcmp.eq.s32.totalorder %v603_v3, 2  ;;  %v150_v36 = vld [vmem:[#allocation0 + $0x7] ss:$0 sm:$0xff] }
  0x1a   :  { %v74_v7 = vsel %vm73_vm2, %v70_v5, 1.0  ;;  %vm111_vm5 = vcmp.eq.s32.totalorder %v603_v3, 3  ;;  %vm122_vm6 = vcmp.eq.s32.totalorder %v603_v3, 4  ;;  %v130_v26 = vsel %vm85_vm0, %v128_v25, 0.0  ;;  %v176_v47 = vld [vmem:[#allocation0 + $0x9] ss:$0 sm:$0xff] }
  0x1b   :  { %v75_v8 = vsel %vm69_vm1, %v74_v7, 0.0  ;;  %vm133_vm7 = vcmp.eq.s32.totalorder %v603_v3, 5  ;;  %v141_v31 = vsel %vm85_vm0, %v139_v30, 0.0  ;;  %v80_v35 = vadd.s32 8, %v67_v4  ;;  %v191_v55 = vld [vmem:[#allocation0 + $0xa] ss:$0 sm:$0xff] }
  0x1c   :  { %v90_v9 = vmul.f32 %v86_v6, %v75_v8  ;;  %vm144_vm8 = vcmp.eq.s32.totalorder %v603_v3, 6  ;;  %v152_v38 = vsel %vm85_vm0, %v150_v36, 0.0  ;;  %v163_v43 = vsel %vm85_vm0, %v161_v37, 0.0  ;;  %v206_v63 = vld [vmem:[#allocation0 + $0xb] ss:$0 sm:$0xff] }
  0x1d   :  { %vm81_vm9 = vcmp.eq.s32.totalorder %v603_v3, %v80_v35  ;;  %vm155_vm10 = vcmp.eq.s32.totalorder %v603_v3, 7  ;;  %vm166_vm11 = vcmp.eq.s32.totalorder %v603_v3, 8  ;;  %v178_v50 = vsel %vm85_vm0, %v176_v47, 0.0 }
  0x1e   :  { %91 = vadd.xlane.f32.xlu0 %v90_v9  ;;  %v82_v42 = vsel %vm81_vm9, 1.0, %v583_v41  ;;  %vm181_vm12 = vcmp.eq.s32.totalorder %v603_v3, 9  ;;  %v193_v58 = vsel %vm85_vm0, %v191_v55, 0.0  ;;  %vm196_vm13 = vcmp.eq.s32.totalorder %v603_v3, 10 }
  0x1f   :  { %v171_v45 = vmul.f32 %v163_v43, %v82_v42  ;;  %v208_v2 = vsel %vm85_vm0, %v206_v63, 0.0  ;;  %vm211_vm14 = vcmp.eq.s32.totalorder %v603_v3, 11  ;;  %vm226_vm15 = vcmp.eq.s32.totalorder %v603_v3, 12 }
  0x20   :  { %vm241_vm1 = vcmp.eq.s32.totalorder %v603_v3, 13  ;;  %vm256_vm2 = vcmp.eq.s32.totalorder %v603_v3, 14 }
  0xab   :  { %v92_v12 = vpop.xlane.xlu0 %91 }
  0xac   :  { %v93_v13 = vsel %vm89_vm3, %v92_v12, %v75_v8  ;;  %v221_v8 = vld [vmem:[#allocation0 + $0xc] ss:$0 sm:$0xff]  ;;  %vm271_vm3 = vcmp.eq.s32.totalorder %v603_v3, 15 }
  0xad   :  { %v101_v14 = vmul.f32 %v97_v11, %v93_v13  ;;  %v223_v11 = vsel %vm85_vm0, %v221_v8, 0.0 }
  0xaf   :  { %102 = vadd.xlane.f32.xlu0 %v101_v14 }
 0x13c   :  { %v103_v17 = vpop.xlane.xlu0 %102 }
 0x13d   :  { %v104_v18 = vsel %vm100_vm4, %v103_v17, %v93_v13 }
 0x13e   :  { %v112_v19 = vmul.f32 %v108_v16, %v104_v18  ;;  %v236_v16 = vld [vmem:[#allocation0 + $0xd] ss:$0 sm:$0xff] }
 0x140   :  { %113 = vadd.xlane.f32.xlu1 %v112_v19  ;;  %v238_v19 = vsel %vm85_vm0, %v236_v16, 0.0 }
 0x1cd   :  { %v114_v22 = vpop.xlane.xlu1 %113 }
 0x1ce   :  { %v115_v23 = vsel %vm111_vm5, %v114_v22, %v104_v18 }
 0x1cf   :  { %v123_v24 = vmul.f32 %v119_v21, %v115_v23 }
 0x1d1   :  { %124 = vadd.xlane.f32.xlu1 %v123_v24  ;;  %v251_v24 = vld [vmem:[#allocation0 + $0xe] ss:$0 sm:$0xff] }
 0x25e   :  { %v125_v27 = vpop.xlane.xlu1 %124 }
 0x25f   :  { %v126_v28 = vsel %vm122_vm6, %v125_v27, %v115_v23  ;;  %v253_v27 = vsel %vm85_vm0, %v251_v24, 0.0 }
 0x260   :  { %v134_v29 = vmul.f32 %v130_v26, %v126_v28 }
 0x262   :  { %135 = vadd.xlane.f32.xlu0 %v134_v29 }
 0x2ef   :  { %v136_v32 = vpop.xlane.xlu0 %135 }
 0x2f0   :  { %v137_v33 = vsel %vm133_vm7, %v136_v32, %v126_v28  ;;  %v266_v32 = vld [vmem:[#allocation0 + $0xf] ss:$0 sm:$0xff] }
 0x2f1   :  { %v145_v34 = vmul.f32 %v141_v31, %v137_v33  ;;  %v268_v35 = vsel %vm85_vm0, %v266_v32, 0.0 }
 0x2f3   :  { %146 = vadd.xlane.f32.xlu1 %v145_v34 }
 0x380   :  { %v147_v39 = vpop.xlane.xlu1 %146 }
 0x381   :  { %v148_v40 = vsel %vm144_vm8, %v147_v39, %v137_v33 }
 0x382   :  { %v156_v44 = vmul.f32 %v152_v38, %v148_v40 }
 0x384   :  { %157 = vadd.xlane.f32.xlu0 %v156_v44 }
 0x388   :  { %172 = vadd.xlane.f32.xlu0 %v171_v45 }
 0x411   :  { %v158_v46 = vpop.xlane.xlu0 %157 }
 0x412   :  { %v159_v48 = vsel %vm155_vm10, %v158_v46, %v148_v40 }
 0x413   :  { %v167_v49 = vmul.f32 %v163_v43, %v159_v48 }
 0x415   :  { %168 = vadd.xlane.f32.xlu1 %v167_v49  ;;  %v173_v51 = vpop.xlane.xlu0 %172 }
 0x416   :  { %v174_v52 = vsel %vm166_vm11, %v173_v51, %v82_v42 }
 0x417   :  { %v186_v53 = vmul.f32 %v178_v50, %v174_v52 }
 0x419   :  { %187 = vadd.xlane.f32.xlu0 %v186_v53 }
 0x4a2   :  { %v169_v54 = vpop.xlane.xlu1 %168 }
 0x4a3   :  { %v170_v56 = vsel %vm166_vm11, %v169_v54, %v159_v48 }
 0x4a4   :  { %v182_v57 = vmul.f32 %v178_v50, %v170_v56 }
 0x4a6   :  { %183 = vadd.xlane.f32.xlu1 %v182_v57  ;;  %v188_v59 = vpop.xlane.xlu0 %187 }
 0x4a7   :  { %v189_v60 = vsel %vm181_vm12, %v188_v59, %v174_v52 }
 0x4a8   :  { %v201_v61 = vmul.f32 %v193_v58, %v189_v60 }
 0x4aa   :  { %202 = vadd.xlane.f32.xlu0 %v201_v61 }
 0x533   :  { %v184_v62 = vpop.xlane.xlu1 %183 }
 0x534   :  { %v185_v0 = vsel %vm181_vm12, %v184_v62, %v170_v56 }
 0x535   :  { %v197_v1 = vmul.f32 %v193_v58, %v185_v0 }
 0x537   :  { %198 = vadd.xlane.f32.xlu1 %v197_v1  ;;  %v203_v4 = vpop.xlane.xlu0 %202 }
 0x538   :  { %v204_v5 = vsel %vm196_vm13, %v203_v4, %v189_v60 }
 0x539   :  { %v216_v6 = vmul.f32 %v208_v2, %v204_v5 }
 0x53b   :  { %217 = vadd.xlane.f32.xlu0 %v216_v6 }
 0x5c4   :  { %v199_v7 = vpop.xlane.xlu1 %198 }
 0x5c5   :  { %v200_v9 = vsel %vm196_vm13, %v199_v7, %v185_v0 }
 0x5c6   :  { %v212_v10 = vmul.f32 %v208_v2, %v200_v9 }
 0x5c8   :  { %213 = vadd.xlane.f32.xlu1 %v212_v10  ;;  %v218_v12 = vpop.xlane.xlu0 %217 }
 0x5c9   :  { %v219_v13 = vsel %vm211_vm14, %v218_v12, %v204_v5 }
 0x5ca   :  { %v231_v14 = vmul.f32 %v223_v11, %v219_v13 }
 0x5cc   :  { %232 = vadd.xlane.f32.xlu0 %v231_v14 }
 0x655   :  { %v214_v15 = vpop.xlane.xlu1 %213 }
 0x656   :  { %v215_v17 = vsel %vm211_vm14, %v214_v15, %v200_v9 }
 0x657   :  { %v227_v18 = vmul.f32 %v223_v11, %v215_v17 }
 0x659   :  { %228 = vadd.xlane.f32.xlu1 %v227_v18  ;;  %v233_v20 = vpop.xlane.xlu0 %232 }
 0x65a   :  { %v234_v21 = vsel %vm226_vm15, %v233_v20, %v219_v13 }
 0x65b   :  { %v246_v22 = vmul.f32 %v238_v19, %v234_v21 }
 0x65d   :  { %247 = vadd.xlane.f32.xlu0 %v246_v22 }
 0x6e6   :  { %v229_v23 = vpop.xlane.xlu1 %228 }
 0x6e7   :  { %v230_v25 = vsel %vm226_vm15, %v229_v23, %v215_v17 }
 0x6e8   :  { %v242_v26 = vmul.f32 %v238_v19, %v230_v25 }
 0x6ea   :  { %243 = vadd.xlane.f32.xlu1 %v242_v26  ;;  %v248_v28 = vpop.xlane.xlu0 %247 }
 0x6eb   :  { %v249_v29 = vsel %vm241_vm1, %v248_v28, %v234_v21 }
 0x6ec   :  { %v261_v30 = vmul.f32 %v253_v27, %v249_v29 }
 0x6ee   :  { %262 = vadd.xlane.f32.xlu0 %v261_v30 }
 0x777   :  { %v244_v31 = vpop.xlane.xlu1 %243 }
 0x778   :  { %v245_v33 = vsel %vm241_vm1, %v244_v31, %v230_v25 }
 0x779   :  { %v257_v34 = vmul.f32 %v253_v27, %v245_v33 }
 0x77b   :  { %258 = vadd.xlane.f32.xlu1 %v257_v34  ;;  %v263_v36 = vpop.xlane.xlu0 %262 }
 0x77c   :  { %v264_v37 = vsel %vm256_vm2, %v263_v36, %v249_v29 }
 0x77d   :  { %v276_v38 = vmul.f32 %v268_v35, %v264_v37 }
 0x77f   :  { %277 = vadd.xlane.f32.xlu0 %v276_v38 }
 0x808   :  { %v259_v39 = vpop.xlane.xlu1 %258 }
 0x809   :  { %v260_v40 = vsel %vm256_vm2, %v259_v39, %v245_v33 }
 0x80a   :  { %v272_v41 = vmul.f32 %v268_v35, %v260_v40 }
 0x80c   :  { %273 = vadd.xlane.f32.xlu1 %v272_v41  ;;  %v278_v42 = vpop.xlane.xlu0 %277 }
 0x80d   :  { %v279_v43 = vsel %vm271_vm3, %v278_v42, %v264_v37 }
 0x80e   :  { %282 = vst [vmem:[#allocation1 + $0x8] sm:$0xff] %v279_v43 }
 0x899   :  { %v274_v44 = vpop.xlane.xlu1 %273 }
 0x89a   :  { %v275_v45 = vsel %vm271_vm3, %v274_v44, %v260_v40  }
 0x89b   :  { %280 = vst [vmem:[#allocation1] sm:$0xff] %v275_v45 }
 0x89c LB:  { %s581_s17 = sphi %s579_s17, %s332_s17   ;;  %s577_s16 = sphi %s575_s16, %s333_s16  }
 0x8a2   : > { %v330_v46 = vld [vmem:[%s581_s17] sm:$0xff]  ;;  %s332_s17 = scalar_lea.vmem %s581_s17, 8  }
 0x8a3   : > { %331 = vst [vmem:[%s577_s16] sm:$0xff] %v330_v46  ;;  %s333_s16 = scalar_lea.vmem %s577_s16, 8   ;;  %p327_p2 = scmp.gt.s32.totalorder %s332_s17, [#allocation1 + $0x8] }
 0x8a5   :  { %329 = sbr.rel (!%p327_p2) target bundleno = 2204 (0x89c), region = 118 }

// kernel: _svd_proj.7
= control target key start
LH: loop header
LB: loop body
LE: loop exit
PB: predicated region body
PF: predicated region fallthrough
CT: control target
= control target key end

     0   :  { %vm92_vm0 = vcmask 523264   ;;  %s328_s1 = inlined_call_operand.vmem [shape: bf16[64,128], index: 1, kind: input, shape index: {}]   ;;  %s329_s0 = inlined_call_operand.vmem [shape: bf16[64,64], index: 0, kind: input, shape index: {}]   ;;  %s330_s2 = inlined_call_operand.vmem [shape: f32[64,128], index: 2, kind: output, shape index: {}]  }
   0x1   :  { %v253_v0 = vld [vmem:[%s328_s1] sm:$0xff]   ;;  %v254_v1 = vld [vmem:[%s328_s1 + $0x8] sm:$0xff]   ;;  %v255_v2 = vld [vmem:[%s328_s1 + $0x10] sm:$0xff]  }
   0x2   :  { %229 = vmatprep.subr.bf16.mxu0 %v253_v0  ;;  %245 = vmatprep.subr.bf16.mxu1 %v253_v0  ;;  %v257_v3 = vld [vmem:[%s329_s0] sm:$0xff]   ;;  %v258_v4 = vld [vmem:[%s329_s0 + $0x10] sm:$0xff]   ;;  %v256_v5 = vld [vmem:[%s328_s1 + $0x18] sm:$0xff]  }
   0x3   :  { %230 = vmatpush3.bf16.msra.mxu0 %v253_v0  ;;  %249 = vmatpush3.bf16.msra.mxu1 %v253_v0  ;;  %v259_v6 = vld [vmem:[%s329_s0 + $0x8] sm:$0xff]   ;;  %v260_v7 = vld [vmem:[%s329_s0 + $0x18] sm:$0xff]  }
   0x4   :  { %231 = vmatprep.subr.bf16.mxu0 %v254_v1  ;;  %246 = vmatprep.subr.bf16.mxu1 %v254_v1 }
   0x5   :  { %237 = vmatprep.mubr.msk.bf16.mxu0 %vm92_vm0, %v257_v3  ;;  %241 = vmatprep.mubr.msk.bf16.mxu1 %vm92_vm0, %v258_v4 }
   0x7   :  { %232 = vmatpush3.bf16.msra.mxu0 %v254_v1  ;;  %250 = vmatpush3.bf16.msra.mxu1 %v254_v1 }
   0x8   :  { %233 = vmatprep.subr.bf16.mxu0 %v255_v2  ;;  %247 = vmatprep.subr.bf16.mxu1 %v255_v2 }
   0xb   :  { %234 = vmatpush3.bf16.msra.mxu0 %v255_v2  ;;  %251 = vmatpush3.bf16.msra.mxu1 %v255_v2 }
   0xc   :  { %235 = vmatprep.subr.bf16.mxu0 %v256_v5  ;;  %248 = vmatprep.subr.bf16.mxu1 %v256_v5 }
   0xf   :  { %236 = vmatpush3.bf16.msra.mxu0 %v256_v5  ;;  %252 = vmatpush3.bf16.msra.mxu1 %v256_v5 }
  0x12   :  { %238 = vmatmul.mubr.msk.bf16.vlgmr.msra.gmra.mrb[0].mxu0 %vm92_vm0, %v259_v6  ;;  %242 = vmatmul.mubr.msk.bf16.vlgmr.msra.gmra.mrb[0].mxu1 %vm92_vm0, %v260_v7 }
  0xe5   :  { %v239_v8 = vpop.f32.mrb[0].mxu0  ;;  %v243_v9 = vpop.f32.mrb[0].mxu1 }
  0xe6   :  { %199 = vst [vmem:[%s330_s2 + $0x10] sm:$0xff] %v239_v8  ;;  %203 = vst [vmem:[%s330_s2 + $0x30] sm:$0xff] %v243_v9  ;;  %v139_v10 = vpop.f32.mrb[1].mxu0  ;;  %v155_v11 = vpop.f32.mrb[1].mxu1 }
  0xe7   :  { %197 = vst [vmem:[%s330_s2] sm:$0xff] %v139_v10  ;;  %201 = vst [vmem:[%s330_s2 + $0x20] sm:$0xff] %v155_v11  ;;  %v240_v12 = vpop.f32.mrb[2].mxu0  ;;  %v244_v13 = vpop.f32.mrb[2].mxu1 }
  0xe8   :  { %200 = vst [vmem:[%s330_s2 + $0x18] sm:$0xff] %v240_v12  ;;  %204 = vst [vmem:[%s330_s2 + $0x38] sm:$0xff] %v244_v13  ;;  %v142_v14 = vpop.f32.mrb[3].mxu0  ;;  %v158_v15 = vpop.f32.mrb[3].mxu1 }
  0xe9   :  { %198 = vst [vmem:[%s330_s2 + $0x8] sm:$0xff] %v142_v14  ;;  %202 = vst [vmem:[%s330_s2 + $0x28] sm:$0xff] %v158_v15 }

// kernel: custom-call.72
= control target key start
LH: loop header
LB: loop body
LE: loop exit
PB: predicated region body
PF: predicated region fallthrough
CT: control target
= control target key end

     0   :  { %v543_v4 = vmov 0.0   ;;  %s572_s17 = smov 0   ;;  %s731_s0 = inlined_call_operand.vmem [shape: f32[32,16], index: 0, kind: input, shape index: {}]   ;;  %s732_s1 = inlined_call_operand.vmem [shape: f32[32,16], index: 1, kind: output, shape index: {0}]   ;;  %s733_s2 = inlined_call_operand.vmem [shape: f32[16], index: 2, kind: output, shape index: {1}]  }
   0x1   :  { %v37_v0 = vld [vmem:[%s731_s0] sm:$0xff]  ;;  %v39_v1 = vld [vmem:[%s731_s0 + $0x8] sm:$0xff]  ;;  %v41_v2 = vld [vmem:[%s731_s0 + $0x10] sm:$0xff]  ;;  %62 = vst [vmem:[#allocation2] sm:$0x1] %v543_v4 }
   0x2   :  { %v43_v3 = vld [vmem:[%s731_s0 + $0x18] sm:$0xff]  ;;  %49 = vst [vmem:[#allocation1] sm:$0xff] %v37_v0  ;;  %53 = vst [vmem:[#allocation1 + $0x8] sm:$0xff] %v39_v1 }
   0x3   :  { %57 = vst [vmem:[#allocation1 + $0x10] sm:$0xff] %v41_v2  ;;  %61 = vst [vmem:[#allocation1 + $0x18] sm:$0xff] %v43_v3 }
   0x4 LB: > { %v70_v5 = vlaneseq  ;;  %v581_v8 = vstv %s541_s17  ;;  %s127_s0 = scalar_lea.vmem [#allocation1], %s541_s17  ;;  %s163_s18 = smov [#allocation1]  ;;  %s541_s17 = sphi %s572_s17, %s68_s17  }
   0x5   : > { %s239_s19 = scalar_lea.vmem [#allocation4], %s541_s17  ;;  %s649_s20 = smov [#allocation1] }
   0x6   : > { %v578_v7 = vshrl.u32 %v70_v5, 7  ;;  %s256_s21 = smov [#allocation4] }
   0x8   : > { %vm74_vm0 = vcmp.gt.s32.totalorder %v578_v7, %v581_v8  ;;  %v81_v10 = vadd.s32 8, %v578_v7  ;;  %v91_v12 = vadd.s32 16, %v578_v7  ;;  %v101_v14 = vadd.s32 24, %v578_v7 }
   0x9   : > { %v69_v6 = vld [vmem:[#allocation1] sm:$0xff]  ;;  %v78_v9 = vld [vmem:[#allocation1 + $0x8] sm:$0xff]  ;;  %v166_v7 = vmov %v578_v7 }
   0xa   : > { %v88_v11 = vld [vmem:[#allocation1 + $0x10] sm:$0xff]  ;;  %v98_v13 = vld [vmem:[#allocation1 + $0x18] sm:$0xff]  ;;  %v75_v15 = vsel %vm74_vm0, %v69_v6, 0.0  ;;  %vm83_vm1 = vcmp.gt.s32.totalorder %v81_v10, %v581_v8  ;;  %vm93_vm2 = vcmp.gt.s32.totalorder %v91_v12, %v581_v8  ;;  %vm103_vm3 = vcmp.gt.s32.totalorder %v101_v14, %v581_v8  ;;  %v595_v32 = vld [vmem:[%s127_s0] ss:$0 sm:$0xff] }
   0xb   : > { %v76_v16 = vmul.f32 %v75_v15, %v75_v15  ;;  %v84_v17 = vsel %vm83_vm1, %v78_v9, 0.0  ;;  %v94_v18 = vsel %vm93_vm2, %v88_v11, 0.0  ;;  %v106_v19 = vsel %vm103_vm3, %v98_v13, 0.0  ;;  %v498_v1 = vld [vmem:[%s163_s18 + $0x10] sm:$0xff]  ;;  %v167_v2 = vld [vmem:[%s163_s18] sm:$0xff]  ;;  %v499_v3 = vld [vmem:[%s163_s18 + $0x18] sm:$0xff] }
   0xc   : > { %v85_v20 = vmul.f32 %v84_v17, %v84_v17  ;;  %v95_v21 = vmul.f32 %v94_v18, %v94_v18  ;;  %v107_v23 = vmul.f32 %v106_v19, %v106_v19  ;;  %v129_v33 = vand.u32 2147483647, %v595_v32  ;;  %v497_v4 = vld [vmem:[%s163_s18 + $0x8] sm:$0xff] }
   0xd   : > { %vm154_vm9 = vcmp.lt.f32.partialorder %v595_v32, 0.0  ;;  %v221_v62 = vadd.s32 24, %v166_v7  ;;  %v203_v63 = vadd.s32 16, %v166_v7  ;;  %v185_v0 = vadd.s32 8, %v166_v7 }
   0xe   : > { %v86_v22 = vadd.f32 %v85_v20, %v76_v16  ;;  %v130_v38 = vmax.f32 %v129_v33, 0.0  ;;  %vm170_vm12 = vcmp.gt.s32.totalorder %v166_v7, %v581_v8  ;;  %v619_v6 = vand.u32 127, %v70_v5 }
   0xf   : > { %vm223_vm10 = vcmp.gt.s32.totalorder %v221_v62, %v581_v8  ;;  %vm224_vm11 = vcmp.lt.s32.totalorder %v221_v62, 32  ;;  %vm205_vm13 = vcmp.gt.s32.totalorder %v203_v63, %v581_v8  ;;  %vm187_vm15 = vcmp.gt.s32.totalorder %v185_v0, %v581_v8 }
  0x10   : > { %v96_v24 = vadd.f32 %v95_v21, %v86_v22  ;;  %vm225_vm14 = vmand %vm223_vm10, %vm224_vm11  ;;  %v171_v9 = vsel %vm170_vm12, %v167_v2, 0.0  ;;  %v206_v10 = vsel %vm205_vm13, %v498_v1, 0.0  ;;  %v188_v12 = vsel %vm187_vm15, %v497_v4, 0.0 }
  0x11   : > { %v226_v11 = vsel %vm225_vm14, %v499_v3, 0.0  ;;  %vm624_vm0 = vcmp.eq.s32.totalorder %v619_v6, %v581_v8  ;;  %v259_v7 = vmov %v578_v7 }
  0x12   : > { %v108_v25 = vadd.f32 %v107_v23, %v96_v24 }
  0x14   : > { %v109_v26 = vrot.slane %v108_v25, 4 }
  0x16   : > { %v110_v27 = vadd.f32 %v109_v26, %v108_v25 }
  0x18   : > { %v111_v28 = vrot.slane %v110_v27, 2 }
  0x1a   : > { %v112_v29 = vadd.f32 %v111_v28, %v110_v27 }
  0x1c   : > { %v113_v30 = vrot.slane %v112_v29, 1 }
  0x1e   : > { %v591_v31 = vadd.f32 %v113_v30, %v112_v29 }
  0x20   : > { %525 = vrsqrt.f32 %v591_v31  ;;  %vm117_vm4 = vcmp.eq.f32.partialorder %v591_v31, inf  ;;  %v120_v35 = vand.u32 2147483648, %v591_v31  ;;  %vm119_vm5 = vcmp.eq.f32.partialorder %v591_v31, 0.0 }
  0x2a   : > { %v526_v34 = vpop.eup %525 }
  0x2b   : > { %v116_v36 = vmul.f32 %v526_v34, %v591_v31 }
  0x2d   : > { %v118_v37 = vsel %vm117_vm4, %v591_v31, %v116_v36  ;;  %v544_v36 = vmov 1.0  }
  0x2e   : > { %v121_v39 = vsel %vm119_vm5, %v120_v35, %v118_v37  ;;  %v252_v37 = vld [vmem:[#allocation2] ss:$0 sm:$0xff] }
  0x2f   : > { %v131_v40 = vand.u32 2147483647, %v121_v39  ;;  %v262_v39 = vld [vmem:[%s649_s20] sm:$0xff] }
  0x31   : > { %v132_v41 = vmax.f32 %v130_v38, %v131_v40 }
  0x33   : > { %527 = vrcp.f32 %v132_v41  ;;  %vm144_vm8 = vcmp.eq.f32.partialorder %v132_v41, 0.0 }
  0x3d   : > { %v528_v42 = vpop.eup %527 }
  0x3e   : > { %v134_v43 = vmul.f32 %v528_v42, %v129_v33  ;;  %v137_v44 = vmul.f32 0.0, %v528_v42  ;;  %v141_v45 = vmul.f32 %v528_v42, %v131_v40  ;;  %v501_v40 = vld [vmem:[%s649_s20 + $0x8] sm:$0xff]  ;;  %v278_v42 = vadd.s32 24, %v259_v7 }
  0x3f   : > { %v297_v7 = vmov %v578_v7 }
  0x40   : > { %v135_v46 = vmul.f32 %v134_v43, %v134_v43  ;;  %v138_v47 = vmul.f32 %v137_v44, %v137_v44  ;;  %v142_v48 = vmul.f32 %v141_v45, %v141_v45  ;;  %v505_v43 = vld [vmem:[%s649_s20 + $0x18] sm:$0xff]  ;;  %vm284_vm1 = vcmp.lt.s32.totalorder %v278_v42, 32 }
  0x41   : > { %v339_v63 = vadd.s32 16, %v297_v7  ;;  %vm314_vm2 = vcmp.ge.s32.totalorder %v297_v7, %v581_v8  ;;  %v360_v0 = vadd.s32 24, %v297_v7 }
  0x42   : > { %v139_v49 = vadd.f32 %v138_v47, %v135_v46  ;;  %vm669_vm4 = vmand %vm624_vm0, %vm314_vm2 }
  0x44   : > { %v143_v50 = vadd.f32 %v142_v48, %v139_v49 }
  0x46   : > { %529 = vrsqrt.f32 %v143_v50  ;;  %vm147_vm6 = vcmp.eq.f32.partialorder %v143_v50, inf  ;;  %v150_v52 = vand.u32 2147483648, %v143_v50  ;;  %vm149_vm7 = vcmp.eq.f32.partialorder %v143_v50, 0.0 }
  0x50   : > { %v530_v51 = vpop.eup %529 }
  0x51   : > { %v146_v53 = vmul.f32 %v530_v51, %v143_v50 }
  0x53   : > { %v148_v54 = vsel %vm147_vm6, %v143_v50, %v146_v53  ;;  %vm377_vm6 = vcmp.ge.s32.totalorder %v360_v0, %v581_v8 }
  0x54   : > { %v151_v55 = vsel %vm149_vm7, %v150_v52, %v148_v54  ;;  %vm692_vm10 = vmand %vm624_vm0, %vm377_vm6 }
  0x55   : > { %v152_v56 = vmul.f32 %v151_v55, %v132_v41  ;;  %v503_v41 = vld [vmem:[%s649_s20 + $0x10] sm:$0xff]  ;;  %s660_s20 = smov %s649_s20 }
  0x56   : > { %v304_v2 = vld [vmem:[%s660_s20] sm:$0xff]  ;;  %v507_v3 = vld [vmem:[%s660_s20 + $0x8] sm:$0xff]  ;;  %v510_v4 = vld [vmem:[%s660_s20 + $0x10] sm:$0xff]  ;;  %s381_s22 = scalar_lea.vmem %s660_s20, %s541_s17  ;;  %s68_s17 = sadd.s32 1, %s541_s17  }
  0x57   : > { %v153_v57 = vsel %vm144_vm8, 0.0, %v152_v56  ;;  %vm306_vm8 = vcmp.gt.s32.totalorder %v619_v6, %v581_v8  ;;  %p65_p0 = scmp.ge.s32.totalorder %s68_s17, 16  }
  0x58   : > { %v155_v58 = vxor.u32 2147483648, %v153_v57 }
  0x5a   : > { %v156_v59 = vsel %vm154_vm9, %v153_v57, %v155_v58 }
  0x5b   : > { %v609_v60 = vsel %vm119_vm5, %v595_v32, %v156_v59  ;;  %531 = vrcp.f32 %v156_v59  ;;  %v157_v13 = vsub.f32 %v156_v59, %v595_v32 }
  0x5c   : > { %v162_v61 = vsub.f32 %v595_v32, %v609_v60 }
  0x5e   : > { %533 = vrcp.f32 %v162_v61  ;;  %v318_v61 = vadd.s32 8, %v297_v7 }
  0x60   : > { %vm335_vm3 = vcmp.ge.s32.totalorder %v318_v61, %v581_v8 }
  0x61   : > { %vm678_vm7 = vmand %vm624_vm0, %vm335_vm3 }
  0x65   : > { %v532_v14 = vpop.eup %531 }
  0x66   : > { %v159_v5 = vmul.f32 %v532_v14, %v157_v13 }
  0x68   : > { %v534_v15 = vpop.eup %533  ;;  %v161_v29 = vsel %vm119_vm5, 0.0, %v159_v5 }
  0x69   : > { %v208_v17 = vmul.f32 %v534_v15, %v206_v10  ;;  %v173_v18 = vmul.f32 %v534_v15, %v171_v9  ;;  %v228_v19 = vmul.f32 %v534_v15, %v226_v11  ;;  %v190_v20 = vmul.f32 %v534_v15, %v188_v12  ;;  %v513_v11 = vld [vmem:[%s660_s20 + $0x18] sm:$0xff] }
  0x6a   : > { %v245_v30 = vsel %vm624_vm0, %v161_v29, 0.0 }
  0x6b   : > { %v209_v21 = vsel %vm119_vm5, 0.0, %v208_v17  ;;  %v174_v22 = vsel %vm119_vm5, 0.0, %v173_v18  ;;  %v229_v23 = vsel %vm119_vm5, 0.0, %v228_v19  ;;  %v191_v24 = vsel %vm119_vm5, 0.0, %v190_v20 }
  0x6c   : > { %v214_v25 = vsel %vm624_vm0, %v209_v21, 0.0  ;;  %v179_v26 = vsel %vm624_vm0, %v174_v22, 0.0  ;;  %v234_v27 = vsel %vm624_vm0, %v229_v23, 0.0  ;;  %v196_v28 = vsel %vm624_vm0, %v191_v24, 0.0 }
  0x6d   : > { %215 = vadd.xlane.f32.xlu1 %v214_v25  ;;  %180 = vadd.xlane.f32.xlu0 %v179_v26  ;;  %vm356_vm5 = vcmp.ge.s32.totalorder %v339_v63, %v581_v8 }
  0x6e   : > { %vm686_vm9 = vmand %vm624_vm0, %vm356_vm5 }
  0x71   : > { %235 = vadd.xlane.f32.xlu1 %v234_v27  ;;  %197 = vadd.xlane.f32.xlu0 %v196_v28 }
  0x75   : > { %246 = vadd.xlane.f32.xlu0 %v245_v30 }
  0xfa   : > { %v216_v32 = vpop.xlane.xlu1 %215  ;;  %v181_v33 = vpop.xlane.xlu0 %180 }
  0xfb   : > { %218 = vst [vmem:[#allocation4 + $0x10] sm:$0xff] %v216_v32  ;;  %182 = vst [vmem:[#allocation4] sm:$0xff] %v181_v33 }
  0xfe   : > { %v236_v34 = vpop.xlane.xlu1 %235  ;;  %v198_v35 = vpop.xlane.xlu0 %197 }
  0xff   : > { %238 = vst [vmem:[#allocation4 + $0x18] sm:$0xff] %v236_v34  ;;  %200 = vst [vmem:[#allocation4 + $0x8] sm:$0xff] %v198_v35 }
 0x100   : > { %240 = vst [vmem:[%s239_s19] sm:$0x1] %v544_v36 }
 0x102   : > { %v247_v31 = vpop.xlane.xlu0 %246 }
 0x103   : > { %v253_v38 = vsel %vm624_vm0, %v247_v31, %v252_v37 }
 0x104   : > { %254 = vst [vmem:[#allocation2] sm:$0x1] %v253_v38 }
 0x107   : > { %v261_v44 = vld [vmem:[%s256_s21] sm:$0xff]  ;;  %v500_v45 = vld [vmem:[%s256_s21 + $0x8] sm:$0xff]  ;;  %v502_v46 = vld [vmem:[%s256_s21 + $0x10] sm:$0xff] }
 0x108   : > { %v263_v47 = vmul.f32 %v262_v39, %v261_v44  ;;  %v269_v48 = vmul.f32 %v501_v40, %v500_v45  ;;  %v504_v49 = vld [vmem:[%s256_s21 + $0x18] sm:$0xff]  ;;  %v276_v52 = vmul.f32 %v503_v41, %v502_v46  ;;  %s294_s21 = smov %s256_s21 }
 0x109   : > { %v283_v50 = vmul.f32 %v505_v43, %v504_v49  ;;  %v302_v9 = vld [vmem:[%s294_s21] sm:$0xff]  ;;  %v506_v13 = vld [vmem:[%s294_s21 + $0x8] sm:$0xff]  ;;  %v509_v14 = vld [vmem:[%s294_s21 + $0x10] sm:$0xff] }
 0x10a   : > { %v270_v51 = vadd.f32 %v269_v48, %v263_v47  ;;  %v512_v7 = vld [vmem:[%s294_s21 + $0x18] sm:$0xff] }
 0x10b   : > { %v285_v54 = vsel %vm284_vm1, %v283_v50, 0.0  ;;  %v392_v35 = vld [vmem:[#allocation2] sm:$0x1] (%p65_p0) }
 0x10c   : > { %v277_v53 = vadd.f32 %v276_v52, %v270_v51  ;;  %394 = vst [vmem:[#allocation3] sm:$0x1] (%p65_p0), %v392_v35 }
 0x10e   : > { %v286_v55 = vadd.f32 %v285_v54, %v277_v53 }
 0x110   : > { %v287_v56 = vrot.slane %v286_v55, 4 }
 0x112   : > { %v288_v57 = vadd.f32 %v287_v56, %v286_v55 }
 0x114   : > { %v289_v58 = vrot.slane %v288_v57, 2 }
 0x116   : > { %v290_v59 = vadd.f32 %v289_v58, %v288_v57 }
 0x118   : > { %v291_v62 = vrot.slane %v290_v59, 1 }
 0x11a   : > { %v292_v1 = vadd.f32 %v291_v62, %v290_v59 }
 0x11c   : > { %v298_v12 = vmul.f32 %v292_v1, %v247_v31  ;;  %v456_v31 = vld [vmem:[#allocation3] sm:$0x1] (%p65_p0) }
 0x11d   :  { %457 = vst [vmem:[%s733_s2] sm:$0x1] (%p65_p0), %v456_v31 }
 0x11e   : > { %v303_v17 = vmul.f32 %v302_v9, %v298_v12  ;;  %v323_v18 = vmul.f32 %v506_v13, %v298_v12  ;;  %v344_v19 = vmul.f32 %v509_v14, %v298_v12  ;;  %v365_v20 = vmul.f32 %v512_v7, %v298_v12 }
 0x120   : > { %v307_v22 = vsub.f32 %v304_v2, %v303_v17  ;;  %v328_v23 = vsub.f32 %v507_v3, %v323_v18  ;;  %v349_v8 = vsub.f32 %v510_v4, %v344_v19  ;;  %v370_v6 = vsub.f32 %v513_v11, %v365_v20 }
 0x122   : > { %v308_v24 = vsel %vm306_vm8, %v307_v22, %v304_v2  ;;  %v329_v25 = vsel %vm306_vm8, %v328_v23, %v507_v3  ;;  %v350_v26 = vsel %vm306_vm8, %v349_v8, %v510_v4  ;;  %v371_v27 = vsel %vm306_vm8, %v370_v6, %v513_v11 }
 0x123   : > { %v316_v28 = vsel %vm669_vm4, %v302_v9, %v308_v24  ;;  %v337_v29 = vsel %vm678_vm7, %v506_v13, %v329_v25  ;;  %v358_v30 = vsel %vm686_vm9, %v509_v14, %v350_v26  ;;  %v379_v32 = vsel %vm692_vm10, %v512_v7, %v371_v27 }
 0x124   : > { %317 = vst [vmem:[%s660_s20] sm:$0xff] %v316_v28  ;;  %508 = vst [vmem:[%s660_s20 + $0x8] sm:$0xff] %v337_v29 }
 0x125   : > { %511 = vst [vmem:[%s660_s20 + $0x10] sm:$0xff] %v358_v30  ;;  %514 = vst [vmem:[%s660_s20 + $0x18] sm:$0xff] %v379_v32 }
 0x128   :  { %67 = sbr.rel (!%p65_p0) target bundleno = 4 (0x4), region = 166 }
 0x12c   : > { %v382_v33 = vld [vmem:[%s381_s22] ss:$0 sm:$0xff] }
 0x12d   : > { %v387_v34 = vsel %vm624_vm0, %v609_v60, %v382_v33 }
 0x12e   : > { %388 = vst [vmem:[%s381_s22] sm:$0x1] %v387_v34 }
 0x135   :  { %v428_v36 = vld [vmem:[#allocation1] sm:$0xff]  ;;  %v430_v37 = vld [vmem:[#allocation1 + $0x8] sm:$0xff]  ;;  %v432_v60 = vld [vmem:[#allocation1 + $0x10] sm:$0xff] }
 0x136   :  { %429 = vst [vmem:[%s732_s1] sm:$0xff] %v428_v36  ;;  %431 = vst [vmem:[%s732_s1 + $0x8] sm:$0xff] %v430_v37  ;;  %v434_v16 = vld [vmem:[#allocation1 + $0x18] sm:$0xff] }
 0x137   :  { %433 = vst [vmem:[%s732_s1 + $0x10] sm:$0xff] %v432_v60  ;;  %435 = vst [vmem:[%s732_s1 + $0x18] sm:$0xff] %v434_v16 }

// kernel: _svd_proj.8
= control target key start
LH: loop header
LB: loop body
LE: loop exit
PB: predicated region body
PF: predicated region fallthrough
CT: control target
= control target key end

     0   :  { %vm112_vm0 = vcmask 523264   ;;  %s345_s0 = inlined_call_operand.vmem [shape: bf16[64,64], index: 0, kind: input, shape index: {}]   ;;  %s346_s1 = inlined_call_operand.vmem [shape: bf16[64,128], index: 1, kind: input, shape index: {}]   ;;  %s347_s2 = inlined_call_operand.vmem [shape: f32[64,128], index: 2, kind: output, shape index: {}]  }
   0x1   :  { %v274_v0 = vld [vmem:[%s345_s0] sm:$0xff]   ;;  %v275_v1 = vld [vmem:[%s345_s0 + $0x8] sm:$0xff]   ;;  %v276_v4 = vld [vmem:[%s345_s0 + $0x10] sm:$0xff]  }
   0x2   :  { %72 = vxpose.xlu0.c.b16.start [1/4] (short) (narrow) %v274_v0, 64  ;;  %v278_v2 = vld [vmem:[%s346_s1] sm:$0xff]   ;;  %v279_v3 = vld [vmem:[%s346_s1 + $0x8] sm:$0xff]   ;;  %v280_v5 = vld [vmem:[%s346_s1 + $0x10] sm:$0xff]  }
   0x3   :  { %249 = vmatprep.subr.bf16.mxu0 %v278_v2  ;;  %265 = vmatprep.subr.bf16.mxu1 %v278_v2  ;;  %v277_v6 = vld [vmem:[%s345_s0 + $0x18] sm:$0xff]  }
   0x4   :  { %250 = vmatpush3.bf16.msra.mxu0 %v278_v2  ;;  %269 = vmatpush3.bf16.msra.mxu1 %v278_v2  ;;  %v281_v7 = vld [vmem:[%s346_s1 + $0x18] sm:$0xff]  }
   0x5   :  { %251 = vmatprep.subr.bf16.mxu0 %v279_v3  ;;  %266 = vmatprep.subr.bf16.mxu1 %v279_v3 }
   0x6   :  { %73 = vxpose.xlu0.c.b16.cont [2/4] (short) (narrow) %v275_v1, 64 }
   0x8   :  { %252 = vmatpush3.bf16.msra.mxu0 %v279_v3  ;;  %270 = vmatpush3.bf16.msra.mxu1 %v279_v3 }
   0x9   :  { %253 = vmatprep.subr.bf16.mxu0 %v280_v5  ;;  %267 = vmatprep.subr.bf16.mxu1 %v280_v5 }
   0xa   :  { %74 = vxpose.xlu0.c.b16.cont [3/4] (short) (narrow) %v276_v4, 64 }
   0xc   :  { %254 = vmatpush3.bf16.msra.mxu0 %v280_v5  ;;  %271 = vmatpush3.bf16.msra.mxu1 %v280_v5 }
   0xd   :  { %255 = vmatprep.subr.bf16.mxu0 %v281_v7  ;;  %268 = vmatprep.subr.bf16.mxu1 %v281_v7 }
   0xe   :  { %75 = vxpose.xlu0.c.b16.end [4/4] (short) (narrow) %v277_v6, 64 }
  0x10   :  { %256 = vmatpush3.bf16.msra.mxu0 %v281_v7  ;;  %272 = vmatpush3.bf16.msra.mxu1 %v281_v7 }
  0x68   :  { %v80_v8 = vpop.trf.xlu0 }
  0x69   :  { %257 = vmatprep.mubr.msk.bf16.mxu0 %vm112_vm0, %v80_v8 }
  0x6c   :  { %v81_v9 = vpop.trf.xlu0 }
  0x6d   :  { %258 = vmatmul.mubr.msk.bf16.vlgmr.msra.gmra.mrb[0].mxu0 %vm112_vm0, %v81_v9 }
  0x70   :  { %v82_v10 = vpop.trf.xlu0 }
  0x71   :  { %261 = vmatprep.mubr.msk.bf16.mxu1 %vm112_vm0, %v82_v10 }
  0x74   :  { %v83_v11 = vpop.trf.xlu0 }
  0x75   :  { %262 = vmatmul.mubr.msk.bf16.vlgmr.msra.gmra.mrb[0].mxu1 %vm112_vm0, %v83_v11 }
 0x140   :  { %v259_v12 = vpop.f32.mrb[0].mxu0 }
 0x141   :  { %219 = vst [vmem:[%s347_s2 + $0x10] sm:$0xff] %v259_v12  ;;  %v159_v13 = vpop.f32.mrb[1].mxu0 }
 0x142   :  { %217 = vst [vmem:[%s347_s2] sm:$0xff] %v159_v13  ;;  %v260_v14 = vpop.f32.mrb[2].mxu0 }
 0x143   :  { %220 = vst [vmem:[%s347_s2 + $0x18] sm:$0xff] %v260_v14  ;;  %v162_v15 = vpop.f32.mrb[3].mxu0 }
 0x144   :  { %218 = vst [vmem:[%s347_s2 + $0x8] sm:$0xff] %v162_v15 }
 0x148   :  { %v263_v16 = vpop.f32.mrb[0].mxu1 }
 0x149   :  { %223 = vst [vmem:[%s347_s2 + $0x30] sm:$0xff] %v263_v16  ;;  %v175_v17 = vpop.f32.mrb[1].mxu1 }
 0x14a   :  { %221 = vst [vmem:[%s347_s2 + $0x20] sm:$0xff] %v175_v17  ;;  %v264_v18 = vpop.f32.mrb[2].mxu1 }
 0x14b   :  { %224 = vst [vmem:[%s347_s2 + $0x38] sm:$0xff] %v264_v18  ;;  %v178_v19 = vpop.f32.mrb[3].mxu1 }
 0x14c   :  { %222 = vst [vmem:[%s347_s2 + $0x28] sm:$0xff] %v178_v19 }

// kernel: custom-call.70
= control target key start
LH: loop header
LB: loop body
LE: loop exit
PB: predicated region body
PF: predicated region fallthrough
CT: control target
= control target key end

     0   :  { %v592_v0 = vmov 0.0   ;;  %vm41_vm0 = vcmask 7168   ;;  %vm72_vm1 = vcmask 15368   ;;  %vm89_vm2 = vcmask 1047553   ;;  %s676_s0 = inlined_call_operand.vmem [shape: f32[16,16], index: 0, kind: input, shape index: {}]   ;;  %s677_s1 = inlined_call_operand.vmem [shape: f32[16,16], index: 1, kind: output, shape index: {}]  }
   0x1   :  { %38 = vst [vmem:[#allocation1] sm:$0xff] %v592_v0  ;;  %v606_v4 = vld [vmem:[%s676_s0] sm:$0xff]  ;;  %v612_v5 = vld [vmem:[%s676_s0 + $0x8] sm:$0xff]  ;;  %vm90_vm3 = vmand %vm72_vm1, %vm89_vm2  ;;  %vm107_vm4 = vcmask 23568   ;;  %vm124_vm5 = vcmask 1047554   ;;  %vm142_vm7 = vcmask 31768  }
   0x2   :  { %32 = vst [vmem:[#allocation0] sm:$0xff] %v606_v4  ;;  %34 = vst [vmem:[#allocation0 + $0x8] sm:$0xff] %v612_v5  ;;  %vm159_vm8 = vcmask 1047555   ;;  %vm177_vm10 = vcmask 39968   ;;  %vm194_vm11 = vcmask 1047556   ;;  %vm212_vm13 = vcmask 48168  }
   0x3   :  { %vm125_vm6 = vmand %vm107_vm4, %vm124_vm5  ;;  %vm229_vm14 = vcmask 1047557  }
   0x4   :  { %vm160_vm9 = vmand %vm142_vm7, %vm159_vm8 }
   0x5   :  { %vm195_vm12 = vmand %vm177_vm10, %vm194_vm11 }
   0x6   :  { %vm230_vm15 = vmand %vm212_vm13, %vm229_vm14 }
   0x8   :  { %v42_v1 = vld [vmem:[#allocation1] ss:$0 sm:$0xff] }
   0x9   :  { %v44_v2 = vmul.f32 %v42_v1, %v42_v1  ;;  %v63_v3 = vmul.f32 0.0, %v42_v1  ;;  %v43_v6 = vld [vmem:[#allocation0] ss:$0 sm:$0xff]  ;;  %v76_v22 = vld [vmem:[#allocation0 + $0x1] ss:$0 sm:$0xff] }
   0xa   :  { %v111_v40 = vld [vmem:[#allocation0 + $0x2] ss:$0 sm:$0xff]  ;;  %v146_v58 = vld [vmem:[#allocation0 + $0x3] ss:$0 sm:$0xff] }
   0xb   :  { %45 = vadd.xlane.f32.xlu0 %v44_v2  ;;  %64 = vadd.xlane.f32.xlu1 %v63_v3 }
   0xf   :  { %52 = vadd.xlane.f32.xlu0 %v63_v3 }
  0x98   :  { %v46_v7 = vpop.xlane.xlu0 %45  ;;  %v65_v13 = vpop.xlane.xlu1 %64 }
  0x99   :  { %v47_v8 = vsub.f32 %v43_v6, %v46_v7  ;;  %v66_v15 = vsub.f32 %v612_v5, %v65_v13 }
  0x9b   :  { %560 = vrsqrt.f32 %v47_v8 }
  0x9c   :  { %v53_v9 = vpop.xlane.xlu0 %52 }
  0x9d   :  { %v54_v10 = vsub.f32 %v606_v4, %v53_v9 }
  0xa5   :  { %v561_v11 = vpop.eup %560 }
  0xa6   :  { %v55_v12 = vmul.f32 %v561_v11, %v54_v10  ;;  %v67_v16 = vmul.f32 %v561_v11, %v66_v15 }
  0xa8   :  { %v56_v14 = vsel %vm41_vm0, %v55_v12, 0.0  ;;  %v68_v17 = vsel %vm41_vm0, %v67_v16, 0.0  ;;  %vm247_vm0 = vcmask 56368  }
  0xa9   :  { %58 = vst [vmem:[#allocation1] sm:$0xff] %v56_v14 }
  0xb0   :  { %v74_v18 = vld [vmem:[#allocation1 + $0x1] ss:$0 sm:$0xff] }
  0xb1   :  { %v84_v19 = vmul.f32 %v74_v18, %v56_v14  ;;  %v77_v20 = vmul.f32 %v74_v18, %v74_v18  ;;  %v98_v21 = vmul.f32 %v74_v18, %v68_v17 }
  0xb3   :  { %85 = vadd.xlane.f32.xlu0 %v84_v19  ;;  %78 = vadd.xlane.f32.xlu1 %v77_v20 }
  0xb7   :  { %99 = vadd.xlane.f32.xlu1 %v98_v21 }
 0x140   :  { %v79_v23 = vpop.xlane.xlu1 %78  ;;  %v86_v25 = vpop.xlane.xlu0 %85 }
 0x141   :  { %v80_v24 = vsub.f32 %v76_v22, %v79_v23  ;;  %v87_v26 = vsub.f32 %v606_v4, %v86_v25 }
 0x143   :  { %562 = vrsqrt.f32 %v80_v24 }
 0x144   :  { %v100_v31 = vpop.xlane.xlu1 %99 }
 0x145   :  { %v101_v32 = vsub.f32 %v612_v5, %v100_v31 }
 0x14d   :  { %v563_v27 = vpop.eup %562 }
 0x14e   :  { %v88_v28 = vmul.f32 %v563_v27, %v87_v26  ;;  %v102_v33 = vmul.f32 %v563_v27, %v101_v32  ;;  %v216_v32 = vld [vmem:[#allocation0 + $0x5] ss:$0 sm:$0xff] }
 0x150   :  { %v91_v29 = vsel %vm90_vm3, %v88_v28, 0.0  ;;  %v103_v34 = vsel %vm72_vm1, %v102_v33, 0.0  ;;  %vm264_vm1 = vcmask 1047558  }
 0x151   :  { %v92_v30 = vadd.f32 %v91_v29, %v56_v14  ;;  %v104_v38 = vadd.f32 %v103_v34, %v68_v17  ;;  %v181_v14 = vld [vmem:[#allocation0 + $0x4] ss:$0 sm:$0xff]  ;;  %vm265_vm3 = vmand %vm247_vm0, %vm264_vm1 }
 0x153   :  { %93 = vst [vmem:[#allocation1] sm:$0xff] %v92_v30 }
 0x15a   :  { %v109_v35 = vld [vmem:[#allocation1 + $0x2] ss:$0 sm:$0xff] }
 0x15b   :  { %v119_v36 = vmul.f32 %v109_v35, %v92_v30  ;;  %v112_v37 = vmul.f32 %v109_v35, %v109_v35  ;;  %v133_v39 = vmul.f32 %v109_v35, %v104_v38 }
 0x15d   :  { %120 = vadd.xlane.f32.xlu1 %v119_v36  ;;  %113 = vadd.xlane.f32.xlu0 %v112_v37 }
 0x161   :  { %134 = vadd.xlane.f32.xlu0 %v133_v39 }
 0x1ea   :  { %v114_v41 = vpop.xlane.xlu0 %113  ;;  %v121_v43 = vpop.xlane.xlu1 %120 }
 0x1eb   :  { %v115_v42 = vsub.f32 %v111_v40, %v114_v41  ;;  %v122_v44 = vsub.f32 %v606_v4, %v121_v43 }
 0x1ed   :  { %564 = vrsqrt.f32 %v115_v42 }
 0x1ee   :  { %v135_v49 = vpop.xlane.xlu0 %134 }
 0x1ef   :  { %v136_v50 = vsub.f32 %v612_v5, %v135_v49 }
 0x1f7   :  { %v565_v45 = vpop.eup %564 }
 0x1f8   :  { %v123_v46 = vmul.f32 %v565_v45, %v122_v44  ;;  %v137_v51 = vmul.f32 %v565_v45, %v136_v50  ;;  %v251_v50 = vld [vmem:[#allocation0 + $0x6] ss:$0 sm:$0xff] }
 0x1fa   :  { %v126_v47 = vsel %vm125_vm6, %v123_v46, 0.0  ;;  %v138_v52 = vsel %vm107_vm4, %v137_v51, 0.0  ;;  %vm282_vm4 = vcmask 64568   ;;  %vm317_vm6 = vcmask 72768  }
 0x1fb   :  { %v127_v48 = vadd.f32 %v126_v47, %v92_v30  ;;  %v139_v56 = vadd.f32 %v138_v52, %v104_v38 }
 0x1fd   :  { %128 = vst [vmem:[#allocation1] sm:$0xff] %v127_v48 }
 0x204   :  { %v144_v53 = vld [vmem:[#allocation1 + $0x3] ss:$0 sm:$0xff] }
 0x205   :  { %v154_v54 = vmul.f32 %v144_v53, %v127_v48  ;;  %v147_v55 = vmul.f32 %v144_v53, %v144_v53  ;;  %v168_v57 = vmul.f32 %v144_v53, %v139_v56 }
 0x207   :  { %155 = vadd.xlane.f32.xlu0 %v154_v54  ;;  %148 = vadd.xlane.f32.xlu1 %v147_v55 }
 0x20b   :  { %169 = vadd.xlane.f32.xlu1 %v168_v57 }
 0x294   :  { %v149_v59 = vpop.xlane.xlu1 %148  ;;  %v156_v61 = vpop.xlane.xlu0 %155 }
 0x295   :  { %v150_v60 = vsub.f32 %v146_v58, %v149_v59  ;;  %v157_v62 = vsub.f32 %v606_v4, %v156_v61 }
 0x297   :  { %566 = vrsqrt.f32 %v150_v60 }
 0x298   :  { %v170_v3 = vpop.xlane.xlu1 %169 }
 0x299   :  { %v171_v6 = vsub.f32 %v612_v5, %v170_v3  ;;  %v286_v3 = vld [vmem:[#allocation0 + $0x7] ss:$0 sm:$0xff] }
 0x2a1   :  { %v567_v63 = vpop.eup %566 }
 0x2a2   :  { %v158_v0 = vmul.f32 %v567_v63, %v157_v62  ;;  %v172_v7 = vmul.f32 %v567_v63, %v171_v6 }
 0x2a4   :  { %v161_v1 = vsel %vm160_vm9, %v158_v0, 0.0  ;;  %v173_v8 = vsel %vm142_vm7, %v172_v7, 0.0  ;;  %vm340_vm7 = vcmask 80968  }
 0x2a5   :  { %v162_v2 = vadd.f32 %v161_v1, %v127_v48  ;;  %v174_v12 = vadd.f32 %v173_v8, %v139_v56  ;;  %vm360_vm9 = vmand %vm340_vm7, %vm89_vm2 }
 0x2a7   :  { %163 = vst [vmem:[#allocation1] sm:$0xff] %v162_v2 }
 0x2ae   :  { %v179_v9 = vld [vmem:[#allocation1 + $0x4] ss:$0 sm:$0xff] }
 0x2af   :  { %v189_v10 = vmul.f32 %v179_v9, %v162_v2  ;;  %v182_v11 = vmul.f32 %v179_v9, %v179_v9  ;;  %v203_v13 = vmul.f32 %v179_v9, %v174_v12 }
 0x2b1   :  { %190 = vadd.xlane.f32.xlu1 %v189_v10  ;;  %183 = vadd.xlane.f32.xlu0 %v182_v11 }
 0x2b5   :  { %204 = vadd.xlane.f32.xlu0 %v203_v13 }
 0x33e   :  { %v184_v15 = vpop.xlane.xlu0 %183  ;;  %v191_v17 = vpop.xlane.xlu1 %190 }
 0x33f   :  { %v185_v16 = vsub.f32 %v181_v14, %v184_v15  ;;  %v192_v18 = vsub.f32 %v606_v4, %v191_v17  ;;  %v321_v17 = vld [vmem:[#allocation0 + $0x8] ss:$0 sm:$0xff] }
 0x341   :  { %568 = vrsqrt.f32 %v185_v16 }
 0x342   :  { %v205_v23 = vpop.xlane.xlu0 %204 }
 0x343   :  { %v206_v24 = vsub.f32 %v612_v5, %v205_v23 }
 0x34b   :  { %v569_v19 = vpop.eup %568 }
 0x34c   :  { %v193_v20 = vmul.f32 %v569_v19, %v192_v18  ;;  %v207_v25 = vmul.f32 %v569_v19, %v206_v24 }
 0x34e   :  { %v196_v21 = vsel %vm195_vm12, %v193_v20, 0.0  ;;  %v208_v26 = vsel %vm177_vm10, %v207_v25, 0.0  ;;  %vm365_vm10 = vcmask 89168   ;;  %vm390_vm12 = vcmask 97368  }
 0x34f   :  { %v197_v22 = vadd.f32 %v196_v21, %v162_v2  ;;  %v209_v30 = vadd.f32 %v208_v26, %v174_v12  ;;  %vm385_vm2 = vmand %vm365_vm10, %vm124_vm5 }
 0x350   :  { %vm410_vm5 = vmand %vm390_vm12, %vm159_vm8 }
 0x351   :  { %198 = vst [vmem:[#allocation1] sm:$0xff] %v197_v22 }
 0x358   :  { %v214_v27 = vld [vmem:[#allocation1 + $0x5] ss:$0 sm:$0xff] }
 0x359   :  { %v224_v28 = vmul.f32 %v214_v27, %v197_v22  ;;  %v217_v29 = vmul.f32 %v214_v27, %v214_v27  ;;  %v238_v31 = vmul.f32 %v214_v27, %v209_v30 }
 0x35b   :  { %225 = vadd.xlane.f32.xlu0 %v224_v28  ;;  %218 = vadd.xlane.f32.xlu1 %v217_v29  ;;  %v344_v29 = vld [vmem:[#allocation0 + $0x9] ss:$0 sm:$0xff] }
 0x35f   :  { %239 = vadd.xlane.f32.xlu1 %v238_v31 }
 0x3e8   :  { %v219_v33 = vpop.xlane.xlu1 %218  ;;  %v226_v35 = vpop.xlane.xlu0 %225 }
 0x3e9   :  { %v220_v34 = vsub.f32 %v216_v32, %v219_v33  ;;  %v227_v36 = vsub.f32 %v606_v4, %v226_v35 }
 0x3eb   :  { %570 = vrsqrt.f32 %v220_v34 }
 0x3ec   :  { %v240_v41 = vpop.xlane.xlu1 %239 }
 0x3ed   :  { %v241_v42 = vsub.f32 %v612_v5, %v240_v41  ;;  %v369_v41 = vld [vmem:[#allocation0 + $0xa] ss:$0 sm:$0xff] }
 0x3f5   :  { %v571_v37 = vpop.eup %570 }
 0x3f6   :  { %v228_v38 = vmul.f32 %v571_v37, %v227_v36  ;;  %v242_v43 = vmul.f32 %v571_v37, %v241_v42 }
 0x3f8   :  { %v231_v39 = vsel %vm230_vm15, %v228_v38, 0.0  ;;  %v243_v44 = vsel %vm212_vm13, %v242_v43, 0.0  ;;  %vm415_vm13 = vcmask 105568   ;;  %vm440_vm15 = vcmask 113768  }
 0x3f9   :  { %v232_v40 = vadd.f32 %v231_v39, %v197_v22  ;;  %v244_v48 = vadd.f32 %v243_v44, %v209_v30  ;;  %vm435_vm8 = vmand %vm415_vm13, %vm194_vm11 }
 0x3fa   :  { %vm460_vm11 = vmand %vm440_vm15, %vm229_vm14 }
 0x3fb   :  { %233 = vst [vmem:[#allocation1] sm:$0xff] %v232_v40 }
 0x402   :  { %v249_v45 = vld [vmem:[#allocation1 + $0x6] ss:$0 sm:$0xff] }
 0x403   :  { %v259_v46 = vmul.f32 %v249_v45, %v232_v40  ;;  %v252_v47 = vmul.f32 %v249_v45, %v249_v45  ;;  %v273_v49 = vmul.f32 %v249_v45, %v244_v48 }
 0x405   :  { %260 = vadd.xlane.f32.xlu1 %v259_v46  ;;  %253 = vadd.xlane.f32.xlu0 %v252_v47 }
 0x409   :  { %274 = vadd.xlane.f32.xlu0 %v273_v49 }
 0x492   :  { %v254_v51 = vpop.xlane.xlu0 %253  ;;  %v261_v53 = vpop.xlane.xlu1 %260 }
 0x493   :  { %v255_v52 = vsub.f32 %v251_v50, %v254_v51  ;;  %v262_v54 = vsub.f32 %v606_v4, %v261_v53  ;;  %v394_v53 = vld [vmem:[#allocation0 + $0xb] ss:$0 sm:$0xff] }
 0x495   :  { %572 = vrsqrt.f32 %v255_v52 }
 0x496   :  { %v275_v56 = vpop.xlane.xlu0 %274 }
 0x497   :  { %v276_v59 = vsub.f32 %v612_v5, %v275_v56 }
 0x49f   :  { %v573_v55 = vpop.eup %572 }
 0x4a0   :  { %v263_v57 = vmul.f32 %v573_v55, %v262_v54  ;;  %v277_v61 = vmul.f32 %v573_v55, %v276_v59 }
 0x4a2   :  { %v266_v58 = vsel %vm265_vm3, %v263_v57, 0.0  ;;  %v278_v62 = vsel %vm247_vm0, %v277_v61, 0.0  ;;  %vm299_vm0 = vcmask 1047559   ;;  %vm465_vm3 = vcmask 121968  }
 0x4a3   :  { %v635_v60 = vadd.f32 %v266_v58, %v232_v40  ;;  %v279_v63 = vadd.f32 %v278_v62, %v244_v48  ;;  %vm300_vm14 = vmand %vm282_vm4, %vm299_vm0 }
 0x4a5   :  { %268 = vst [vmem:[#allocation1] sm:$0xff] %v635_v60 }
 0x4ac   :  { %v638_v0 = vld [vmem:[#allocation1 + $0x7] ss:$0 sm:$0xff] }
 0x4ad   :  { %v308_v1 = vmul.f32 %v638_v0, %v279_v63  ;;  %v287_v2 = vmul.f32 %v638_v0, %v638_v0 }
 0x4af   :  { %309 = vadd.xlane.f32.xlu0 %v308_v1  ;;  %288 = vadd.xlane.f32.xlu1 %v287_v2 }
 0x53c   :  { %v289_v6 = vpop.xlane.xlu1 %288  ;;  %v310_v8 = vpop.xlane.xlu0 %309 }
 0x53d   :  { %v290_v7 = vsub.f32 %v286_v3, %v289_v6  ;;  %v311_v9 = vsub.f32 %v612_v5, %v310_v8  ;;  %v419_v3 = vld [vmem:[#allocation0 + $0xc] ss:$0 sm:$0xff] }
 0x53f   :  { %574 = vrsqrt.f32 %v290_v7 }
 0x549   :  { %v644_v10 = vpop.eup %574 }
 0x54a   :  { %v312_v11 = vmul.f32 %v644_v10, %v311_v9 }
 0x54c   :  { %v313_v12 = vsel %vm282_vm4, %v312_v11, 0.0  ;;  %vm490_vm4 = vcmask 130168  }
 0x54d   :  { %v314_v13 = vadd.f32 %v313_v12, %v279_v63 }
 0x54f   :  { %316 = vst [vmem:[#allocation1 + $0x8] sm:$0xff] %v314_v13 }
 0x556   :  { %v319_v14 = vld [vmem:[#allocation1 + $0x8] ss:$0 sm:$0xff] }
 0x557   :  { %v331_v15 = vmul.f32 %v319_v14, %v314_v13  ;;  %v322_v16 = vmul.f32 %v319_v14, %v319_v14 }
 0x559   :  { %332 = vadd.xlane.f32.xlu0 %v331_v15  ;;  %323 = vadd.xlane.f32.xlu1 %v322_v16 }
 0x5e6   :  { %v324_v18 = vpop.xlane.xlu1 %323  ;;  %v333_v20 = vpop.xlane.xlu0 %332 }
 0x5e7   :  { %v325_v19 = vsub.f32 %v321_v17, %v324_v18  ;;  %v334_v21 = vsub.f32 %v612_v5, %v333_v20  ;;  %v444_v18 = vld [vmem:[#allocation0 + $0xd] ss:$0 sm:$0xff] }
 0x5e9   :  { %576 = vrsqrt.f32 %v325_v19 }
 0x5f3   :  { %v577_v22 = vpop.eup %576 }
 0x5f4   :  { %v335_v23 = vmul.f32 %v577_v22, %v334_v21 }
 0x5f6   :  { %v336_v24 = vsel %vm317_vm6, %v335_v23, 0.0  ;;  %vm485_vm6 = vmand %vm465_vm3, %vm264_vm1 }
 0x5f7   :  { %v337_v25 = vadd.f32 %v336_v24, %v314_v13  ;;  %vm510_vm1 = vmand %vm490_vm4, %vm299_vm0 }
 0x5f9   :  { %339 = vst [vmem:[#allocation1 + $0x8] sm:$0xff] %v337_v25 }
 0x600   :  { %v342_v26 = vld [vmem:[#allocation1 + $0x9] ss:$0 sm:$0xff] }
 0x601   :  { %v354_v27 = vmul.f32 %v342_v26, %v337_v25  ;;  %v345_v28 = vmul.f32 %v342_v26, %v342_v26 }
 0x603   :  { %355 = vadd.xlane.f32.xlu0 %v354_v27  ;;  %346 = vadd.xlane.f32.xlu1 %v345_v28 }
 0x690   :  { %v347_v30 = vpop.xlane.xlu1 %346  ;;  %v356_v32 = vpop.xlane.xlu0 %355 }
 0x691   :  { %v348_v31 = vsub.f32 %v344_v29, %v347_v30  ;;  %v357_v33 = vsub.f32 %v612_v5, %v356_v32  ;;  %v294_v30 = vmul.f32 %v638_v0, %v635_v60 }
 0x693   :  { %578 = vrsqrt.f32 %v348_v31  ;;  %v469_v31 = vld [vmem:[#allocation0 + $0xe] ss:$0 sm:$0xff] }
 0x69d   :  { %v579_v34 = vpop.eup %578 }
 0x69e   :  { %v358_v35 = vmul.f32 %v579_v34, %v357_v33 }
 0x6a0   :  { %v361_v36 = vsel %vm360_vm9, %v358_v35, 0.0 }
 0x6a1   :  { %v362_v37 = vadd.f32 %v361_v36, %v337_v25 }
 0x6a3   :  { %364 = vst [vmem:[#allocation1 + $0x8] sm:$0xff] %v362_v37 }
 0x6aa   :  { %v367_v38 = vld [vmem:[#allocation1 + $0xa] ss:$0 sm:$0xff] }
 0x6ab   :  { %v379_v39 = vmul.f32 %v367_v38, %v362_v37  ;;  %v370_v40 = vmul.f32 %v367_v38, %v367_v38 }
 0x6ad   :  { %380 = vadd.xlane.f32.xlu0 %v379_v39  ;;  %371 = vadd.xlane.f32.xlu1 %v370_v40 }
 0x73a   :  { %v372_v42 = vpop.xlane.xlu1 %371  ;;  %v381_v44 = vpop.xlane.xlu0 %380 }
 0x73b   :  { %v373_v43 = vsub.f32 %v369_v41, %v372_v42  ;;  %v382_v45 = vsub.f32 %v612_v5, %v381_v44 }
 0x73d   :  { %580 = vrsqrt.f32 %v373_v43 }
 0x747   :  { %v581_v46 = vpop.eup %580 }
 0x748   :  { %v383_v47 = vmul.f32 %v581_v46, %v382_v45 }
 0x74a   :  { %v386_v48 = vsel %vm385_vm2, %v383_v47, 0.0 }
 0x74b   :  { %v387_v49 = vadd.f32 %v386_v48, %v362_v37 }
 0x74d   :  { %389 = vst [vmem:[#allocation1 + $0x8] sm:$0xff] %v387_v49 }
 0x754   :  { %v392_v50 = vld [vmem:[#allocation1 + $0xb] ss:$0 sm:$0xff] }
 0x755   :  { %v404_v51 = vmul.f32 %v392_v50, %v387_v49  ;;  %v395_v52 = vmul.f32 %v392_v50, %v392_v50 }
 0x757   :  { %405 = vadd.xlane.f32.xlu0 %v404_v51  ;;  %396 = vadd.xlane.f32.xlu1 %v395_v52 }
 0x7e4   :  { %v397_v54 = vpop.xlane.xlu1 %396  ;;  %v406_v56 = vpop.xlane.xlu0 %405 }
 0x7e5   :  { %v398_v55 = vsub.f32 %v394_v53, %v397_v54  ;;  %v407_v57 = vsub.f32 %v612_v5, %v406_v56 }
 0x7e7   :  { %582 = vrsqrt.f32 %v398_v55 }
 0x7f1   :  { %v583_v58 = vpop.eup %582 }
 0x7f2   :  { %v408_v59 = vmul.f32 %v583_v58, %v407_v57 }
 0x7f4   :  { %v411_v61 = vsel %vm410_vm5, %v408_v59, 0.0 }
 0x7f5   :  { %v412_v62 = vadd.f32 %v411_v61, %v387_v49 }
 0x7f7   :  { %414 = vst [vmem:[#allocation1 + $0x8] sm:$0xff] %v412_v62 }
 0x7fe   :  { %v417_v63 = vld [vmem:[#allocation1 + $0xc] ss:$0 sm:$0xff] }
 0x7ff   :  { %v429_v1 = vmul.f32 %v417_v63, %v412_v62  ;;  %v420_v2 = vmul.f32 %v417_v63, %v417_v63 }
 0x801   :  { %430 = vadd.xlane.f32.xlu0 %v429_v1  ;;  %421 = vadd.xlane.f32.xlu1 %v420_v2 }
 0x88e   :  { %v422_v6 = vpop.xlane.xlu1 %421  ;;  %v431_v8 = vpop.xlane.xlu0 %430 }
 0x88f   :  { %v423_v7 = vsub.f32 %v419_v3, %v422_v6  ;;  %v432_v9 = vsub.f32 %v612_v5, %v431_v8 }
 0x891   :  { %584 = vrsqrt.f32 %v423_v7 }
 0x89b   :  { %v585_v11 = vpop.eup %584 }
 0x89c   :  { %v433_v12 = vmul.f32 %v585_v11, %v432_v9 }
 0x89e   :  { %v436_v13 = vsel %vm435_vm8, %v433_v12, 0.0 }
 0x89f   :  { %v437_v14 = vadd.f32 %v436_v13, %v412_v62 }
 0x8a1   :  { %439 = vst [vmem:[#allocation1 + $0x8] sm:$0xff] %v437_v14 }
 0x8a8   :  { %v442_v15 = vld [vmem:[#allocation1 + $0xd] ss:$0 sm:$0xff] }
 0x8a9   :  { %v454_v16 = vmul.f32 %v442_v15, %v437_v14  ;;  %v445_v17 = vmul.f32 %v442_v15, %v442_v15 }
 0x8ab   :  { %455 = vadd.xlane.f32.xlu0 %v454_v16  ;;  %446 = vadd.xlane.f32.xlu1 %v445_v17 }
 0x938   :  { %v447_v19 = vpop.xlane.xlu1 %446  ;;  %v456_v21 = vpop.xlane.xlu0 %455 }
 0x939   :  { %v448_v20 = vsub.f32 %v444_v18, %v447_v19  ;;  %v457_v22 = vsub.f32 %v612_v5, %v456_v21 }
 0x93b   :  { %586 = vrsqrt.f32 %v448_v20 }
 0x945   :  { %v587_v23 = vpop.eup %586 }
 0x946   :  { %v458_v24 = vmul.f32 %v587_v23, %v457_v22 }
 0x948   :  { %v461_v25 = vsel %vm460_vm11, %v458_v24, 0.0 }
 0x949   :  { %v462_v26 = vadd.f32 %v461_v25, %v437_v14 }
 0x94b   :  { %464 = vst [vmem:[#allocation1 + $0x8] sm:$0xff] %v462_v26 }
 0x952   :  { %v467_v27 = vld [vmem:[#allocation1 + $0xe] ss:$0 sm:$0xff] }
 0x953   :  { %v479_v28 = vmul.f32 %v467_v27, %v462_v26  ;;  %v470_v29 = vmul.f32 %v467_v27, %v467_v27 }
 0x955   :  { %480 = vadd.xlane.f32.xlu0 %v479_v28  ;;  %471 = vadd.xlane.f32.xlu1 %v470_v29 }
 0x959   :  { %295 = vadd.xlane.f32.xlu0 %v294_v30 }
 0x9e2   :  { %v481_v32 = vpop.xlane.xlu0 %480  ;;  %v472_v33 = vpop.xlane.xlu1 %471 }
 0x9e3   :  { %v473_v34 = vsub.f32 %v469_v31, %v472_v33  ;;  %v482_v0 = vsub.f32 %v612_v5, %v481_v32 }
 0x9e5   :  { %588 = vrsqrt.f32 %v473_v34 }
 0x9e6   :  { %v296_v35 = vpop.xlane.xlu0 %295 }
 0x9e7   :  { %v297_v36 = vsub.f32 %v606_v4, %v296_v35 }
 0x9e9   :  { %v298_v37 = vmul.f32 %v644_v10, %v297_v36 }
 0x9eb   :  { %v301_v38 = vsel %vm300_vm14, %v298_v37, 0.0 }
 0x9ec   :  { %v302_v39 = vadd.f32 %v301_v38, %v635_v60  ;;  %v494_v60 = vld [vmem:[#allocation0 + $0xf] ss:$0 sm:$0xff] }
 0x9ee   :  { %303 = vst [vmem:[#allocation1] sm:$0xff] %v302_v39  ;;  %545 = vst [vmem:[%s677_s1] sm:$0xff] %v302_v39 }
 0x9ef   :  { %v589_v40 = vpop.eup %588 }
 0x9f0   :  { %v483_v4 = vmul.f32 %v589_v40, %v482_v0 }
 0x9f2   :  { %v486_v41 = vsel %vm485_vm6, %v483_v4, 0.0 }
 0x9f3   :  { %v487_v42 = vadd.f32 %v486_v41, %v462_v26 }
 0x9f5   :  { %489 = vst [vmem:[#allocation1 + $0x8] sm:$0xff] %v487_v42 }
 0x9fc   :  { %v492_v43 = vld [vmem:[#allocation1 + $0xf] ss:$0 sm:$0xff] }
 0x9fd   :  { %v495_v10 = vmul.f32 %v492_v43, %v492_v43  ;;  %v504_v44 = vmul.f32 %v492_v43, %v487_v42 }
 0x9ff   :  { %496 = vadd.xlane.f32.xlu1 %v495_v10 }
 0xa03   :  { %505 = vadd.xlane.f32.xlu1 %v504_v44 }
 0xa8c   :  { %v497_v45 = vpop.xlane.xlu1 %496 }
 0xa8d   :  { %v498_v46 = vsub.f32 %v494_v60, %v497_v45 }
 0xa8f   :  { %590 = vrsqrt.f32 %v498_v46 }
 0xa90   :  { %v506_v47 = vpop.xlane.xlu1 %505 }
 0xa91   :  { %v507_v48 = vsub.f32 %v612_v5, %v506_v47 }
 0xa99   :  { %v591_v49 = vpop.eup %590 }
 0xa9a   :  { %v508_v50 = vmul.f32 %v591_v49, %v507_v48 }
 0xa9c   :  { %v511_v51 = vsel %vm510_vm1, %v508_v50, 0.0 }
 0xa9d   :  { %v512_v52 = vadd.f32 %v511_v51, %v487_v42 }
 0xa9f   :  { %514 = vst [vmem:[#allocation1 + $0x8] sm:$0xff] %v512_v52  ;;  %547 = vst [vmem:[%s677_s1 + $0x8] sm:$0xff] %v512_v52 }

// kernel: custom-call.71
= control target key start
LH: loop header
LB: loop body
LE: loop exit
PB: predicated region body
PF: predicated region fallthrough
CT: control target
= control target key end

     0   :  { %v38_v0 = vlaneseq  ;;  %v332_v9 = vmov -1.0   ;;  %v333_v53 = vmov 0.0   ;;  %s401_s0 = inlined_call_operand.vmem [shape: f32[1,16,16], index: 0, kind: input, shape index: {}]   ;;  %s402_s1 = inlined_call_operand.vmem [shape: f32[1,16,16], index: 1, kind: output, shape index: {}]  }
   0x1   :  { %v31_v1 = vld [vmem:[%s401_s0] sm:$0xff]  ;;  %v33_v36 = vld [vmem:[%s401_s0 + $0x8] sm:$0xff] }
   0x2   :  { %v347_v2 = vand.u32 127, %v38_v0  ;;  %v42_v3 = vshrl.u32 %v38_v0, 7 }
   0x4   :  { %vm44_vm0 = vcmp.eq.s32.totalorder %v42_v3, %v347_v2  ;;  %vm40_vm1 = vcmp.lt.s32.totalorder %v347_v2, 16  ;;  %vm49_vm2 = vcmp.ge.s32.totalorder %v42_v3, %v347_v2  ;;  %vm79_vm4 = vcmp.eq.s32.totalorder %v347_v2, 0 }
   0x5   :  { %v46_v4 = vsel %vm44_vm0, %v31_v1, 0.0  ;;  %vm50_vm3 = vmand %vm49_vm2, %vm40_vm1  ;;  %vm76_vm5 = vcmp.eq.s32.totalorder %v347_v2, %v42_v3  ;;  %v80_v10 = vsel %vm79_vm4, 1.0, %v332_v9  ;;  %vm94_vm6 = vcmp.eq.s32.totalorder %v347_v2, 1 }
   0x6   :  { %47 = vadd.xlane.f32.xlu0 %v46_v4  ;;  %v51_v6 = vsel %vm50_vm3, %v31_v1, 0.0  ;;  %v81_v11 = vsel %vm76_vm5, %v80_v10, 0.0  ;;  %vm104_vm7 = vcmp.eq.s32.totalorder %v347_v2, 2  ;;  %vm114_vm8 = vcmp.eq.s32.totalorder %v347_v2, 3 }
   0x7   :  { %vm124_vm9 = vcmp.eq.s32.totalorder %v347_v2, 4  ;;  %v59_v31 = vadd.s32 8, %v42_v3  ;;  %vm134_vm11 = vcmp.eq.s32.totalorder %v347_v2, 5  ;;  %vm144_vm14 = vcmp.eq.s32.totalorder %v347_v2, 6 }
   0x8   :  { %vm154_vm0 = vcmp.eq.s32.totalorder %v347_v2, 7  ;;  %vm178_vm2 = vcmp.eq.s32.totalorder %v347_v2, 9  ;;  %vm192_vm3 = vcmp.eq.s32.totalorder %v347_v2, 10  ;;  %vm206_vm4 = vcmp.eq.s32.totalorder %v347_v2, 11 }
   0x9   :  { %vm60_vm10 = vcmp.eq.s32.totalorder %v59_v31, %v347_v2  ;;  %vm65_vm12 = vcmp.ge.s32.totalorder %v59_v31, %v347_v2  ;;  %vm87_vm15 = vcmp.eq.s32.totalorder %v347_v2, %v59_v31  ;;  %vm220_vm5 = vcmp.eq.s32.totalorder %v347_v2, 12 }
   0xa   :  { %v62_v37 = vsel %vm60_vm10, %v33_v36, 0.0  ;;  %vm66_vm13 = vmand %vm65_vm12, %vm40_vm1  ;;  %v88_v54 = vsel %vm87_vm15, -1.0, %v333_v53  ;;  %vm164_vm1 = vcmp.eq.s32.totalorder %v347_v2, 8 }
   0xb   :  { %v67_v44 = vsel %vm66_vm13, %v33_v36, 0.0 }
  0x93   :  { %v350_v5 = vpop.xlane.xlu0 %47 }
  0x94   :  { %328 = vrcp.f32 %v350_v5  ;;  %vm273_vm10 = vweird.f32 %v350_v5 }
  0x9e   :  { %v357_v7 = vpop.eup %328 }
  0x9f   :  { %v53_v8 = vmul.f32 %v357_v7, %v51_v6 }
  0xa1   :  { %54 = vst [vmem:[#allocation2] sm:$0xff] %v53_v8 }
  0xa8   :  { %v90_v12 = vld [vmem:[#allocation2 + $0x1] ss:$0 sm:$0xff]  ;;  %v100_v15 = vld [vmem:[#allocation2 + $0x2] ss:$0 sm:$0xff]  ;;  %v110_v20 = vld [vmem:[#allocation2 + $0x3] ss:$0 sm:$0xff] }
  0xa9   :  { %v91_v13 = vxor.u32 2147483648, %v90_v12  ;;  %v101_v17 = vxor.u32 2147483648, %v100_v15  ;;  %v111_v22 = vxor.u32 2147483648, %v110_v20  ;;  %v120_v25 = vld [vmem:[#allocation2 + $0x4] ss:$0 sm:$0xff] }
  0xaa   :  { %v121_v27 = vxor.u32 2147483648, %v120_v25  ;;  %v130_v30 = vld [vmem:[#allocation2 + $0x5] ss:$0 sm:$0xff]  ;;  %v140_v38 = vld [vmem:[#allocation2 + $0x6] ss:$0 sm:$0xff] }
  0xab   :  { %v95_v14 = vmul.f32 %v91_v13, %v81_v11  ;;  %v131_v33 = vxor.u32 2147483648, %v130_v30  ;;  %v141_v40 = vxor.u32 2147483648, %v140_v38  ;;  %v150_v47 = vld [vmem:[#allocation2 + $0x7] ss:$0 sm:$0xff] }
  0xac   :  { %v151_v50 = vxor.u32 2147483648, %v150_v47 }
  0xad   :  { %96 = vadd.xlane.f32.xlu0 %v95_v14 }
 0x13a   :  { %v97_v16 = vpop.xlane.xlu0 %96 }
 0x13b   :  { %v98_v18 = vsel %vm94_vm6, %v97_v16, %v81_v11  ;;  %vm234_vm6 = vcmp.eq.s32.totalorder %v347_v2, 13 }
 0x13c   :  { %v105_v19 = vmul.f32 %v101_v17, %v98_v18 }
 0x13e   :  { %106 = vadd.xlane.f32.xlu1 %v105_v19 }
 0x1cb   :  { %v107_v21 = vpop.xlane.xlu1 %106 }
 0x1cc   :  { %v108_v23 = vsel %vm104_vm7, %v107_v21, %v98_v18  ;;  %vm248_vm7 = vcmp.eq.s32.totalorder %v347_v2, 14 }
 0x1cd   :  { %v115_v24 = vmul.f32 %v111_v22, %v108_v23 }
 0x1cf   :  { %116 = vadd.xlane.f32.xlu1 %v115_v24 }
 0x25c   :  { %v117_v26 = vpop.xlane.xlu1 %116 }
 0x25d   :  { %v118_v28 = vsel %vm114_vm8, %v117_v26, %v108_v23  ;;  %vm262_vm8 = vcmp.eq.s32.totalorder %v347_v2, 15 }
 0x25e   :  { %v125_v29 = vmul.f32 %v121_v27, %v118_v28 }
 0x260   :  { %126 = vadd.xlane.f32.xlu0 %v125_v29 }
 0x2ed   :  { %v127_v32 = vpop.xlane.xlu0 %126 }
 0x2ee   :  { %v128_v34 = vsel %vm124_vm9, %v127_v32, %v118_v28 }
 0x2ef   :  { %v135_v35 = vmul.f32 %v131_v33, %v128_v34 }
 0x2f1   :  { %136 = vadd.xlane.f32.xlu1 %v135_v35 }
 0x2f5   :  { %63 = vadd.xlane.f32.xlu1 %v62_v37 }
 0x37e   :  { %v137_v39 = vpop.xlane.xlu1 %136 }
 0x37f   :  { %v138_v41 = vsel %vm134_vm11, %v137_v39, %v128_v34 }
 0x380   :  { %v145_v42 = vmul.f32 %v141_v40, %v138_v41 }
 0x382   :  { %146 = vadd.xlane.f32.xlu0 %v145_v42  ;;  %v371_v43 = vpop.xlane.xlu1 %63 }
 0x383   :  { %330 = vrcp.f32 %v371_v43  ;;  %vm278_vm9 = vweird.f32 %v371_v43 }
 0x38d   :  { %v377_v45 = vpop.eup %330 }
 0x38e   :  { %v69_v46 = vmul.f32 %v377_v45, %v67_v44 }
 0x390   :  { %70 = vst [vmem:[#allocation2 + $0x8] sm:$0xff] %v69_v46 }
 0x397   :  { %v160_v48 = vld [vmem:[#allocation2 + $0x8] ss:$0 sm:$0xff]  ;;  %v174_v59 = vld [vmem:[#allocation2 + $0x9] ss:$0 sm:$0xff]  ;;  %v188_v4 = vld [vmem:[#allocation2 + $0xa] ss:$0 sm:$0xff] }
 0x398   :  { %v161_v51 = vxor.u32 2147483648, %v160_v48  ;;  %v175_v62 = vxor.u32 2147483648, %v174_v59  ;;  %v189_v9 = vxor.u32 2147483648, %v188_v4  ;;  %v202_v14 = vld [vmem:[#allocation2 + $0xb] ss:$0 sm:$0xff] }
 0x399   :  { %v203_v17 = vxor.u32 2147483648, %v202_v14  ;;  %v216_v22 = vld [vmem:[#allocation2 + $0xc] ss:$0 sm:$0xff]  ;;  %v230_v30 = vld [vmem:[#allocation2 + $0xd] ss:$0 sm:$0xff] }
 0x39a   :  { %v169_v56 = vmul.f32 %v161_v51, %v88_v54  ;;  %v217_v25 = vxor.u32 2147483648, %v216_v22  ;;  %v231_v33 = vxor.u32 2147483648, %v230_v30  ;;  %v244_v38 = vld [vmem:[#allocation2 + $0xe] ss:$0 sm:$0xff]  ;;  %v258_v48 = vld [vmem:[#allocation2 + $0xf] ss:$0 sm:$0xff] }
 0x40f   :  { %v147_v49 = vpop.xlane.xlu0 %146 }
 0x410   :  { %v148_v52 = vsel %vm144_vm14, %v147_v49, %v138_v41  ;;  %v245_v41 = vxor.u32 2147483648, %v244_v38 }
 0x411   :  { %v155_v55 = vmul.f32 %v151_v50, %v148_v52 }
 0x413   :  { %156 = vadd.xlane.f32.xlu0 %v155_v55 }
 0x417   :  { %170 = vadd.xlane.f32.xlu0 %v169_v56 }
 0x4a0   :  { %v157_v57 = vpop.xlane.xlu0 %156 }
 0x4a1   :  { %v158_v58 = vsel %vm154_vm0, %v157_v57, %v148_v52 }
 0x4a2   :  { %v165_v60 = vmul.f32 %v161_v51, %v158_v58  ;;  %v259_v51 = vxor.u32 2147483648, %v258_v48 }
 0x4a4   :  { %v171_v61 = vpop.xlane.xlu0 %170  ;;  %166 = vadd.xlane.f32.xlu1 %v165_v60 }
 0x4a5   :  { %v172_v63 = vsel %vm164_vm1, %v171_v61, %v88_v54 }
 0x4a6   :  { %v183_v0 = vmul.f32 %v175_v62, %v172_v63 }
 0x4a8   :  { %184 = vadd.xlane.f32.xlu0 %v183_v0 }
 0x531   :  { %v167_v1 = vpop.xlane.xlu1 %166 }
 0x532   :  { %v168_v3 = vsel %vm164_vm1, %v167_v1, %v158_v58 }
 0x533   :  { %v179_v6 = vmul.f32 %v175_v62, %v168_v3 }
 0x535   :  { %v185_v8 = vpop.xlane.xlu0 %184  ;;  %180 = vadd.xlane.f32.xlu1 %v179_v6 }
 0x536   :  { %v186_v10 = vsel %vm178_vm2, %v185_v8, %v172_v63 }
 0x537   :  { %v197_v11 = vmul.f32 %v189_v9, %v186_v10 }
 0x539   :  { %198 = vadd.xlane.f32.xlu0 %v197_v11 }
 0x5c2   :  { %v181_v12 = vpop.xlane.xlu1 %180 }
 0x5c3   :  { %v182_v13 = vsel %vm178_vm2, %v181_v12, %v168_v3 }
 0x5c4   :  { %v193_v15 = vmul.f32 %v189_v9, %v182_v13 }
 0x5c6   :  { %v199_v16 = vpop.xlane.xlu0 %198  ;;  %194 = vadd.xlane.f32.xlu1 %v193_v15 }
 0x5c7   :  { %v200_v18 = vsel %vm192_vm3, %v199_v16, %v186_v10 }
 0x5c8   :  { %v211_v19 = vmul.f32 %v203_v17, %v200_v18 }
 0x5ca   :  { %212 = vadd.xlane.f32.xlu0 %v211_v19 }
 0x653   :  { %v195_v20 = vpop.xlane.xlu1 %194 }
 0x654   :  { %v196_v21 = vsel %vm192_vm3, %v195_v20, %v182_v13 }
 0x655   :  { %v207_v23 = vmul.f32 %v203_v17, %v196_v21 }
 0x657   :  { %v213_v24 = vpop.xlane.xlu0 %212  ;;  %208 = vadd.xlane.f32.xlu1 %v207_v23 }
 0x658   :  { %v214_v26 = vsel %vm206_vm4, %v213_v24, %v200_v18 }
 0x659   :  { %v225_v27 = vmul.f32 %v217_v25, %v214_v26 }
 0x65b   :  { %226 = vadd.xlane.f32.xlu0 %v225_v27 }
 0x6e4   :  { %v209_v28 = vpop.xlane.xlu1 %208 }
 0x6e5   :  { %v210_v29 = vsel %vm206_vm4, %v209_v28, %v196_v21 }
 0x6e6   :  { %v221_v31 = vmul.f32 %v217_v25, %v210_v29 }
 0x6e8   :  { %v227_v32 = vpop.xlane.xlu0 %226  ;;  %222 = vadd.xlane.f32.xlu1 %v221_v31 }
 0x6e9   :  { %v228_v34 = vsel %vm220_vm5, %v227_v32, %v214_v26 }
 0x6ea   :  { %v239_v35 = vmul.f32 %v231_v33, %v228_v34 }
 0x6ec   :  { %240 = vadd.xlane.f32.xlu0 %v239_v35 }
 0x775   :  { %v223_v36 = vpop.xlane.xlu1 %222 }
 0x776   :  { %v224_v37 = vsel %vm220_vm5, %v223_v36, %v210_v29 }
 0x777   :  { %v235_v39 = vmul.f32 %v231_v33, %v224_v37 }
 0x779   :  { %v241_v40 = vpop.xlane.xlu0 %240  ;;  %236 = vadd.xlane.f32.xlu1 %v235_v39 }
 0x77a   :  { %v242_v42 = vsel %vm234_vm6, %v241_v40, %v228_v34 }
 0x77b   :  { %v253_v44 = vmul.f32 %v245_v41, %v242_v42 }
 0x77d   :  { %254 = vadd.xlane.f32.xlu0 %v253_v44 }
 0x806   :  { %v237_v46 = vpop.xlane.xlu1 %236 }
 0x807   :  { %v238_v47 = vsel %vm234_vm6, %v237_v46, %v224_v37 }
 0x808   :  { %v249_v49 = vmul.f32 %v245_v41, %v238_v47 }
 0x80a   :  { %v255_v50 = vpop.xlane.xlu0 %254  ;;  %250 = vadd.xlane.f32.xlu1 %v249_v49 }
 0x80b   :  { %v256_v52 = vsel %vm248_vm7, %v255_v50, %v242_v42 }
 0x80c   :  { %v267_v53 = vmul.f32 %v259_v51, %v256_v52 }
 0x80e   :  { %268 = vadd.xlane.f32.xlu0 %v267_v53 }
 0x897   :  { %v251_v54 = vpop.xlane.xlu1 %250 }
 0x898   :  { %v252_v55 = vsel %vm248_vm7, %v251_v54, %v238_v47 }
 0x899   :  { %v263_v56 = vmul.f32 %v259_v51, %v252_v55 }
 0x89b   :  { %v269_v57 = vpop.xlane.xlu0 %268  ;;  %264 = vadd.xlane.f32.xlu1 %v263_v56 }
 0x89c   :  { %v270_v58 = vsel %vm262_vm8, %v269_v57, %v256_v52 }
 0x89d   :  { %v277_v59 = vmul.f32 %v377_v45, %v270_v58 }
 0x89f   :  { %v279_v60 = vsel %vm278_vm9, %v270_v58, %v277_v59 }
 0x8a0   :  { %314 = vst [vmem:[%s402_s1 + $0x8] sm:$0xff] %v279_v60 }
 0x928   :  { %v265_v61 = vpop.xlane.xlu1 %264 }
 0x929   :  { %v266_v62 = vsel %vm262_vm8, %v265_v61, %v252_v55 }
 0x92a   :  { %v272_v63 = vmul.f32 %v357_v7, %v266_v62 }
 0x92c   :  { %v274_v2 = vsel %vm273_vm10, %v266_v62, %v272_v63 }
 0x92d   :  { %312 = vst [vmem:[%s402_s1] sm:$0xff] %v274_v2 }

// kernel: _svd_proj.12
= control target key start
LH: loop header
LB: loop body
LE: loop exit
PB: predicated region body
PF: predicated region fallthrough
CT: control target
= control target key end

     0   :  { %v197_v1 = vmov 0.0   ;;  %vm198_vm0 = vmmov 0   ;;  %vm100_vm1 = vcmask 523264   ;;  %s244_s0 = inlined_call_operand.vmem [shape: bf16[64,16], index: 0, kind: input, shape index: {}]   ;;  %s245_s1 = inlined_call_operand.vmem [shape: bf16[64,128], index: 1, kind: input, shape index: {}]   ;;  %s246_s2 = inlined_call_operand.vmem [shape: f32[16,128], index: 2, kind: output, shape index: {}]  }
   0x1   :  { %v189_v0 = vld [vmem:[%s244_s0] sm:$0xff]   ;;  %174 = vmatprep.subr.bf16.mxu0 %v197_v1  ;;  %182 = vmatprep.mubr.msk.bf16.mxu0 %vm198_vm0, %v197_v1  ;;  %v190_v2 = vld [vmem:[%s244_s0 + $0x8] sm:$0xff]   ;;  %v191_v4 = vld [vmem:[%s244_s0 + $0x10] sm:$0xff]  }
   0x2   :  { %60 = vxpose.xlu0.c.b16.start [1/4] (short) (narrow) %v189_v0, 16  ;;  %v193_v3 = vld [vmem:[%s245_s1] sm:$0xff]   ;;  %v194_v5 = vld [vmem:[%s245_s1 + $0x8] sm:$0xff]   ;;  %v192_v6 = vld [vmem:[%s244_s0 + $0x18] sm:$0xff]  }
   0x3   :  { %175 = vmatpush3.bf16.msra.mxu0 %v193_v3  ;;  %v195_v7 = vld [vmem:[%s245_s1 + $0x10] sm:$0xff]   ;;  %v196_v8 = vld [vmem:[%s245_s1 + $0x18] sm:$0xff]  }
   0x4   :  { %176 = vmatprep.subr.bf16.mxu0 %v197_v1 }
   0x6   :  { %61 = vxpose.xlu0.c.b16.cont [2/4] (short) (narrow) %v190_v2, 16 }
   0x7   :  { %177 = vmatpush3.bf16.msra.mxu0 %v194_v5 }
   0x8   :  { %178 = vmatprep.subr.bf16.mxu0 %v197_v1 }
   0xa   :  { %62 = vxpose.xlu0.c.b16.cont [3/4] (short) (narrow) %v191_v4, 16 }
   0xb   :  { %179 = vmatpush3.bf16.msra.mxu0 %v195_v7 }
   0xc   :  { %180 = vmatprep.subr.bf16.mxu0 %v197_v1 }
   0xe   :  { %63 = vxpose.xlu0.c.b16.end [4/4] (short) (narrow) %v192_v6, 16 }
   0xf   :  { %181 = vmatpush3.bf16.msra.mxu0 %v196_v8 }
  0x68   :  { %v68_v9 = vpop.trf.xlu0 }
  0x69   :  { %183 = vmatmul.mubr.msk.bf16.vlgmr.msra.gmra.mrb[0].mxu0 %vm100_vm1, %v68_v9 }
 0x13c   :  { %v138_v10 = vpop.f32.mrb[0].mxu0 }
 0x13d   :  { %154 = vst [vmem:[%s246_s2] sm:$0xff] %v138_v10  ;;  %v184_v11 = vpop.f32.mrb[1].mxu0 }
 0x13e   :  { %v141_v12 = vpop.f32.mrb[2].mxu0 }
 0x13f   :  { %155 = vst [vmem:[%s246_s2 + $0x8] sm:$0xff] %v141_v12  ;;  %v185_v13 = vpop.f32.mrb[3].mxu0 }

// kernel: custom-call.25
= control target key start
LH: loop header
LB: loop body
LE: loop exit
PB: predicated region body
PF: predicated region fallthrough
CT: control target
= control target key end

     0   :  { %s2375_s30 = smov [#allocation0]   ;;  %s2724_s0 = inlined_call_operand.vmem [shape: f32[8,8], index: 0, kind: input, shape index: {}]   ;;  %s2725_s1 = inlined_call_operand.vmem [shape: f32[8,8], index: 1, kind: input, shape index: {}]   ;;  %s2726_s2 = inlined_call_operand.vmem [shape: f32[8,8], index: 2, kind: input, shape index: {}]   ;;  %s2727_s3 = inlined_call_operand.vmem [shape: f32[8,8], index: 3, kind: input, shape index: {}]   ;;  %s2728_s4 = inlined_call_operand.vmem [shape: f32[8], index: 4, kind: output, shape index: {0}]   ;;  %s2729_s5 = inlined_call_operand.vmem [shape: f32[8], index: 5, kind: output, shape index: {1}]   ;;  %s2730_s6 = inlined_call_operand.vmem [shape: f32[8,8], index: 6, kind: output, shape index: {2}]   ;;  %s2731_s7 = inlined_call_operand.vmem [shape: f32[8,8], index: 7, kind: output, shape index: {3}]   ;;  %s2732_s8 = inlined_call_operand.vmem [shape: f32[8,8], index: 8, kind: output, shape index: {4}]   ;;  %s2733_s9 = inlined_call_operand.vmem [shape: f32[8,8], index: 9, kind: output, shape index: {5}]  }
   0x1   :  { %s2379_s12 = smov %s2724_s0  }
   0x2 LB: > { %v58_v0 = vld [vmem:[%s2381_s12] sm:$0xff]  ;;  %s60_s12 = scalar_lea.vmem %s2381_s12, 8   ;;  %s2381_s12 = sphi %s2379_s12, %s60_s12   ;;  %s2377_s30 = sphi %s2375_s30, %s61_s30  }
   0x3   : > { %59 = vst [vmem:[%s2377_s30] sm:$0xff] %v58_v0  ;;  %s61_s30 = scalar_lea.vmem %s2377_s30, 8   ;;  %p55_p0 = scmp.gt.s32.totalorder %s60_s12, %s2724_s0 }
   0x4   :  { %s2383_s15 = smov (%p55_p0), [#allocation1]   ;;  %s2387_s18 = smov (%p55_p0), %s2725_s1  }
   0x5   :  { %57 = sbr.rel (!%p55_p0) target bundleno = 2 (0x2), region = 358 }
   0xc LB: > { %v120_v1 = vld [vmem:[%s2389_s18] sm:$0xff]  ;;  %s122_s18 = scalar_lea.vmem %s2389_s18, 8   ;;  %s2389_s18 = sphi %s2387_s18, %s122_s18   ;;  %s2385_s15 = sphi %s2383_s15, %s123_s15  }
   0xd   : > { %121 = vst [vmem:[%s2385_s15] sm:$0xff] %v120_v1  ;;  %s123_s15 = scalar_lea.vmem %s2385_s15, 8   ;;  %p117_p1 = scmp.gt.s32.totalorder %s122_s18, %s2725_s1 }
   0xe   :  { %s2391_s0 = smov (%p117_p1), [#allocation2]   ;;  %s2395_s23 = smov (%p117_p1), %s2726_s2  }
   0xf   :  { %119 = sbr.rel (!%p117_p1) target bundleno = 12 (0xc), region = 380 }
  0x16 LB: > { %v182_v2 = vld [vmem:[%s2397_s23] sm:$0xff]  ;;  %s184_s23 = scalar_lea.vmem %s2397_s23, 8   ;;  %s2397_s23 = sphi %s2395_s23, %s184_s23   ;;  %s2393_s0 = sphi %s2391_s0, %s185_s0  }
  0x17   : > { %183 = vst [vmem:[%s2393_s0] sm:$0xff] %v182_v2  ;;  %s185_s0 = scalar_lea.vmem %s2393_s0, 8   ;;  %p179_p2 = scmp.gt.s32.totalorder %s184_s23, %s2726_s2 }
  0x18   :  { %s2399_s1 = smov (%p179_p2), [#allocation3]   ;;  %s2403_s28 = smov (%p179_p2), %s2727_s3  }
  0x19   :  { %181 = sbr.rel (!%p179_p2) target bundleno = 22 (0x16), region = 402 }
  0x20 LB: > { %v244_v3 = vld [vmem:[%s2405_s28] sm:$0xff]  ;;  %s246_s28 = scalar_lea.vmem %s2405_s28, 8   ;;  %s2405_s28 = sphi %s2403_s28, %s246_s28   ;;  %s2401_s1 = sphi %s2399_s1, %s247_s1  }
  0x21   : > { %245 = vst [vmem:[%s2401_s1] sm:$0xff] %v244_v3  ;;  %s247_s1 = scalar_lea.vmem %s2401_s1, 8   ;;  %p241_p3 = scmp.gt.s32.totalorder %s246_s28, %s2727_s3 }
  0x22   :  { %s259_s2 = smov (%p241_p3), [#allocation12]  ;;  %v260_v4 = vld [vmem:[#allocation0] sm:$0xff] (%p241_p3)  ;;  %s262_s10 = smov (%p241_p3), [#allocation13]  ;;  %v263_v5 = vld [vmem:[#allocation1] sm:$0xff] (%p241_p3)  ;;  %v266_v6 = vld [vmem:[#allocation2] sm:$0xff] (%p241_p3)  ;;  %v276_v7 = vlaneseq (%p241_p3)  ;;  %v2447_v9 = vmov (%p241_p3), 0.0  }
  0x23   :  { %243 = sbr.rel (!%p241_p3) target bundleno = 32 (0x20), region = 424  ;;  %261 = vst [vmem:[%s259_s2] sm:$0xff] (%p241_p3), %v260_v4  ;;  %264 = vst [vmem:[%s262_s10] sm:$0xff] (%p241_p3), %v263_v5  ;;  %s265_s11 = smov (%p241_p3), [#allocation14] }
  0x24   :  { %s268_s12 = smov (%p241_p3), [#allocation15]  ;;  %271 = vst [vmem:[#allocation8] sm:$0xff] (%p241_p3), %v2447_v9  ;;  %272 = vst [vmem:[#allocation9] sm:$0xff] (%p241_p3), %v2447_v9  ;;  %v2524_v10 = vand.u32 (%p241_p3), 127, %v276_v7  ;;  %v2526_v11 = vshrl.u32 (%p241_p3), %v276_v7, 7  ;;  %s275_s3 = smov (%p241_p3), [#allocation8] }
  0x25   :  { %273 = vst [vmem:[#allocation10] sm:$0xff] (%p241_p3), %v2447_v9  ;;  %274 = vst [vmem:[#allocation11] sm:$0xff] (%p241_p3), %v2447_v9  ;;  %s288_s13 = smov (%p241_p3), [#allocation11]  ;;  %s1401_s14 = smov (%p241_p3), [#allocation12] }
  0x26   :  { %267 = vst [vmem:[%s265_s11] sm:$0xff] (%p241_p3), %v266_v6  ;;  %v278_v10 = vmov (%p241_p3), %v2524_v10  ;;  %v281_v11 = vmov (%p241_p3), %v2526_v11  ;;  %vm1405_vm2 = vcmp.lt.s32.totalorder (%p241_p3), %v2524_v10, 8  ;;  %s1418_s15 = smov (%p241_p3), [#allocation13]  ;;  %s1435_s16 = smov (%p241_p3), [#allocation14] }
  0x27   :  { %v291_v10 = vmov (%p241_p3), %v2524_v10  ;;  %v294_v11 = vmov (%p241_p3), %v2526_v11  ;;  %vm285_vm0 = vcmp.eq.s32.totalorder (%p241_p3), %v281_v11, %v278_v10  ;;  %s1452_s17 = smov (%p241_p3), [#allocation15] }
  0x28   :  { %v269_v8 = vld [vmem:[#allocation3] sm:$0xff] (%p241_p3)  ;;  %vm298_vm1 = vcmp.eq.s32.totalorder (%p241_p3), %v294_v11, %v291_v10  ;;  %v1397_v10 = vmov (%p241_p3), %v2524_v10  ;;  %v1400_v11 = vmov (%p241_p3), %v2526_v11 }
  0x29   :  { %270 = vst [vmem:[%s268_s12] sm:$0xff] (%p241_p3), %v269_v8  ;;  %vm1410_vm3 = vcmp.eq.s32.totalorder (%p241_p3), %v1400_v11, %v1397_v10  ;;  %v1448_v10 = vmov (%p241_p3), %v2524_v10  ;;  %v1417_v11 = vmov (%p241_p3), %v2526_v11 }
  0x2a   :  { %v1407_v16 = vld [vmem:[%s1401_s14] sm:$0xff]  ;;  %v1414_v10 = vmov %v2524_v10  ;;  %v1451_v11 = vmov %v2526_v11 }
  0x2b   :  { %v282_v12 = vld [vmem:[%s275_s3] sm:$0xff]  ;;  %v1408_v18 = vsel %vm1405_vm2, %v1407_v16, 0.0  ;;  %v1431_v10 = vmov %v2524_v10  ;;  %v1434_v11 = vmov %v2526_v11  ;;  %vm1461_vm4 = vcmp.eq.s32.totalorder %v1451_v11, %v1448_v10 }
  0x2c   :  { %v295_v13 = vld [vmem:[%s288_s13] sm:$0xff]  ;;  %v286_v14 = vsel %vm285_vm0, 1.0, %v282_v12  ;;  %v1409_v22 = vmul.f32 %v1408_v18, %v1408_v18 }
  0x2d   :  { %v299_v15 = vsel %vm298_vm1, 1.0, %v295_v13  ;;  %287 = vst [vmem:[%s275_s3] sm:$0xff] %v286_v14  ;;  %v1424_v17 = vld [vmem:[%s1418_s15] sm:$0xff] }
  0x2e   :  { %300 = vst [vmem:[%s288_s13] sm:$0xff] %v299_v15  ;;  %v1425_v19 = vsel %vm1405_vm2, %v1424_v17, 0.0  ;;  %v1441_v20 = vld [vmem:[%s1435_s16] sm:$0xff]  ;;  %v1411_v29 = vsel %vm1410_vm3, 0.0, %v1409_v22 }
  0x2f   :  { %v1426_v23 = vmul.f32 %v1425_v19, %v1425_v19  ;;  %v1442_v24 = vsel %vm1405_vm2, %v1441_v20, 0.0 }
  0x30   :  { %v1458_v21 = vld [vmem:[%s1452_s17] sm:$0xff]  ;;  %v1443_v26 = vmul.f32 %v1442_v24, %v1442_v24 }
  0x31   :  { %v1459_v25 = vsel %vm1405_vm2, %v1458_v21, 0.0  ;;  %v1428_v27 = vadd.f32 %v1426_v23, %v1409_v22  ;;  %v1427_v30 = vadd.f32 %v1426_v23, %v1411_v29 }
  0x32   :  { %v1460_v28 = vmul.f32 %v1459_v25, %v1459_v25 }
  0x33   :  { %v1445_v31 = vadd.f32 %v1443_v26, %v1428_v27  ;;  %v1444_v32 = vadd.f32 %v1443_v26, %v1427_v30 }
  0x34   :  { %v1462_v33 = vsel %vm1461_vm4, 0.0, %v1460_v28 }
  0x35   :  { %v1464_v34 = vadd.f32 %v1460_v28, %v1445_v31  ;;  %v1463_v35 = vadd.f32 %v1462_v33, %v1444_v32 }
  0x37   :  { %1465 = vadd.xlane.f32.xlu0 %v1464_v34 }
  0x3b   :  { %1473 = vadd.xlane.f32.xlu0 %v1463_v35 }
  0xc4   :  { %v1466_v36 = vpop.xlane.xlu0 %1465 }
  0xc5   :  { %v1467_v37 = vrot.slane %v1466_v36, 4 }
  0xc7   :  { %v1468_v38 = vadd.f32 %v1467_v37, %v1466_v36 }
  0xc8   :  { %v1474_v39 = vpop.xlane.xlu0 %1473 }
  0xc9   :  { %v1469_v40 = vrot.slane %v1468_v38, 2  ;;  %v1475_v41 = vrot.slane %v1474_v39, 4 }
  0xcb   :  { %v1476_v42 = vadd.f32 %v1475_v41, %v1474_v39  ;;  %v1470_v43 = vadd.f32 %v1469_v40, %v1468_v38 }
  0xcd   :  { %v1477_v44 = vrot.slane %v1476_v42, 2  ;;  %v1471_v46 = vrot.slane %v1470_v43, 1 }
  0xcf   :  { %v1478_v45 = vadd.f32 %v1477_v44, %v1476_v42  ;;  %v1472_v49 = vadd.f32 %v1471_v46, %v1470_v43 }
  0xd1   :  { %v1479_v47 = vrot.slane %v1478_v45, 1 }
  0xd3   :  { %v1480_v48 = vadd.f32 %v1479_v47, %v1478_v45 }
  0xd5   :  { %1656 = vpush %v1480_v48 }
  0xd6   :  { %1658 = vpush %v1472_v49 }
 0x106   :  { %s1657_s18 = spop %1656 }
 0x107   :  { %s1659_s19 = spop %1658 }
 0x108   :  { %s1483_s20 = smul.f32 1e-10, %s1659_s19 }
 0x10a   :  { %p1484_p4 = scmp.le.f32.partialorder %s1657_s18, %s1483_s20 }
 0x10b   :  { %s2550_s0 = smov (!%p1484_p4), 0  }
 0x10c   :  { %1487 = sbr.rel (%p1484_p4) target bundleno = 950 (0x3b6), region = 440 }
 0x113 LB: > { %s2555_s21 = smov 0   ;;  %s2409_s0 = sphi %s2550_s0, %s2734_s0  }
 0x114 LB: >> { %s405_s22 = smov [#allocation12]  ;;  %v409_v10 = vmov %v2524_v10  ;;  %v412_v11 = vmov %v2526_v11  ;;  %s425_s23 = smov [#allocation13]  ;;  %vm728_vm14 = vcmp.eq.s32.totalorder %v2526_v11, 0  ;;  %vm740_vm15 = vcmp.eq.s32.totalorder %v2526_v11, 7  ;;  %s2413_s21 = sphi %s2555_s21, %s404_s21  }
 0x115   : >> { %v429_v10 = vmov %v2524_v10  ;;  %v432_v11 = vmov %v2526_v11  ;;  %v413_v50 = vld [vmem:[%s405_s22] sm:$0xff]  ;;  %vm416_vm5 = vcmp.eq.s32.totalorder %v412_v11, %v409_v10  ;;  %s445_s24 = smov [#allocation15]  ;;  %s406_s25 = smov [#allocation16] }
 0x116   : >> { %vm436_vm6 = vcmp.eq.s32.totalorder %v432_v11, %v429_v10  ;;  %v449_v10 = vmov %v2524_v10  ;;  %v452_v11 = vmov %v2526_v11  ;;  %v417_v51 = vsel %vm416_vm5, %v413_v50, 0.0  ;;  %v433_v52 = vld [vmem:[%s425_s23] sm:$0xff]  ;;  %s426_s1 = smov [#allocation17]  ;;  %s446_s26 = smov [#allocation18] }
 0x117   : >> { %vm456_vm7 = vcmp.eq.s32.totalorder %v452_v11, %v449_v10  ;;  %v418_v53 = vrot.slane %v417_v51, 4  ;;  %v437_v54 = vsel %vm436_vm6, %v433_v52, 0.0  ;;  %v453_v55 = vld [vmem:[%s445_s24] sm:$0xff]  ;;  %s469_s27 = smov [#allocation17]  ;;  %s467_s28 = smov [#allocation16]  ;;  %v518_v10 = vmov %v2524_v10 }
 0x118   : >> { %v438_v56 = vrot.slane %v437_v54, 4  ;;  %v457_v57 = vsel %vm456_vm7, %v453_v55, 0.0  ;;  %s471_s29 = smov [#allocation18]  ;;  %s506_s30 = smov [#allocation19]  ;;  %v521_v11 = vmov %v2526_v11  ;;  %v533_v10 = vmov %v2524_v10 }
 0x119   : >> { %v419_v58 = vadd.f32 %v418_v53, %v417_v51  ;;  %v458_v59 = vrot.slane %v457_v57, 4  ;;  %s508_s2 = smov [#allocation20]  ;;  %s465_s10 = smov [#allocation21]  ;;  %v536_v11 = vmov %v2526_v11  ;;  %vm523_vm12 = vcmp.eq.s32.totalorder %v521_v11, %v518_v10 }
 0x11a   : >> { %v439_v60 = vadd.f32 %v438_v56, %v437_v54  ;;  %s466_s11 = smov [#allocation22]  ;;  %s510_s10 = smov %s465_s10  ;;  %vm538_vm13 = vcmp.eq.s32.totalorder %v536_v11, %v533_v10  ;;  %v631_v10 = vmov %v2524_v10  ;;  %v634_v11 = vmov %v2526_v11 }
 0x11b   : >> { %v420_v61 = vrot.slane %v419_v58, 2  ;;  %v459_v62 = vadd.f32 %v458_v59, %v457_v57  ;;  %s512_s11 = smov %s466_s11  ;;  %s514_s12 = smov [#allocation21]  ;;  %v604_v10 = vmov %v2524_v10  ;;  %v607_v11 = vmov %v2526_v11 }
 0x11c   : >> { %v440_v63 = vrot.slane %v439_v60, 2  ;;  %s529_s3 = smov [#allocation22]  ;;  %s527_s13 = smov [#allocation23]  ;;  %v645_v10 = vmov %v2524_v10  ;;  %v648_v11 = vmov %v2526_v11  ;;  %vm638_vm0 = vcmp.eq.s32.totalorder %v634_v11, %v631_v10 }
 0x11d   : >> { %v421_v0 = vadd.f32 %v420_v61, %v419_v58  ;;  %v460_v1 = vrot.slane %v459_v62, 2  ;;  %s544_s14 = smov [#allocation23]  ;;  %s2570_s15 = smov [#allocation12]  ;;  %v618_v10 = vmov %v2524_v10  ;;  %v621_v11 = vmov %v2526_v11 }
 0x11e   : >> { %v441_v2 = vadd.f32 %v440_v63, %v439_v60  ;;  %s542_s16 = smov [#allocation24]  ;;  %s2572_s17 = smov [#allocation13]  ;;  %v552_v49 = vld [vmem:[%s2570_s15] sm:$0xff]  ;;  %vm612_vm1 = vcmp.eq.s32.totalorder %v607_v11, %v604_v10  ;;  %vm653_vm3 = vcmp.eq.s32.totalorder %v648_v11, %v645_v10  ;;  %vm625_vm4 = vcmp.eq.s32.totalorder %v621_v11, %v618_v10 }
 0x11f   : >> { %v422_v3 = vrot.slane %v421_v0, 1  ;;  %v461_v4 = vadd.f32 %v460_v1, %v459_v62  ;;  %s2574_s18 = smov [#allocation15]  ;;  %s768_s19 = smov [#allocation23]  ;;  %v553_v50 = vld [vmem:[%s2572_s17] sm:$0xff]  ;;  %vm667_vm5 = vcmp.eq.s32.totalorder %v2524_v10, 0  ;;  %vm671_vm6 = vcmp.eq.s32.totalorder %v2524_v10, 1 }
 0x120   : >> { %v442_v5 = vrot.slane %v441_v2, 1  ;;  %s2576_s20 = smov [#allocation8]  ;;  %s2578_s22 = smov [#allocation9]  ;;  %v555_v51 = vld [vmem:[%s2574_s18] sm:$0xff]  ;;  %vm684_vm7 = vcmp.eq.s32.totalorder %v2524_v10, 7 }
 0x121   : >> { %v423_v6 = vadd.f32 %v422_v3, %v421_v0  ;;  %v462_v7 = vrot.slane %v461_v4, 1  ;;  %s2580_s23 = smov [#allocation10]  ;;  %s2583_s24 = smov [#allocation11]  ;;  %v776_v52 = vld [vmem:[%s2576_s20] sm:$0xff] }
 0x122   : >> { %v443_v8 = vadd.f32 %v442_v5, %v441_v2  ;;  %v777_v53 = vld [vmem:[%s2578_s22] sm:$0xff]  ;;  %s404_s21 = sadd.s32 1, %s2413_s21  }
 0x123   : >> { %424 = vst [vmem:[%s406_s25] sm:$0x1] %v423_v6  ;;  %v463_v9 = vadd.f32 %v462_v7, %v461_v4  ;;  %s2585_s25 = smov [#allocation14]  ;;  %v778_v56 = vld [vmem:[%s2580_s23] sm:$0xff]  ;;  %p401_p5 = scmp.ge.s32.totalorder %s404_s21, 15  }
 0x124   : >> { %444 = vst [vmem:[%s426_s1] sm:$0x1] %v443_v8  ;;  %v779_v57 = vld [vmem:[%s2583_s24] sm:$0xff]  ;;  %s546_s1 = smov [#allocation24]  ;;  %v305_v10 = vmov (%p401_p5), %v2524_v10  ;;  %v308_v11 = vmov (%p401_p5), %v2526_v11 }
 0x125   : >> { %464 = vst [vmem:[%s446_s26] sm:$0x1] %v463_v9  ;;  %s770_s26 = smov [#allocation24]  ;;  %v554_v58 = vld [vmem:[%s2585_s25] sm:$0xff]  ;;  %v358_v10 = vmov (%p401_p5), %v2524_v10 }
 0x12a   : >> { %v468_v14 = vld [vmem:[%s467_s28] sm:$0xff]  ;;  %s797_s28 = smov [#allocation10] }
 0x12b   : >> { %v470_v12 = vld [vmem:[%s469_s27] sm:$0xff]  ;;  %v491_v27 = vand.u32 2147483647, %v468_v14  ;;  %s796_s27 = smov [#allocation8] }
 0x12c   : >> { %v474_v13 = vmul.f32 2.0, %v470_v12  ;;  %v472_v15 = vld [vmem:[%s471_s29] sm:$0xff]  ;;  %v492_v32 = vand.u32 2147483647, %v470_v12  ;;  %s572_s29 = smov [#allocation21] }
 0x12d   : >> { %v473_v16 = vsub.f32 %v472_v15, %v468_v14  ;;  %v493_v28 = vand.u32 2147483647, %v472_v15 }
 0x12e   : >> { %2135 = vrcp.f32 %v474_v13 }
 0x12f   : >> { %v494_v31 = vmin.f32 %v491_v27, %v493_v28 }
 0x131   : >> { %v495_v33 = vmul.f32 1.1920929e-08, %v494_v31 }
 0x133   : >> { %vm496_vm11 = vcmp.le.f32.partialorder %v492_v32, %v495_v33 }
 0x138   : >> { %v2136_v17 = vpop.eup %2135 }
 0x139   : >> { %v476_v18 = vmul.f32 %v2136_v17, %v473_v16 }
 0x13b   : >> { %v478_v19 = vmul.f32 %v476_v18, %v476_v18  ;;  %vm477_vm10 = vcmp.ge.f32.partialorder %v476_v18, 0.0 }
 0x13d   : >> { %v479_v20 = vadd.f32 1.0, %v478_v19 }
 0x13f   : >> { %2137 = vrsqrt.f32 %v479_v20  ;;  %vm482_vm8 = vcmp.eq.f32.partialorder %v479_v20, inf  ;;  %v485_v22 = vand.u32 2147483648, %v479_v20  ;;  %vm484_vm9 = vcmp.eq.f32.partialorder %v479_v20, 0.0 }
 0x149   : >> { %v2138_v21 = vpop.eup %2137 }
 0x14a   : >> { %v481_v23 = vmul.f32 %v2138_v21, %v479_v20 }
 0x14c   : >> { %v483_v24 = vsel %vm482_vm8, %v479_v20, %v481_v23  ;;  %vm320_vm8 = vcmp.eq.s32.totalorder (%p401_p5), %v308_v11, %v305_v10  ;;  %v361_v11 = vmov (%p401_p5), %v2526_v11  ;;  %v324_v10 = vmov (%p401_p5), %v2524_v10 }
 0x14d   : >> { %v486_v25 = vsel %vm484_vm9, %v485_v22, %v483_v24  ;;  %v327_v11 = vmov (%p401_p5), %v2526_v11  ;;  %v341_v10 = vmov (%p401_p5), %v2524_v10  ;;  %vm373_vm9 = vcmp.eq.s32.totalorder (%p401_p5), %v361_v11, %v358_v10 }
 0x14e   : >> { %v487_v26 = vxor.u32 2147483648, %v486_v25  ;;  %v344_v11 = vmov (%p401_p5), %v2526_v11 }
 0x150   : >> { %v488_v29 = vsel %vm477_vm10, %v486_v25, %v487_v26 }
 0x151   : >> { %v489_v30 = vadd.f32 %v488_v29, %v476_v18 }
 0x153   : >> { %2139 = vrcp.f32 %v489_v30 }
 0x15d   : >> { %v2140_v34 = vpop.eup %2139 }
 0x15e   : >> { %v497_v35 = vsel %vm496_vm11, 0.0, %v2140_v34 }
 0x15f   : >> { %v498_v36 = vmul.f32 %v497_v35, %v497_v35  ;;  %v502_v37 = vmul.f32 %v497_v35, %v470_v12 }
 0x161   : >> { %v499_v38 = vadd.f32 1.0, %v498_v36  ;;  %v503_v39 = vsub.f32 %v468_v14, %v502_v37  ;;  %v505_v40 = vadd.f32 %v502_v37, %v472_v15 }
 0x163   : >> { %2141 = vrsqrt.f32 %v499_v38  ;;  %507 = vst [vmem:[%s506_s30] sm:$0xff] %v503_v39  ;;  %509 = vst [vmem:[%s508_s2] sm:$0xff] %v505_v40  ;;  %s574_s30 = smov [#allocation22]  ;;  %s2602_s2 = smov [#allocation9] }
 0x16d   : >> { %v2142_v41 = vpop.eup %2141 }
 0x16e   : >> { %511 = vst [vmem:[%s510_s10] sm:$0xff] %v2142_v41  ;;  %v501_v42 = vmul.f32 %v2142_v41, %v497_v35  ;;  %s2604_s10 = smov [#allocation11] }
 0x170   : >> { %513 = vst [vmem:[%s512_s11] sm:$0xff] %v501_v42  ;;  %s2608_s11 = smov [#allocation14] }
 0x175   : >> { %v515_v43 = vld [vmem:[%s514_s12] ss:$0 sm:$0xff]  ;;  %s2610_s12 = smov [#allocation15] }
 0x176   : >> { %v524_v44 = vsel %vm523_vm12, %v515_v43, 0.0  ;;  %v573_v23 = vld [vmem:[%s572_s29] ss:$0 sm:$0xff]  ;;  %s745_s29 = smov [#allocation15] }
 0x177   : >> { %525 = vadd.xlane.f32.xlu0 %v524_v44  ;;  %v530_v45 = vld [vmem:[%s529_s3] ss:$0 sm:$0xff]  ;;  %s2612_s3 = smov [#allocation12] }
 0x178   : >> { %v539_v46 = vsel %vm538_vm13, %v530_v45, 0.0  ;;  %v575_v24 = vld [vmem:[%s574_s30] ss:$0 sm:$0xff]  ;;  %s844_s30 = sadd.s32 (%p401_p5), 1, %s2409_s0  }
 0x179   : > { %p397_p6 = scmp.ge.s32.totalorder (%p401_p5), %s844_s30, 15  ;;  %s2734_s0 = smov (%p401_p5), %s844_s30 }
 0x17b   : >> { %540 = vadd.xlane.f32.xlu0 %v539_v46 }
 0x204   : >> { %v526_v47 = vpop.xlane.xlu0 %525 }
 0x205   : >> { %528 = vst [vmem:[%s527_s13] sm:$0xff] %v526_v47  ;;  %s2614_s13 = smov [#allocation13] }
 0x208   : >> { %v541_v48 = vpop.xlane.xlu0 %540 }
 0x209   : >> { %543 = vst [vmem:[%s542_s16] sm:$0xff] %v541_v48  ;;  %s628_s16 = smov [#allocation14] }
 0x20c   : >> { %v545_v54 = vld [vmem:[%s544_s14] sm:$0xff]  ;;  %s601_s14 = smov [#allocation19] }
 0x20d   : >> { %v769_v55 = vld [vmem:[%s768_s19] sm:$0xff]  ;;  %v556_v59 = vmul.f32 %v552_v49, %v545_v54  ;;  %v559_v60 = vmul.f32 %v553_v50, %v545_v54  ;;  %v566_v61 = vmul.f32 %v555_v51, %v545_v54  ;;  %v563_v4 = vmul.f32 %v554_v58, %v545_v54  ;;  %s615_s19 = smov [#allocation13] }
 0x20e   : >> { %v780_v62 = vmul.f32 %v776_v52, %v769_v55  ;;  %v783_v63 = vmul.f32 %v777_v53, %v769_v55  ;;  %v787_v0 = vmul.f32 %v778_v56, %v769_v55  ;;  %v790_v1 = vmul.f32 %v779_v57, %v769_v55  ;;  %v608_v55 = vld [vmem:[%s601_s14] ss:$0 sm:$0xff] }
 0x210   : >> { %v547_v2 = vld [vmem:[%s546_s1] sm:$0xff]  ;;  %s2651_s1 = smov [#allocation15] }
 0x211   : >> { %v771_v3 = vld [vmem:[%s770_s26] sm:$0xff]  ;;  %v560_v5 = vmul.f32 %v555_v51, %v547_v2  ;;  %v562_v6 = vmul.f32 %v552_v49, %v547_v2  ;;  %v565_v7 = vmul.f32 %v553_v50, %v547_v2  ;;  %v557_v14 = vmul.f32 %v554_v58, %v547_v2  ;;  %s720_s26 = smov [#allocation12] }
 0x212   : >> { %v781_v8 = vmul.f32 %v778_v56, %v771_v3  ;;  %v784_v9 = vmul.f32 %v779_v57, %v771_v3  ;;  %v786_v12 = vmul.f32 %v776_v52, %v771_v3  ;;  %v789_v13 = vmul.f32 %v777_v53, %v771_v3 }
 0x213   : >> { %v561_v15 = vsub.f32 %v559_v60, %v560_v5  ;;  %v567_v16 = vadd.f32 %v566_v61, %v565_v7  ;;  %v564_v18 = vadd.f32 %v563_v4, %v562_v6  ;;  %v558_v22 = vsub.f32 %v556_v59, %v557_v14 }
 0x214   : >> { %v782_v17 = vsub.f32 %v780_v62, %v781_v8  ;;  %v785_v19 = vsub.f32 %v783_v63, %v784_v9  ;;  %v788_v20 = vadd.f32 %v787_v0, %v786_v12  ;;  %v791_v21 = vadd.f32 %v790_v1, %v789_v13 }
 0x215   : >> { %569 = vst [vmem:[%s2572_s17] sm:$0xff] %v561_v15  ;;  %571 = vst [vmem:[%s2574_s18] sm:$0xff] %v567_v16  ;;  %s600_s17 = smov [#allocation12]  ;;  %s641_s18 = smov [#allocation15] }
 0x216   : >> { %792 = vst [vmem:[%s2576_s20] sm:$0xff] %v782_v17  ;;  %570 = vst [vmem:[%s2585_s25] sm:$0xff] %v564_v18  ;;  %s2648_s20 = smov [#allocation14]  ;;  %s2449_s25 = smov 127  }
 0x217   : >> { %793 = vst [vmem:[%s2578_s22] sm:$0xff] %v785_v19  ;;  %794 = vst [vmem:[%s2580_s23] sm:$0xff] %v788_v20  ;;  %s656_s22 = smov [#allocation12]  ;;  %s2448_s23 = smov 1  }
 0x218   : >> { %795 = vst [vmem:[%s2583_s24] sm:$0xff] %v791_v21  ;;  %568 = vst [vmem:[%s2570_s15] sm:$0xff] %v558_v22  ;;  %s642_s15 = smov [#allocation20]  ;;  %s657_s24 = smov [#allocation13] }
 0x219   : >> { %v649_v56 = vld [vmem:[%s642_s15] ss:$0 sm:$0xff] }
 0x21c   : >> { %v583_v39 = vld [vmem:[%s2610_s12] sm:$0xff] }
 0x21d   : >> { %v798_v25 = vld [vmem:[%s796_s27] ss:$0 sm:$0xff]  ;;  %v1627_v27 = vld [vmem:[%s796_s27 + $0x7] ss:$0 sm:$0xff]  ;;  %v591_v42 = vmul.f32 %v583_v39, %v575_v24  ;;  %v594_v46 = vmul.f32 %v583_v39, %v573_v23 }
 0x21e   : >> { %v1626_v26 = vld [vmem:[%s796_s27 - $0x1] sm:$0xfe]  ;;  %v1631_v34 = vld [vmem:[%s2602_s2 + $0x7] ss:$0 sm:$0xff] }
 0x21f   : >> { %v805_v28 = vsel %vm728_vm14, %v798_v25, %v1626_v26  ;;  %v809_v29 = vld [vmem:[%s797_s28] ss:$0 sm:$0xff]  ;;  %v1629_v30 = vld [vmem:[%s797_s28 + $0x1] sm:$0x7f] }
 0x220   : >> { %v822_v31 = vld [vmem:[%s2602_s2] ss:$0 sm:$0xff]  ;;  %808 = vst [vmem:[%s796_s27] sm:$0xff] %v805_v28  ;;  %v817_v32 = vsel %vm740_vm15, %v1627_v27, %v1629_v30  ;;  %v1633_v37 = vld [vmem:[%s2604_s10 + $0x1] sm:$0x7f] }
 0x221   : >> { %v1630_v33 = vld [vmem:[%s2602_s2 - $0x1] sm:$0xfe]  ;;  %1628 = vst [vmem:[%s796_s27 + $0x1] sm:$0x1] %v809_v29  ;;  %819 = vst [vmem:[%s797_s28] sm:$0xff] %v817_v32  ;;  %v841_v40 = vsel %vm740_vm15, %v1631_v34, %v1633_v37  ;;  %s744_s27 = smov [#allocation13]  ;;  %s721_s28 = smov [#allocation14] }
 0x222   : >> { %v833_v35 = vld [vmem:[%s2604_s10] ss:$0 sm:$0xff]  ;;  %v829_v36 = vsel %vm728_vm14, %v822_v31, %v1630_v33 }
 0x223   : >> { %v582_v38 = vld [vmem:[%s2608_s11] sm:$0xff]  ;;  %832 = vst [vmem:[%s2602_s2] sm:$0xff] %v829_v36  ;;  %843 = vst [vmem:[%s2604_s10] sm:$0xff] %v841_v40  ;;  %s328_s10 = smov (%p401_p5), [#allocation13] }
 0x224   : >> { %v590_v41 = vmul.f32 %v582_v38, %v573_v23  ;;  %v593_v43 = vmul.f32 %v582_v38, %v575_v24  ;;  %v580_v44 = vld [vmem:[%s2612_s3] sm:$0xff]  ;;  %1632 = vst [vmem:[%s2602_s2 + $0x1] sm:$0x1] %v833_v35  ;;  %s309_s2 = smov (%p401_p5), [#allocation12] }
 0x225   : >> { %v581_v45 = vld [vmem:[%s2614_s13] sm:$0xff]  ;;  %v584_v47 = vmul.f32 %v580_v44, %v573_v23  ;;  %v587_v49 = vmul.f32 %v580_v44, %v575_v24 }
 0x226   : >> { %v585_v48 = vmul.f32 %v581_v45, %v575_v24  ;;  %v592_v50 = vsub.f32 %v590_v41, %v591_v42  ;;  %v588_v51 = vmul.f32 %v581_v45, %v573_v23  ;;  %v595_v52 = vadd.f32 %v594_v46, %v593_v43 }
 0x228   : >> { %v586_v53 = vsub.f32 %v584_v47, %v585_v48  ;;  %598 = vst [vmem:[%s2608_s11] sm:$0xff] %v592_v50  ;;  %v589_v54 = vadd.f32 %v588_v51, %v587_v49  ;;  %599 = vst [vmem:[%s2610_s12] sm:$0xff] %v595_v52  ;;  %s345_s11 = smov (%p401_p5), [#allocation14]  ;;  %s362_s12 = smov (%p401_p5), [#allocation15] }
 0x22a   : >> { %596 = vst [vmem:[%s2612_s3] sm:$0xff] %v586_v53  ;;  %597 = vst [vmem:[%s2614_s13] sm:$0xff] %v589_v54 }
 0x22f   : >> { %v635_v57 = vld [vmem:[%s628_s16] sm:$0xff] }
 0x230   : >> { %v639_v58 = vsel %vm638_vm0, 0.0, %v635_v57  ;;  %v650_v60 = vld [vmem:[%s641_s18] sm:$0xff] }
 0x231   : >> { %v609_v59 = vld [vmem:[%s600_s17] sm:$0xff]  ;;  %640 = vst [vmem:[%s628_s16] sm:$0xff] %v639_v58  ;;  %v654_v63 = vsel %vm653_vm3, %v649_v56, %v650_v60 }
 0x232   : >> { %v613_v61 = vsel %vm612_vm1, %v608_v55, %v609_v59  ;;  %v622_v62 = vld [vmem:[%s615_s19] sm:$0xff]  ;;  %655 = vst [vmem:[%s641_s18] sm:$0xff] %v654_v63 }
 0x233   : >> { %614 = vst [vmem:[%s600_s17] sm:$0xff] %v613_v61  ;;  %v626_v0 = vsel %vm625_vm4, 0.0, %v622_v62 }
 0x234   : >> { %627 = vst [vmem:[%s615_s19] sm:$0xff] %v626_v0 }
 0x238   : >> { %v694_v1 = vld [vmem:[%s2648_s20] sm:$0xff] }
 0x239   : >> { %695 = vrot.lane.b32.xlu0 %v694_v1, %s2448_s23  ;;  %v690_v4 = vld [vmem:[%s2651_s1] sm:$0xff] }
 0x23a   : >> { %v662_v2 = vld [vmem:[%s656_s22] sm:$0xff] }
 0x23b   : >> { %663 = vrot.lane.b32.xlu1 %v662_v2, %s2448_s23  ;;  %v658_v3 = vld [vmem:[%s657_s24] sm:$0xff] }
 0x23f   : >> { %659 = vrot.lane.b32.xlu1 %v658_v3, %s2448_s23 }
 0x243   : >> { %680 = vrot.lane.b32.xlu1 %v658_v3, %s2449_s25 }
 0x247   : >> { %691 = vrot.lane.b32.xlu1 %v690_v4, %s2448_s23 }
 0x24b   : >> { %712 = vrot.lane.b32.xlu1 %v690_v4, %s2449_s25 }
 0x2ab   : >> { %v696_v13 = vpop.permute.xlu0 %695 }
 0x2ac   : >> { %v700_v15 = vsel %vm667_vm5, %v694_v1, %v696_v13 }
 0x2ad   : >> { %v664_v5 = vpop.permute.xlu1 %663 }
 0x2ae   : >> { %v668_v6 = vsel %vm667_vm5, %v662_v2, %v664_v5 }
 0x2b1   : >> { %v660_v7 = vpop.permute.xlu1 %659 }
 0x2b2   : >> { %v672_v8 = vsel %vm671_vm6, %v660_v7, %v668_v6 }
 0x2b3   : >> { %v678_v9 = vsel %vm1405_vm2, %v672_v8, 0.0 }
 0x2b4   : >> { %686 = vst [vmem:[%s656_s22] sm:$0xff] %v678_v9 }
 0x2b5   : >> { %v681_v12 = vpop.permute.xlu1 %680 }
 0x2b6   : >> { %v685_v14 = vsel %vm684_vm7, %v662_v2, %v681_v12 }
 0x2b7   : >> { %687 = vst [vmem:[%s657_s24] sm:$0xff] %v685_v14 }
 0x2b9   : >> { %v692_v16 = vpop.permute.xlu1 %691 }
 0x2ba   : >> { %v704_v17 = vsel %vm671_vm6, %v692_v16, %v700_v15 }
 0x2bb   : >> { %v722_v18 = vld [vmem:[%s720_s26] ss:$0 sm:$0xff]  ;;  %v1619_v20 = vld [vmem:[%s720_s26 + $0x7] ss:$0 sm:$0xff]  ;;  %v710_v22 = vsel %vm1405_vm2, %v704_v17, 0.0 }
 0x2bc   : >> { %v1618_v19 = vld [vmem:[%s720_s26 - $0x1] sm:$0xfe]  ;;  %718 = vst [vmem:[%s2648_s20] sm:$0xff] %v710_v22 }
 0x2bd   : >> { %v729_v21 = vsel %vm728_vm14, %v722_v18, %v1618_v19  ;;  %v713_v23 = vpop.permute.xlu1 %712 }
 0x2be   : >> { %732 = vst [vmem:[%s720_s26] sm:$0xff] %v729_v21  ;;  %v746_v24 = vld [vmem:[%s744_s27] ss:$0 sm:$0xff]  ;;  %v1623_v26 = vld [vmem:[%s744_s27 + $0x7] ss:$0 sm:$0xff]  ;;  %v717_v27 = vsel %vm684_vm7, %v694_v1, %v713_v23 }
 0x2bf   : >> { %v1622_v25 = vld [vmem:[%s744_s27 - $0x1] sm:$0xfe]  ;;  %719 = vst [vmem:[%s2651_s1] sm:$0xff] %v717_v27 }
 0x2c0   : >> { %v753_v28 = vsel %vm728_vm14, %v746_v24, %v1622_v25 }
 0x2c1   : >> { %756 = vst [vmem:[%s744_s27] sm:$0xff] %v753_v28 }
 0x2c3   : >> { %v733_v29 = vld [vmem:[%s721_s28] ss:$0 sm:$0xff]  ;;  %v1621_v30 = vld [vmem:[%s721_s28 + $0x1] sm:$0x7f] }
 0x2c4   : >> { %1620 = vst [vmem:[%s720_s26 + $0x1] sm:$0x1] %v733_v29  ;;  %v741_v31 = vsel %vm740_vm15, %v1619_v20, %v1621_v30  ;;  %403 = sbr.rel (!%p401_p5) target bundleno = 276 (0x114), region = 435 }
 0x2c5   : >> { %743 = vst [vmem:[%s721_s28] sm:$0xff] %v741_v31 }
 0x2c6   : >> { %v757_v32 = vld [vmem:[%s745_s29] ss:$0 sm:$0xff]  ;;  %v1625_v33 = vld [vmem:[%s745_s29 + $0x1] sm:$0x7f] }
 0x2c7   : >> { %1624 = vst [vmem:[%s744_s27 + $0x1] sm:$0x1] %v757_v32  ;;  %v765_v34 = vsel %vm740_vm15, %v1623_v26, %v1625_v33 }
 0x2c8   : >> { %767 = vst [vmem:[%s745_s29] sm:$0xff] %v765_v34 }
 0x2cb   : > { %v315_v35 = vld [vmem:[%s309_s2] sm:$0xff] }
 0x2cc   : > { %v316_v37 = vsel %vm1405_vm2, %v315_v35, 0.0  ;;  %v351_v39 = vld [vmem:[%s345_s11] sm:$0xff] }
 0x2cd   : > { %v317_v41 = vmul.f32 %v316_v37, %v316_v37  ;;  %v352_v43 = vsel %vm1405_vm2, %v351_v39, 0.0 }
 0x2ce   : > { %v334_v36 = vld [vmem:[%s328_s10] sm:$0xff]  ;;  %v353_v45 = vmul.f32 %v352_v43, %v352_v43 }
 0x2cf   : > { %v335_v38 = vsel %vm1405_vm2, %v334_v36, 0.0  ;;  %v368_v40 = vld [vmem:[%s362_s12] sm:$0xff]  ;;  %v321_v48 = vsel %vm320_vm8, 0.0, %v317_v41 }
 0x2d0   : > { %v336_v42 = vmul.f32 %v335_v38, %v335_v38  ;;  %v369_v44 = vsel %vm1405_vm2, %v368_v40, 0.0 }
 0x2d1   : > { %v370_v47 = vmul.f32 %v369_v44, %v369_v44 }
 0x2d2   : > { %v338_v46 = vadd.f32 %v336_v42, %v317_v41  ;;  %v337_v49 = vadd.f32 %v336_v42, %v321_v48 }
 0x2d3   : > { %v374_v52 = vsel %vm373_vm9, 0.0, %v370_v47 }
 0x2d4   : > { %v355_v50 = vadd.f32 %v353_v45, %v338_v46  ;;  %v354_v51 = vadd.f32 %v353_v45, %v337_v49 }
 0x2d6   : > { %v376_v53 = vadd.f32 %v370_v47, %v355_v50  ;;  %v375_v54 = vadd.f32 %v374_v52, %v354_v51 }
 0x2d8   : > { %377 = vadd.xlane.f32.xlu0 %v376_v53 }
 0x2dc   : > { %385 = vadd.xlane.f32.xlu0 %v375_v54 }
 0x365   : > { %v378_v55 = vpop.xlane.xlu0 %377 }
 0x366   : > { %v379_v56 = vrot.slane %v378_v55, 4 }
 0x368   : > { %v380_v57 = vadd.f32 %v379_v56, %v378_v55 }
 0x369   : > { %v386_v58 = vpop.xlane.xlu0 %385 }
 0x36a   : > { %v381_v59 = vrot.slane %v380_v57, 2  ;;  %v387_v60 = vrot.slane %v386_v58, 4 }
 0x36c   : > { %v388_v61 = vadd.f32 %v387_v60, %v386_v58  ;;  %v382_v62 = vadd.f32 %v381_v59, %v380_v57 }
 0x36e   : > { %v389_v63 = vrot.slane %v388_v61, 2  ;;  %v383_v1 = vrot.slane %v382_v62, 1 }
 0x370   : > { %v390_v0 = vadd.f32 %v389_v63, %v388_v61  ;;  %v384_v4 = vadd.f32 %v383_v1, %v382_v62 }
 0x372   : > { %v391_v2 = vrot.slane %v390_v0, 1 }
 0x374   : > { %v392_v3 = vadd.f32 %v391_v2, %v390_v0 }
 0x376   : > { %1660 = vpush %v392_v3 }
 0x377   : > { %1662 = vpush %v384_v4 }
 0x3a7   : > { %s1661_s21 = spop %1660 }
 0x3a8   : > { %s1663_s3 = spop %1662 }
 0x3a9   : > { %s395_s13 = smul.f32 1e-10, %s1663_s3 }
 0x3ab   : > { %p396_p7 = scmp.le.f32.partialorder %s1661_s21, %s395_s13 }
 0x3ad   : > { %p398_p8 = por %p397_p6, %p396_p7 }
 0x3af   :  { %846 = sbr.rel (!%p398_p8) target bundleno = 275 (0x113), region = 446 }
 0x3b6 PF:  { %s847_s14 = smov [#allocation12]  ;;  %v851_v10 = vmov %v2524_v10  ;;  %v854_v11 = vmov %v2526_v11  ;;  %s867_s15 = smov [#allocation15] }
 0x3b7   :  { %v871_v10 = vmov %v2524_v10  ;;  %v874_v11 = vmov %v2526_v11  ;;  %v855_v5 = vld [vmem:[%s847_s14] sm:$0xff]  ;;  %vm858_vm10 = vcmp.eq.s32.totalorder %v854_v11, %v851_v10  ;;  %s848_s0 = smov [#allocation4]  ;;  %s868_s16 = smov [#allocation6] }
 0x3b8   :  { %vm878_vm11 = vcmp.eq.s32.totalorder %v874_v11, %v871_v10  ;;  %v859_v6 = vsel %vm858_vm10, %v855_v5, 0.0  ;;  %v875_v7 = vld [vmem:[%s867_s15] sm:$0xff]  ;;  %s2415_s24 = smov %s2730_s6   ;;  %s2419_s25 = smov [#allocation8]  }
 0x3b9   :  { %v860_v8 = vrot.slane %v859_v6, 4  ;;  %v879_v9 = vsel %vm878_vm11, %v875_v7, 0.0 }
 0x3ba   :  { %v880_v12 = vrot.slane %v879_v9, 4 }
 0x3bb   :  { %v861_v13 = vadd.f32 %v860_v8, %v859_v6 }
 0x3bc   :  { %v881_v14 = vadd.f32 %v880_v12, %v879_v9 }
 0x3bd   :  { %v862_v15 = vrot.slane %v861_v13, 2 }
 0x3be   :  { %v882_v16 = vrot.slane %v881_v14, 2 }
 0x3bf   :  { %v863_v17 = vadd.f32 %v862_v15, %v861_v13 }
 0x3c0   :  { %v883_v18 = vadd.f32 %v882_v16, %v881_v14 }
 0x3c1   :  { %v864_v19 = vrot.slane %v863_v17, 1 }
 0x3c2   :  { %v884_v20 = vrot.slane %v883_v18, 1 }
 0x3c3   :  { %v865_v21 = vadd.f32 %v864_v19, %v863_v17 }
 0x3c4   :  { %v885_v22 = vadd.f32 %v884_v20, %v883_v18 }
 0x3c5   :  { %866 = vst [vmem:[%s848_s0] sm:$0x1] %v865_v21 }
 0x3c6   :  { %886 = vst [vmem:[%s868_s16] sm:$0x1] %v885_v22 }
 0x3cc   :  { %v890_v10 = vld [vmem:[#allocation4] sm:$0x1] }
 0x3cd   :  { %892 = vst [vmem:[#allocation5] sm:$0x1] %v890_v10  ;;  %v896_v11 = vld [vmem:[#allocation6] sm:$0x1] }
 0x3ce   :  { %898 = vst [vmem:[#allocation7] sm:$0x1] %v896_v11 }
 0x3d4   :  { %v961_v23 = vld [vmem:[#allocation5] sm:$0x1] }
 0x3d5   :  { %962 = vst [vmem:[%s2728_s4] sm:$0x1] %v961_v23  ;;  %v1025_v24 = vld [vmem:[#allocation7] sm:$0x1] }
 0x3d6   :  { %1026 = vst [vmem:[%s2729_s5] sm:$0x1] %v1025_v24 }
 0x3d7 LB: > { %v1074_v25 = vld [vmem:[%s2421_s25] sm:$0xff]  ;;  %s1076_s25 = scalar_lea.vmem %s2421_s25, 8   ;;  %s2421_s25 = sphi %s2419_s25, %s1076_s25   ;;  %s2417_s24 = sphi %s2415_s24, %s1077_s24  }
 0x3d8   : > { %1075 = vst [vmem:[%s2417_s24] sm:$0xff] %v1074_v25  ;;  %s1077_s24 = scalar_lea.vmem %s2417_s24, 8   ;;  %p1071_p9 = scmp.gt.s32.totalorder %s1076_s25, [#allocation8] }
 0x3d9   :  { %s2423_s5 = smov (%p1071_p9), %s2731_s7   ;;  %s2427_s26 = smov (%p1071_p9), [#allocation9]  }
 0x3da   :  { %1073 = sbr.rel (!%p1071_p9) target bundleno = 983 (0x3d7), region = 512 }
 0x3e1 LB: > { %v1136_v26 = vld [vmem:[%s2429_s26] sm:$0xff]  ;;  %s1138_s26 = scalar_lea.vmem %s2429_s26, 8   ;;  %s2429_s26 = sphi %s2427_s26, %s1138_s26   ;;  %s2425_s5 = sphi %s2423_s5, %s1139_s5  }
 0x3e2   : > { %1137 = vst [vmem:[%s2425_s5] sm:$0xff] %v1136_v26  ;;  %s1139_s5 = scalar_lea.vmem %s2425_s5, 8   ;;  %p1133_p10 = scmp.gt.s32.totalorder %s1138_s26, [#allocation9] }
 0x3e3   :  { %s2431_s28 = smov (%p1133_p10), %s2732_s8   ;;  %s2435_s29 = smov (%p1133_p10), [#allocation10]  }
 0x3e4   :  { %1135 = sbr.rel (!%p1133_p10) target bundleno = 993 (0x3e1), region = 534 }
 0x3eb LB: > { %v1198_v27 = vld [vmem:[%s2437_s29] sm:$0xff]  ;;  %s1200_s29 = scalar_lea.vmem %s2437_s29, 8   ;;  %s2437_s29 = sphi %s2435_s29, %s1200_s29   ;;  %s2433_s28 = sphi %s2431_s28, %s1201_s28  }
 0x3ec   : > { %1199 = vst [vmem:[%s2433_s28] sm:$0xff] %v1198_v27  ;;  %s1201_s28 = scalar_lea.vmem %s2433_s28, 8   ;;  %p1195_p11 = scmp.gt.s32.totalorder %s1200_s29, [#allocation10] }
 0x3ed   :  { %s2439_s2 = smov (%p1195_p11), %s2733_s9   ;;  %s2443_s10 = smov (%p1195_p11), [#allocation11]  }
 0x3ee   :  { %1197 = sbr.rel (!%p1195_p11) target bundleno = 1003 (0x3eb), region = 556 }
 0x3f5 LB: > { %v1260_v28 = vld [vmem:[%s2445_s10] sm:$0xff]  ;;  %s1262_s10 = scalar_lea.vmem %s2445_s10, 8   ;;  %s2445_s10 = sphi %s2443_s10, %s1262_s10   ;;  %s2441_s2 = sphi %s2439_s2, %s1263_s2  }
 0x3f6   : > { %1261 = vst [vmem:[%s2441_s2] sm:$0xff] %v1260_v28  ;;  %s1263_s2 = scalar_lea.vmem %s2441_s2, 8   ;;  %p1257_p12 = scmp.gt.s32.totalorder %s1262_s10, [#allocation11] }
 0x3f8   :  { %1259 = sbr.rel (!%p1257_p12) target bundleno = 1013 (0x3f5), region = 578 }

// kernel: reverse
= control target key start
LH: loop header
LB: loop body
LE: loop exit
PB: predicated region body
PF: predicated region fallthrough
CT: control target
= control target key end

     0   :  { %v2_v0 = vlaneseq  ;;  %s123_s0 = inlined_call_operand.vmem [shape: f32[16], index: 0, kind: input, shape index: {}]   ;;  %s124_s1 = inlined_call_operand.vmem [shape: f32[16], index: 1, kind: output, shape index: {}]  }
   0x2   :  { %v3_v1 = vsub.s32 15, %v2_v0 }
   0x4   :  { %4 = vset.pattern.permute.xlu0 %v3_v1 }
   0x5   :  { %v43_v2 = vld [vmem:[#allocation1] sm:$0x1]  ;;  %v21_v3 = vld [vmem:[%s123_s0] sm:$0x1]  ;;  %v58_v10 = vshrl.u32 %v2_v0, 7 }
   0x6   :  { %44 = vst [vmem:[#allocation0] sm:$0x1] %v43_v2  ;;  %22 = vst [vmem:[#allocation1 + $0x1] sm:$0x1] %v21_v3 }
   0x7   :  { %vm59_vm0 = vcmp.lt.s32.totalorder %v58_v10, 1 }
   0xd   :  { %v46_v4 = vld [vmem:[#allocation0 + $0x7] ss:$-1 sm:$0xff]  ;;  %v40_v5 = vld [vmem:[#allocation1 + $0x1] sm:$0x1] }
   0xe   :  { %v47_v6 = vrot.slane %v46_v4, 7  ;;  %42 = vst [vmem:[#allocation0 + $0x8] sm:$0x1] %v40_v5 }
  0x10   :  { %48 = vperm.xlu0 %4, %v47_v6  }
  0x15   :  { %v53_v7 = vld [vmem:[#allocation0 + $0xf] ss:$-1 sm:$0xff] }
  0x16   :  { %v54_v8 = vrot.slane %v53_v7, 7 }
  0x18   :  { %55 = vperm.xlu0 %4, %v54_v8  }
  0x8f   :  { %v49_v9 = vpop.permute.xlu0 %48 }
  0x90   :  { %50 = vst [vmem:[#allocation2] sm:$0xff] %v49_v9 }
  0x97   :  { %v56_v11 = vpop.permute.xlu0 %55 }
  0x98   :  { %60 = vst.msk [vmem:[#allocation2] sm:$0xff] %vm59_vm0, %v56_v11 }
  0x9f   :  { %v64_v12 = vld [vmem:[#allocation2] sm:$0x1] }
  0xa0   :  { %66 = vst [vmem:[#allocation3] sm:$0x1] %v64_v12 }
  0xa7   :  { %v82_v13 = vld [vmem:[#allocation3] sm:$0x1] }
  0xa8   :  { %83 = vst [vmem:[%s124_s1] sm:$0x1] %v82_v13 }

// kernel: custom-call.19
= control target key start
LH: loop header
LB: loop body
LE: loop exit
PB: predicated region body
PF: predicated region fallthrough
CT: control target
= control target key end

     0   :  { %v395_v2 = vmov 0.0   ;;  %s418_s13 = smov 0   ;;  %s502_s0 = inlined_call_operand.vmem [shape: f32[16,16], index: 0, kind: input, shape index: {}]   ;;  %s503_s1 = inlined_call_operand.vmem [shape: f32[16,16], index: 1, kind: output, shape index: {0}]   ;;  %s504_s2 = inlined_call_operand.vmem [shape: f32[16], index: 2, kind: output, shape index: {1}]  }
   0x1   :  { %v33_v0 = vld [vmem:[%s502_s0] sm:$0xff]  ;;  %v35_v1 = vld [vmem:[%s502_s0 + $0x8] sm:$0xff]  ;;  %46 = vst [vmem:[#allocation2] sm:$0x1] %v395_v2 }
   0x2   :  { %41 = vst [vmem:[#allocation1] sm:$0xff] %v33_v0  ;;  %45 = vst [vmem:[#allocation1 + $0x8] sm:$0xff] %v35_v1 }
   0x3 LB: > { %v54_v3 = vlaneseq  ;;  %v427_v6 = vstv %s393_s13  ;;  %s91_s0 = scalar_lea.vmem [#allocation1], %s393_s13  ;;  %s127_s14 = smov [#allocation1]  ;;  %s393_s13 = sphi %s418_s13, %s52_s13  }
   0x4   : > { %s167_s15 = scalar_lea.vmem [#allocation4], %s393_s13  ;;  %s183_s16 = smov [#allocation1] }
   0x5   : > { %v424_v5 = vshrl.u32 %v54_v3, 7  ;;  %v453_v54 = vand.u32 127, %v54_v3  ;;  %s184_s17 = smov [#allocation4] }
   0x7   : > { %vm58_vm0 = vcmp.gt.s32.totalorder %v424_v5, %v427_v6  ;;  %v65_v8 = vadd.s32 8, %v424_v5  ;;  %v130_v5 = vmov %v424_v5  ;;  %vm457_vm12 = vcmp.eq.s32.totalorder %v453_v54, %v427_v6 }
   0x8   : > { %v149_v50 = vadd.s32 8, %v130_v5  ;;  %vm134_vm10 = vcmp.gt.s32.totalorder %v130_v5, %v427_v6  ;;  %v187_v5 = vmov %v424_v5 }
   0x9   : > { %v53_v4 = vld [vmem:[#allocation1] sm:$0xff]  ;;  %v62_v7 = vld [vmem:[#allocation1 + $0x8] sm:$0xff]  ;;  %vm67_vm1 = vcmp.gt.s32.totalorder %v65_v8, %v427_v6 }
   0xa   : > { %v59_v9 = vsel %vm58_vm0, %v53_v4, 0.0  ;;  %v70_v11 = vsel %vm67_vm1, %v62_v7, 0.0  ;;  %v92_v20 = vld [vmem:[%s91_s0] ss:$0 sm:$0xff]  ;;  %vm151_vm8 = vcmp.gt.s32.totalorder %v149_v50, %v427_v6  ;;  %vm152_vm9 = vcmp.lt.s32.totalorder %v149_v50, 16  ;;  %v361_v53 = vld [vmem:[%s127_s14 + $0x8] sm:$0xff] }
   0xb   : > { %v60_v10 = vmul.f32 %v59_v9, %v59_v9  ;;  %v71_v12 = vmul.f32 %v70_v11, %v70_v11  ;;  %v93_v21 = vand.u32 2147483647, %v92_v20  ;;  %vm118_vm7 = vcmp.lt.f32.partialorder %v92_v20, 0.0  ;;  %v131_v52 = vld [vmem:[%s127_s14] sm:$0xff]  ;;  %vm153_vm11 = vmand %vm151_vm8, %vm152_vm9  ;;  %v180_v7 = vld [vmem:[#allocation2] ss:$0 sm:$0xff] }
   0xc   : > { %v135_v56 = vsel %vm134_vm10, %v131_v52, 0.0  ;;  %v154_v57 = vsel %vm153_vm11, %v361_v53, 0.0  ;;  %vm220_vm0 = vcmp.gt.s32.totalorder %v453_v54, %v427_v6 }
   0xd   : > { %v72_v13 = vadd.f32 %v71_v12, %v60_v10  ;;  %v94_v26 = vmax.f32 %v93_v21, 0.0  ;;  %v396_v12 = vmov 1.0  }
   0xf   : > { %v73_v14 = vrot.slane %v72_v13, 4 }
  0x11   : > { %v74_v15 = vadd.f32 %v73_v14, %v72_v13  ;;  %v192_v13 = vadd.s32 8, %v187_v5  ;;  %v190_v14 = vld [vmem:[%s183_s16] sm:$0xff]  ;;  %v211_v5 = vmov %v424_v5 }
  0x12   : > { %vm228_vm14 = vcmp.ge.s32.totalorder %v211_v5, %v427_v6 }
  0x13   : > { %v75_v16 = vrot.slane %v74_v15, 2  ;;  %vm198_vm13 = vcmp.lt.s32.totalorder %v192_v13, 16  ;;  %vm229_vm1 = vmand %vm457_vm12, %vm228_vm14 }
  0x15   : > { %v76_v17 = vadd.f32 %v75_v16, %v74_v15  ;;  %v363_v15 = vld [vmem:[%s183_s16 + $0x8] sm:$0xff]  ;;  %s207_s16 = smov %s183_s16 }
  0x16   : > { %s253_s18 = scalar_lea.vmem %s207_s16, %s393_s13  ;;  %s52_s13 = sadd.s32 1, %s393_s13  }
  0x17   : > { %v77_v18 = vrot.slane %v76_v17, 1  ;;  %p49_p0 = scmp.ge.s32.totalorder %s52_s13, 16  }
  0x19   : > { %v433_v19 = vadd.f32 %v77_v18, %v76_v17 }
  0x1b   : > { %377 = vrsqrt.f32 %v433_v19  ;;  %vm81_vm2 = vcmp.eq.f32.partialorder %v433_v19, inf  ;;  %v84_v23 = vand.u32 2147483648, %v433_v19  ;;  %vm83_vm3 = vcmp.eq.f32.partialorder %v433_v19, 0.0 }
  0x25   : > { %v378_v22 = vpop.eup %377 }
  0x26   : > { %v80_v24 = vmul.f32 %v378_v22, %v433_v19 }
  0x28   : > { %v82_v25 = vsel %vm81_vm2, %v433_v19, %v80_v24 }
  0x29   : > { %v85_v27 = vsel %vm83_vm3, %v84_v23, %v82_v25 }
  0x2a   : > { %v95_v28 = vand.u32 2147483647, %v85_v27  ;;  %v232_v27 = vadd.s32 8, %v211_v5 }
  0x2c   : > { %v96_v29 = vmax.f32 %v94_v26, %v95_v28  ;;  %vm249_vm15 = vcmp.ge.s32.totalorder %v232_v27, %v427_v6 }
  0x2d   : > { %vm250_vm2 = vmand %vm457_vm12, %vm249_vm15 }
  0x2e   : > { %379 = vrcp.f32 %v96_v29  ;;  %vm108_vm6 = vcmp.eq.f32.partialorder %v96_v29, 0.0 }
  0x38   : > { %v380_v30 = vpop.eup %379 }
  0x39   : > { %v98_v31 = vmul.f32 %v380_v30, %v93_v21  ;;  %v101_v32 = vmul.f32 0.0, %v380_v30  ;;  %v105_v33 = vmul.f32 %v380_v30, %v95_v28 }
  0x3b   : > { %v99_v34 = vmul.f32 %v98_v31, %v98_v31  ;;  %v102_v35 = vmul.f32 %v101_v32, %v101_v32  ;;  %v106_v36 = vmul.f32 %v105_v33, %v105_v33  ;;  %v365_v33 = vld [vmem:[%s207_s16 + $0x8] sm:$0xff] }
  0x3d   : > { %v103_v37 = vadd.f32 %v102_v35, %v99_v34 }
  0x3f   : > { %v107_v38 = vadd.f32 %v106_v36, %v103_v37 }
  0x41   : > { %381 = vrsqrt.f32 %v107_v38  ;;  %vm111_vm4 = vcmp.eq.f32.partialorder %v107_v38, inf  ;;  %v114_v40 = vand.u32 2147483648, %v107_v38  ;;  %vm113_vm5 = vcmp.eq.f32.partialorder %v107_v38, 0.0 }
  0x4b   : > { %v382_v39 = vpop.eup %381 }
  0x4c   : > { %v110_v41 = vmul.f32 %v382_v39, %v107_v38 }
  0x4e   : > { %v112_v42 = vsel %vm111_vm4, %v107_v38, %v110_v41 }
  0x4f   : > { %v115_v43 = vsel %vm113_vm5, %v114_v40, %v112_v42 }
  0x50   : > { %v116_v44 = vmul.f32 %v115_v43, %v96_v29  ;;  %v218_v29 = vld [vmem:[%s207_s16] sm:$0xff] }
  0x52   : > { %v117_v45 = vsel %vm108_vm6, 0.0, %v116_v44 }
  0x53   : > { %v119_v46 = vxor.u32 2147483648, %v117_v45 }
  0x55   : > { %v120_v47 = vsel %vm118_vm7, %v117_v45, %v119_v46 }
  0x56   : > { %v447_v48 = vsel %vm83_vm3, %v92_v20, %v120_v47  ;;  %383 = vrcp.f32 %v120_v47  ;;  %v121_v51 = vsub.f32 %v120_v47, %v92_v20 }
  0x57   : > { %v126_v49 = vsub.f32 %v92_v20, %v447_v48 }
  0x59   : > { %385 = vrcp.f32 %v126_v49 }
  0x60   : > { %v384_v55 = vpop.eup %383 }
  0x61   : > { %v123_v58 = vmul.f32 %v384_v55, %v121_v51 }
  0x63   : > { %v386_v59 = vpop.eup %385  ;;  %v125_v61 = vsel %vm83_vm3, 0.0, %v123_v58 }
  0x64   : > { %v137_v62 = vmul.f32 %v386_v59, %v135_v56  ;;  %v156_v63 = vmul.f32 %v386_v59, %v154_v57  ;;  %v173_v0 = vsel %vm457_vm12, %v125_v61, 0.0 }
  0x65   : > { %174 = vadd.xlane.f32.xlu1 %v173_v0 }
  0x66   : > { %v138_v1 = vsel %vm83_vm3, 0.0, %v137_v62  ;;  %v157_v2 = vsel %vm83_vm3, 0.0, %v156_v63 }
  0x67   : > { %v143_v3 = vsel %vm457_vm12, %v138_v1, 0.0  ;;  %v162_v4 = vsel %vm457_vm12, %v157_v2, 0.0 }
  0x68   : > { %144 = vadd.xlane.f32.xlu0 %v143_v3 }
  0x6c   : > { %163 = vadd.xlane.f32.xlu0 %v162_v4 }
  0xf2   : > { %v175_v8 = vpop.xlane.xlu1 %174 }
  0xf3   : > { %v181_v9 = vsel %vm457_vm12, %v175_v8, %v180_v7 }
  0xf4   : > { %182 = vst [vmem:[#allocation2] sm:$0x1] %v181_v9 }
  0xf5   : > { %v145_v10 = vpop.xlane.xlu0 %144 }
  0xf6   : > { %146 = vst [vmem:[#allocation4] sm:$0xff] %v145_v10 }
  0xf9   : > { %v164_v11 = vpop.xlane.xlu0 %163 }
  0xfa   : > { %166 = vst [vmem:[#allocation4 + $0x8] sm:$0xff] %v164_v11 }
  0xfb   : > { %168 = vst [vmem:[%s167_s15] sm:$0x1] %v396_v12  ;;  %v264_v42 = vld [vmem:[#allocation2] sm:$0x1] (%p49_p0) }
  0xfc   :  { %266 = vst [vmem:[#allocation3] sm:$0x1] (%p49_p0), %v264_v42 }
 0x102   : > { %v189_v16 = vld [vmem:[%s184_s17] sm:$0xff]  ;;  %v362_v17 = vld [vmem:[%s184_s17 + $0x8] sm:$0xff]  ;;  %s208_s17 = smov %s184_s17 }
 0x103   : > { %v191_v18 = vmul.f32 %v190_v14, %v189_v16  ;;  %v197_v19 = vmul.f32 %v363_v15, %v362_v17  ;;  %v216_v31 = vld [vmem:[%s208_s17] sm:$0xff]  ;;  %v364_v32 = vld [vmem:[%s208_s17 + $0x8] sm:$0xff]  ;;  %v320_v45 = vld [vmem:[#allocation3] sm:$0x1] (%p49_p0) }
 0x104   :  { %321 = vst [vmem:[%s504_s2] sm:$0x1] (%p49_p0), %v320_v45 }
 0x105   : > { %v199_v20 = vsel %vm198_vm13, %v197_v19, 0.0 }
 0x106   : > { %v200_v21 = vadd.f32 %v199_v20, %v191_v18 }
 0x108   : > { %v201_v22 = vrot.slane %v200_v21, 4 }
 0x10a   : > { %v202_v23 = vadd.f32 %v201_v22, %v200_v21 }
 0x10c   : > { %v203_v24 = vrot.slane %v202_v23, 2 }
 0x10e   : > { %v204_v25 = vadd.f32 %v203_v24, %v202_v23 }
 0x110   : > { %v205_v26 = vrot.slane %v204_v25, 1 }
 0x112   : > { %v206_v28 = vadd.f32 %v205_v26, %v204_v25 }
 0x114   : > { %v212_v30 = vmul.f32 %v206_v28, %v175_v8 }
 0x116   : > { %v217_v34 = vmul.f32 %v216_v31, %v212_v30  ;;  %v237_v35 = vmul.f32 %v364_v32, %v212_v30 }
 0x118   : > { %v221_v36 = vsub.f32 %v218_v29, %v217_v34  ;;  %v242_v5 = vsub.f32 %v365_v33, %v237_v35 }
 0x11a   : > { %v222_v37 = vsel %vm220_vm0, %v221_v36, %v218_v29  ;;  %v243_v38 = vsel %vm220_vm0, %v242_v5, %v365_v33 }
 0x11b   : > { %v230_v39 = vsel %vm229_vm1, %v216_v31, %v222_v37  ;;  %v251_v40 = vsel %vm250_vm2, %v364_v32, %v243_v38 }
 0x11c   : > { %231 = vst [vmem:[%s207_s16] sm:$0xff] %v230_v39  ;;  %366 = vst [vmem:[%s207_s16 + $0x8] sm:$0xff] %v251_v40 }
 0x11f   :  { %51 = sbr.rel (!%p49_p0) target bundleno = 3 (0x3), region = 148 }
 0x123   : > { %v254_v41 = vld [vmem:[%s253_s18] ss:$0 sm:$0xff] }
 0x124   : > { %v259_v6 = vsel %vm457_vm12, %v447_v48, %v254_v41 }
 0x125   : > { %260 = vst [vmem:[%s253_s18] sm:$0x1] %v259_v6 }
 0x12c   :  { %v296_v43 = vld [vmem:[#allocation1] sm:$0xff]  ;;  %v298_v44 = vld [vmem:[#allocation1 + $0x8] sm:$0xff] }
 0x12d   :  { %297 = vst [vmem:[%s503_s1] sm:$0xff] %v296_v43  ;;  %299 = vst [vmem:[%s503_s1 + $0x8] sm:$0xff] %v298_v44 }

// kernel: _svd_proj.13
= control target key start
LH: loop header
LB: loop body
LE: loop exit
PB: predicated region body
PF: predicated region fallthrough
CT: control target
= control target key end

     0   :  { %vm35_vm0 = vcmask 130048   ;;  %v174_v13 = vlaneseq  ;;  %s355_s1 = inlined_call_operand.vmem [shape: f32[16,128], index: 1, kind: input, shape index: {}]   ;;  %s356_s0 = inlined_call_operand.vmem [shape: f32[64,16], index: 0, kind: input, shape index: {}]   ;;  %s357_s3 = inlined_call_operand.vmem [shape: f32[1,128], index: 3, kind: input, shape index: {}]   ;;  %s358_s2 = inlined_call_operand.vmem [shape: f32[64,128], index: 2, kind: input, shape index: {}]   ;;  %s359_s4 = inlined_call_operand.vmem [shape: f32[64,128], index: 4, kind: output, shape index: {}]  }
   0x1   :  { %v25_v0 = vld [vmem:[%s355_s1] sm:$0xff]  ;;  %v26_v1 = vld [vmem:[%s355_s1 + $0x8] sm:$0xff]  ;;  %v19_v7 = vld [vmem:[%s356_s0 + $0x10] sm:$0xff] }
   0x2   :  { %v17_v2 = vld [vmem:[%s356_s0] sm:$0xff]  ;;  %v233_v3 = vpack.c.bf16 %v26_v1, %v25_v0  ;;  %v18_v5 = vld [vmem:[%s356_s0 + $0x8] sm:$0xff]  ;;  %v23_v8 = vld [vmem:[%s356_s0 + $0x30] sm:$0xff]  ;;  %v175_v15 = vshrl.u32 %v174_v13, 7 }
   0x3   :  { %221 = vmatprep.mubr.msk.f32.mxu0 %vm35_vm0, %v17_v2  ;;  %v21_v4 = vld [vmem:[%s356_s0 + $0x20] sm:$0xff]  ;;  %v22_v6 = vld [vmem:[%s356_s0 + $0x28] sm:$0xff]  ;;  %v20_v9 = vld [vmem:[%s356_s0 + $0x18] sm:$0xff] }
   0x4   :  { %227 = vmatprep.mubr.msk.f32.mxu1 %vm35_vm0, %v21_v4  ;;  %234 = vmatprep.subr.bf16.mxu0 %v233_v3  ;;  %v24_v10 = vld [vmem:[%s356_s0 + $0x38] sm:$0xff]  ;;  %v165_v11 = vld [vmem:[%s357_s3] sm:$0x1]  ;;  %v176_v18 = vsub.s32 0, %v175_v15  ;;  %v28_v20 = vld [vmem:[%s358_s2 + $0x8] sm:$0xff] }
   0x5   :  { %237 = vmatprep.subr.bf16.mxu1 %v233_v3  ;;  %236 = vmatpush3.bf16.msra.mxu0 %v233_v3  ;;  %239 = vrsqrt.f32 %v165_v11  ;;  %vm168_vm1 = vcmp.eq.f32.partialorder %v165_v11, inf  ;;  %v171_v16 = vand.u32 2147483648, %v165_v11  ;;  %vm170_vm2 = vcmp.eq.f32.partialorder %v165_v11, 0.0  ;;  %v32_v21 = vld [vmem:[%s358_s2 + $0x28] sm:$0xff]  ;;  %v27_v23 = vld [vmem:[%s358_s2] sm:$0xff]  ;;  %v30_v33 = vld [vmem:[%s358_s2 + $0x18] sm:$0xff] }
   0x6   :  { %238 = vmatpush3.bf16.msra.mxu1 %v233_v3  ;;  %v31_v24 = vld [vmem:[%s358_s2 + $0x20] sm:$0xff]  ;;  %v34_v34 = vld [vmem:[%s358_s2 + $0x38] sm:$0xff]  ;;  %v29_v37 = vld [vmem:[%s358_s2 + $0x10] sm:$0xff] }
   0x7   :  { %v33_v38 = vld [vmem:[%s358_s2 + $0x30] sm:$0xff] }
   0x8   :  { %222 = vmatmul.mubr.msk.f32.vlgmr.msra.gmra.mrb[0].mxu0 %vm35_vm0, %v18_v5 }
   0x9   :  { %228 = vmatmul.mubr.msk.f32.vlgmr.msra.gmra.mrb[0].mxu1 %vm35_vm0, %v22_v6  ;;  %224 = vmatprep.mubr.msk.f32.mxu0 %vm35_vm0, %v19_v7 }
   0xa   :  { %230 = vmatprep.mubr.msk.f32.mxu1 %vm35_vm0, %v23_v8 }
   0xc   :  { %225 = vmatmul.mubr.msk.f32.gmra.mrb[2].mxu0 %vm35_vm0, %v20_v9 }
   0xd   :  { %231 = vmatmul.mubr.msk.f32.gmra.mrb[2].mxu1 %vm35_vm0, %v24_v10 }
   0xf   :  { %v240_v12 = vpop.eup %239 }
  0x10   :  { %v167_v14 = vmul.f32 %v240_v12, %v165_v11 }
  0x12   :  { %v169_v17 = vsel %vm168_vm1, %v165_v11, %v167_v14 }
  0x13   :  { %v172_v19 = vsel %vm170_vm2, %v171_v16, %v169_v17 }
  0x14   :  { %v177_v22 = vrot.slane %v172_v19, %v176_v18 }
  0xdb   :  { %v223_v25 = vpop.f32.mrb[0].mxu0 }
  0xdc   :  { %v229_v26 = vpop.f32.mrb[0].mxu1  ;;  %v132_v27 = vadd.f32 %v223_v25, %v28_v20  ;;  %v126_v29 = vpop.f32.mrb[1].mxu0 }
  0xdd   :  { %v152_v28 = vadd.f32 %v229_v26, %v32_v21  ;;  %v146_v30 = vpop.f32.mrb[1].mxu1  ;;  %v127_v31 = vadd.f32 %v126_v29, %v27_v23 }
  0xde   :  { %v147_v32 = vadd.f32 %v146_v30, %v31_v24  ;;  %v180_v35 = vmul.f32 %v177_v22, %v132_v27 }
  0xdf   :  { %v184_v36 = vmul.f32 %v177_v22, %v152_v28  ;;  %v179_v39 = vmul.f32 %v177_v22, %v127_v31  ;;  %v226_v41 = vpop.f32.mrb[2].mxu0 }
  0xe0   :  { %v183_v40 = vmul.f32 %v177_v22, %v147_v32  ;;  %v232_v42 = vpop.f32.mrb[2].mxu1  ;;  %188 = vst [vmem:[%s359_s4 + $0x8] sm:$0xff] %v180_v35  ;;  %v142_v43 = vadd.f32 %v226_v41, %v30_v33  ;;  %v136_v45 = vpop.f32.mrb[3].mxu0 }
  0xe1   :  { %192 = vst [vmem:[%s359_s4 + $0x28] sm:$0xff] %v184_v36  ;;  %v162_v44 = vadd.f32 %v232_v42, %v34_v34  ;;  %v156_v46 = vpop.f32.mrb[3].mxu1  ;;  %187 = vst [vmem:[%s359_s4] sm:$0xff] %v179_v39  ;;  %v137_v47 = vadd.f32 %v136_v45, %v29_v37 }
  0xe2   :  { %191 = vst [vmem:[%s359_s4 + $0x20] sm:$0xff] %v183_v40  ;;  %v157_v48 = vadd.f32 %v156_v46, %v33_v38  ;;  %v182_v49 = vmul.f32 %v177_v22, %v142_v43 }
  0xe3   :  { %v186_v50 = vmul.f32 %v177_v22, %v162_v44  ;;  %v181_v51 = vmul.f32 %v177_v22, %v137_v47 }
  0xe4   :  { %v185_v52 = vmul.f32 %v177_v22, %v157_v48  ;;  %190 = vst [vmem:[%s359_s4 + $0x18] sm:$0xff] %v182_v49 }
  0xe5   :  { %194 = vst [vmem:[%s359_s4 + $0x38] sm:$0xff] %v186_v50  ;;  %189 = vst [vmem:[%s359_s4 + $0x10] sm:$0xff] %v181_v51 }
  0xe6   :  { %193 = vst [vmem:[%s359_s4 + $0x30] sm:$0xff] %v185_v52 }

</bundles_post_ra>
